<compile_context>
chip_gen: v7x
topology: tpu7x:2x2x1
jax: 0.10.0
libtpu: 0.0.40
codegen_flags: <defaults>
</compile_context>

<pallas_src>
import numpy as np

import jax
import jax.numpy as jnp
from jax.experimental import pallas as pl
from jax.experimental.pallas import tpu as pltpu

_LANE = 128
_SUBLANE = 8
_VMEM_LIMIT = 32 * 1024 * 1024


def _round_up(n, m):
    return ((n + m - 1) // m) * m


# ---------------------------------------------------------------------------
# Pallas kernels
# ---------------------------------------------------------------------------
def _matmul_bias_relu_kernel(x_ref, w_ref, b_ref, o_ref):
    # x: (tm, K) bf16, w: (K, Cp) bf16, b: (1, Cp) f32  ->  o: (tm, Cp) bf16
    acc = jnp.dot(x_ref[...], w_ref[...], preferred_element_type=jnp.float32)
    o_ref[...] = jnp.maximum(acc + b_ref[...], 0.0).astype(o_ref.dtype)


def _matmul_bias_relu_meanpool_kernel(x_ref, w_ref, b_ref, o_ref):
    # One batch element per grid step.
    # x: (1, spatial, K) bf16, w: (K, Cp) bf16, b: (1, Cp) f32 -> o: (1,1,Cp) f32
    acc = jnp.dot(x_ref[0], w_ref[...], preferred_element_type=jnp.float32)
    y = jnp.maximum(acc + b_ref[...], 0.0)                 # (spatial, Cp) f32
    # AdaptiveAvgPool3d((1,1,1)): sublane-mean reduction (XLU slot), no pool
    # matrix / extra MXU pass.
    o_ref[0] = jnp.mean(y, axis=0, keepdims=True)          # (1, Cp)


# ---------------------------------------------------------------------------
# Pallas wrappers
# ---------------------------------------------------------------------------
def fused_linear_relu(x, w, b, *, single_block_rows=1024, tile_rows=512):
    """relu(x @ w + b) -> bf16.  Output stays lane-padded (Cp columns)."""
    N, K = x.shape
    Kw, Cp = w.shape
    assert K == Kw and Cp % _LANE == 0

    if N <= single_block_rows:
        # Overhead-bound at small N: one whole-array block, no grid wrapper.
        Np = _round_up(N, _SUBLANE)
        xp = jnp.pad(x, ((0, Np - N), (0, 0))) if Np != N else x
        out = pl.pallas_call(
            _matmul_bias_relu_kernel,
            out_shape=jax.ShapeDtypeStruct((Np, Cp), jnp.bfloat16),
            compiler_params=pltpu.CompilerParams(
                vmem_limit_bytes=_VMEM_LIMIT),
        )(xp, w, b)
        return out if Np == N else out[:N]

    # Row-tiled path (large N): keep the tile count even so v7x's two
    # TensorCores stay balanced under dimension_semantics=("parallel",).
    tm = tile_rows
    n_tiles = -(-N // tm)
    if n_tiles % 2:
        n_tiles += 1
    Np = n_tiles * tm
    xp = jnp.pad(x, ((0, Np - N), (0, 0))) if Np != N else x
    # NOTE: weights/bias use a constant index_map, so the pipeline keeps them
    # resident and does not re-issue their DMA between steps; pl.Buffered(1)
    # would only trim the duplicate VMEM buffer, which is ample headroom here.
    out = pl.pallas_call(
        _matmul_bias_relu_kernel,
        out_shape=jax.ShapeDtypeStruct((Np, Cp), jnp.bfloat16),
        grid=(n_tiles,),
        in_specs=[
            pl.BlockSpec((tm, K), lambda i: (i, 0)),    # row tiles stream
            pl.BlockSpec((K, Cp), lambda i: (0, 0)),    # weights resident
            pl.BlockSpec((1, Cp), lambda i: (0, 0)),
        ],
        out_specs=pl.BlockSpec((tm, Cp), lambda i: (i, 0)),
        compiler_params=pltpu.CompilerParams(
            dimension_semantics=("parallel",),
            vmem_limit_bytes=_VMEM_LIMIT),
    )(xp, w, b)
    return out if Np == N else out[:N]


def fused_linear_relu_meanpool(x, w, b):
    """Per batch element: relu(x[b] @ w + b) then mean over the spatial rows.

    x: (B, spatial, K) bf16 -> (B, Cp) f32.  Gridded over the batch so each
    step's VMEM block stays small at larger batch / input_shape and v7x can
    split the batch across its two TensorCores.
    """
    B, S, K = x.shape
    Kw, Cp = w.shape
    assert K == Kw and Cp % _LANE == 0
    out = pl.pallas_call(
        _matmul_bias_relu_meanpool_kernel,
        out_shape=jax.ShapeDtypeStruct((B, 1, Cp), jnp.float32),
        grid=(B,),
        in_specs=[
            pl.BlockSpec((1, S, K), lambda i: (i, 0, 0)),
            pl.BlockSpec((K, Cp), lambda i: (0, 0)),
            pl.BlockSpec((1, Cp), lambda i: (0, 0)),
        ],
        out_specs=pl.BlockSpec((1, 1, Cp), lambda i: (i, 0, 0)),
        compiler_params=pltpu.CompilerParams(
            dimension_semantics=("parallel",),
            vmem_limit_bytes=_VMEM_LIMIT),
    )(x, w, b)
    return out.reshape(B, Cp)


# ---------------------------------------------------------------------------
# im2col for Conv3d(kernel=3, stride=2, padding=1), channel-last layout.
# Pure layout plumbing; stays in XLA but moves bf16, lane-aligned (128-ch)
# data for layers 2/3.
# ---------------------------------------------------------------------------
def _im2col_3d(x, *, ksize=3, stride=2, pad=1, k_pad_to=None):
    """x: (B, D, H, W, C) -> ((B*Do*Ho*Wo, K), (Do, Ho, Wo)).
    K ordering is (kd, kh, kw, cin), matching the stored matmul weights,
    zero-padded on the right to `k_pad_to`."""
    B, D, H, W, C = x.shape
    xp = jnp.pad(x, ((0, 0), (pad, pad), (pad, pad), (pad, pad), (0, 0)))
    Do = (D + 2 * pad - ksize) // stride + 1
    Ho = (H + 2 * pad - ksize) // stride + 1
    Wo = (W + 2 * pad - ksize) // stride + 1
    cols = []
    for kd in range(ksize):
        for kh in range(ksize):
            for kw in range(ksize):
                cols.append(
                    xp[:, kd:kd + stride * (Do - 1) + 1:stride,
                          kh:kh + stride * (Ho - 1) + 1:stride,
                          kw:kw + stride * (Wo - 1) + 1:stride, :])
    patches = jnp.concatenate(cols, axis=-1)           # (B, Do, Ho, Wo, 27*C)
    K = ksize ** 3 * C
    if k_pad_to is not None and k_pad_to > K:
        patches = jnp.pad(
            patches, ((0, 0), (0, 0), (0, 0), (0, 0), (0, k_pad_to - K)))
        K = k_pad_to
    return patches.reshape(B * Do * Ho * Wo, K), (Do, Ho, Wo)


# ---------------------------------------------------------------------------
# The encoder
# ---------------------------------------------------------------------------
class ScreenDescriptionsEncoderPallas:
    """Pallas/JAX port of ScreenDescriptionsEncoder.forward."""

    def __init__(self, h_dim, input_shape, vocab_size, embedding_dim, key):
        self.h_dim = h_dim
        self.input_shape = input_shape
        self.vocab_size = vocab_size
        self.embedding_dim = embedding_dim

        keys = jax.random.split(key, 7)
        # nn.Embedding default init: N(0, 1).
        self.embedding = jax.random.normal(
            keys[0], (vocab_size, embedding_dim), jnp.float32)

        # Conv3d parameters.  Kernel-side copies are pre-padded once at init:
        #   * contraction rows (kd, kh, kw, cin) zero-padded to a multiple of
        #     128 (layer 1: 216 -> 256),
        #   * output channels zero-padded to 128 lanes (bias too), and
        #   * zero rows inserted for the lane-padded input channels coming
        #     from the previous layer, so padded activations contract exactly.
        chans = [embedding_dim, 64, 128, h_dim]
        self.kernel_layers = []   # (w_mat (Kp, Cp) bf16, b (1, Cp) f32, Kp, Cp)
        self.ref_layers = []      # (w_conv (Co, Ci, 3, 3, 3) bf16, b (Co,) f32)
        prev_cpad = embedding_dim            # layer-1 input is not lane-padded
        for i, (ci, co) in enumerate(zip(chans[:-1], chans[1:])):
            kw_, kb_ = keys[1 + 2 * i], keys[2 + 2 * i]
            fan_in = ci * 27
            bound = 1.0 / np.sqrt(fan_in)
            w = jax.random.uniform(kw_, (3, 3, 3, ci, co), jnp.float32,
                                   -bound, bound).astype(jnp.bfloat16)
            b = jax.random.uniform(kb_, (co,), jnp.float32, -bound, bound)

            ci_pad = prev_cpad
            co_pad = _round_up(co, _LANE)
            w_full = jnp.zeros((3, 3, 3, ci_pad, co_pad), jnp.bfloat16)
            w_full = w_full.at[..., :ci, :co].set(w)
            w_mat = w_full.reshape(27 * ci_pad, co_pad)
            k_pad = _round_up(27 * ci_pad, _LANE)
            if k_pad != 27 * ci_pad:
                w_mat = jnp.pad(w_mat, ((0, k_pad - 27 * ci_pad), (0, 0)))
            b_pad = jnp.zeros((1, co_pad), jnp.float32).at[0, :co].set(b)

            self.kernel_layers.append((w_mat, b_pad, k_pad, co_pad))
            self.ref_layers.append((jnp.transpose(w, (4, 3, 0, 1, 2)), b))
            prev_cpad = co_pad

    def __call__(self, x):
        B = x.shape[0]
        # TODO(synk): nn.Embedding token-id gather stays in XLA; Pallas TPU has
        # no clean general gather primitive for embedding lookups.
        h = jnp.take(self.embedding, x.astype(jnp.int32), axis=0)  # (B,D,H,W,E)
        h = h.astype(jnp.bfloat16)       # bf16 BEFORE the im2col patch build

        n_layers = len(self.kernel_layers)
        for li, (w, b, k_pad, co_pad) in enumerate(self.kernel_layers):
            patches, out_sp = _im2col_3d(h, k_pad_to=k_pad)
            if li == n_layers - 1:
                # Fused: conv + bias + ReLU + AdaptiveAvgPool3d((1,1,1)) + view
                spatial = int(np.prod(out_sp))
                pooled = fused_linear_relu_meanpool(
                    patches.reshape(B, spatial, k_pad), w, b)      # (B, Cp)
                return pooled[:, :self.h_dim]
            y = fused_linear_relu(patches, w, b)                   # (N, Cp) bf16
            # Activations stay lane-padded between layers (no [:, :C] slice).
            h = y.reshape(B, *out_sp, co_pad)


# ---------------------------------------------------------------------------
# Independent plain-JAX reference (uses XLA's 3D convolution, not im2col).
# ---------------------------------------------------------------------------
def reference_forward(x, enc):
    h = jnp.take(enc.embedding, x.astype(jnp.int32), axis=0)      # (B,D,H,W,E)
    h = jnp.transpose(h, (0, 4, 1, 2, 3))                         # (B,E,D,H,W)
    for (w_conv, b) in enc.ref_layers:
        h = jax.lax.conv_general_dilated(
            h.astype(jnp.bfloat16), w_conv,
            window_strides=(2, 2, 2), padding=[(1, 1)] * 3,
            dimension_numbers=("NCDHW", "OIDHW", "NCDHW"),
            preferred_element_type=jnp.float32)
        h = jnp.maximum(h + b[None, :, None, None, None], 0.0)
    return jnp.mean(h, axis=(2, 3, 4))            # AdaptiveAvgPool3d + flatten


if __name__ == "__main__":
    B = 2
    input_shape = (16, 16, 16)      # conv spatial: 16 -> 8 -> 4 -> 2 -> pool 1
    vocab_size = 64
    embedding_dim = 8
    h_dim = 32

    root = jax.random.PRNGKey(0)
    k_params, k_x = jax.random.split(root)
    enc = ScreenDescriptionsEncoderPallas(h_dim, input_shape, vocab_size,
                                          embedding_dim, k_params)

    x = jax.random.randint(k_x, (B, *input_shape), 0, vocab_size,
                           dtype=jnp.int32)

    forward = jax.jit(enc.__call__)
    out = jax.block_until_ready(forward(x))
    assert out.shape == (B, h_dim), out.shape

    ref = jax.block_until_ready(reference_forward(x, enc))
    np.testing.assert_allclose(np.asarray(out), np.asarray(ref),
                               rtol=2e-2, atol=2e-2)

    print("KERNEL_OK")
</pallas_src>

<mosaic_0001>
module attributes {stable_mosaic.version = 11 : i64} {
  func.func @_matmul_bias_relu_kernel(%arg0: memref<1024x256xbf16, #tpu.memory_space<vmem>>, %arg1: memref<256x128xbf16, #tpu.memory_space<vmem>>, %arg2: memref<1x128xf32, #tpu.memory_space<vmem>>, %arg3: memref<1024x128xbf16, #tpu.memory_space<vmem>>) attributes {dimension_semantics = [], scalar_prefetch = 0 : i64, scratch_operands = 0 : i64, tpu.core_type = #tpu.core_type<tc>} {
    %c0 = arith.constant 0 : index
    %c0_0 = arith.constant 0 : index
    %0 = vector.load %arg0[%c0, %c0_0] : memref<1024x256xbf16, #tpu.memory_space<vmem>>, vector<1024x256xbf16>
    %c0_1 = arith.constant 0 : index
    %c0_2 = arith.constant 0 : index
    %1 = vector.load %arg1[%c0_1, %c0_2] : memref<256x128xbf16, #tpu.memory_space<vmem>>, vector<256x128xbf16>
    %cst = arith.constant dense<0.000000e+00> : vector<1024x128xf32>
    %2 = tpu.matmul %0, %1, %cst {dimension_numbers = #tpu.dot_dimension_numbers<[1], [0], [0], [1], [0, 0, 1, 1], [], []>} : vector<1024x256xbf16>, vector<256x128xbf16>, vector<1024x128xf32> -> vector<1024x128xf32>
    %c0_3 = arith.constant 0 : index
    %c0_4 = arith.constant 0 : index
    %3 = vector.load %arg2[%c0_3, %c0_4] : memref<1x128xf32, #tpu.memory_space<vmem>>, vector<1x128xf32>
    %4 = vector.broadcast %3 : vector<1x128xf32> to vector<1024x128xf32>
    %5 = arith.addf %2, %4 : vector<1024x128xf32>
    %cst_5 = arith.constant 0.000000e+00 : f32
    %6 = vector.broadcast %cst_5 : f32 to vector<1024x128xf32>
    %7 = arith.maximumf %5, %6 : vector<1024x128xf32>
    %8 = arith.truncf %7 : vector<1024x128xf32> to vector<1024x128xbf16>
    %c0_6 = arith.constant 0 : index
    %c0_7 = arith.constant 0 : index
    %9 = vector.load %arg3[%c0_6, %c0_7] : memref<1024x128xbf16, #tpu.memory_space<vmem>>, vector<1024x128xbf16>
    tpu.vector_store %arg3[%c0_6, %c0_7], %8 {strides = array<i32>} : memref<1024x128xbf16, #tpu.memory_space<vmem>>, vector<1024x128xbf16>,
    return
  }
}

module attributes {stable_mosaic.version = 11 : i64} {
  func.func @_matmul_bias_relu_kernel(%arg0: memref<128x3456xbf16, #tpu.memory_space<vmem>>, %arg1: memref<3456x128xbf16, #tpu.memory_space<vmem>>, %arg2: memref<1x128xf32, #tpu.memory_space<vmem>>, %arg3: memref<128x128xbf16, #tpu.memory_space<vmem>>) attributes {dimension_semantics = [], scalar_prefetch = 0 : i64, scratch_operands = 0 : i64, tpu.core_type = #tpu.core_type<tc>} {
    %c0 = arith.constant 0 : index
    %c0_0 = arith.constant 0 : index
    %0 = vector.load %arg0[%c0, %c0_0] : memref<128x3456xbf16, #tpu.memory_space<vmem>>, vector<128x3456xbf16>
    %c0_1 = arith.constant 0 : index
    %c0_2 = arith.constant 0 : index
    %1 = vector.load %arg1[%c0_1, %c0_2] : memref<3456x128xbf16, #tpu.memory_space<vmem>>, vector<3456x128xbf16>
    %cst = arith.constant dense<0.000000e+00> : vector<128x128xf32>
    %2 = tpu.matmul %0, %1, %cst {dimension_numbers = #tpu.dot_dimension_numbers<[1], [0], [0], [1], [0, 0, 1, 1], [], []>} : vector<128x3456xbf16>, vector<3456x128xbf16>, vector<128x128xf32> -> vector<128x128xf32>
    %c0_3 = arith.constant 0 : index
    %c0_4 = arith.constant 0 : index
    %3 = vector.load %arg2[%c0_3, %c0_4] : memref<1x128xf32, #tpu.memory_space<vmem>>, vector<1x128xf32>
    %4 = vector.broadcast %3 : vector<1x128xf32> to vector<128x128xf32>
    %5 = arith.addf %2, %4 : vector<128x128xf32>
    %cst_5 = arith.constant 0.000000e+00 : f32
    %6 = vector.broadcast %cst_5 : f32 to vector<128x128xf32>
    %7 = arith.maximumf %5, %6 : vector<128x128xf32>
    %8 = arith.truncf %7 : vector<128x128xf32> to vector<128x128xbf16>
    %c0_6 = arith.constant 0 : index
    %c0_7 = arith.constant 0 : index
    %9 = vector.load %arg3[%c0_6, %c0_7] : memref<128x128xbf16, #tpu.memory_space<vmem>>, vector<128x128xbf16>
    tpu.vector_store %arg3[%c0_6, %c0_7], %8 {strides = array<i32>} : memref<128x128xbf16, #tpu.memory_space<vmem>>, vector<128x128xbf16>,
    return
  }
}

module attributes {stable_mosaic.version = 11 : i64} {
  func.func @_matmul_bias_relu_meanpool_kernel(%arg0: i32, %arg1: memref<1x8x3456xbf16, #tpu.memory_space<vmem>>, %arg2: memref<3456x128xbf16, #tpu.memory_space<vmem>>, %arg3: memref<1x128xf32, #tpu.memory_space<vmem>>, %arg4: memref<1x1x128xf32, #tpu.memory_space<vmem>>) attributes {dimension_semantics = [#tpu.dimension_semantics<parallel>], iteration_bounds = array<i64: 2>, scalar_prefetch = 0 : i64, scratch_operands = 0 : i64, tpu.core_type = #tpu.core_type<tc>, window_params = [{transform_indices = @transform_0, window_bounds = array<i64: 1, 8, 3456>}, {pipeline_mode = #tpu.pipeline_mode<synchronous>, transform_indices = @transform_1, window_bounds = array<i64: 3456, 128>}, {pipeline_mode = #tpu.pipeline_mode<synchronous>, transform_indices = @transform_2, window_bounds = array<i64: 1, 128>}, {transform_indices = @transform_3, window_bounds = array<i64: 1, 1, 128>}]} {
    %c0 = arith.constant 0 : index
    %c0_0 = arith.constant 0 : index
    %c0_1 = arith.constant 0 : index
    %0 = vector.load %arg1[%c0, %c0_0, %c0_1] : memref<1x8x3456xbf16, #tpu.memory_space<vmem>>, vector<1x8x3456xbf16>
    %1 = vector.shape_cast %0 : vector<1x8x3456xbf16> to vector<8x3456xbf16>
    %c0_2 = arith.constant 0 : index
    %c0_3 = arith.constant 0 : index
    %2 = vector.load %arg2[%c0_2, %c0_3] : memref<3456x128xbf16, #tpu.memory_space<vmem>>, vector<3456x128xbf16>
    %cst = arith.constant dense<0.000000e+00> : vector<8x128xf32>
    %3 = tpu.matmul %1, %2, %cst {dimension_numbers = #tpu.dot_dimension_numbers<[1], [0], [0], [1], [0, 0, 1, 1], [], []>} : vector<8x3456xbf16>, vector<3456x128xbf16>, vector<8x128xf32> -> vector<8x128xf32>
    %c0_4 = arith.constant 0 : index
    %c0_5 = arith.constant 0 : index
    %4 = vector.load %arg3[%c0_4, %c0_5] : memref<1x128xf32, #tpu.memory_space<vmem>>, vector<1x128xf32>
    %5 = vector.broadcast %4 : vector<1x128xf32> to vector<8x128xf32>
    %6 = arith.addf %3, %5 : vector<8x128xf32>
    %cst_6 = arith.constant 0.000000e+00 : f32
    %7 = vector.broadcast %cst_6 : f32 to vector<8x128xf32>
    %8 = arith.maximumf %6, %7 : vector<8x128xf32>
    %cst_7 = arith.constant dense<0.000000e+00> : vector<128xf32>
    %9 = vector.multi_reduction <add>, %8, %cst_7 [0] : vector<8x128xf32> to vector<128xf32>
    %10 = vector.shape_cast %9 : vector<128xf32> to vector<1x128xf32>
    %cst_8 = arith.constant 8.000000e+00 : f32
    %11 = vector.broadcast %cst_8 : f32 to vector<1x128xf32>
    %12 = arith.divf %10, %11 : vector<1x128xf32>
    %c0_9 = arith.constant 0 : index
    %c0_10 = arith.constant 0 : index
    %c0_11 = arith.constant 0 : index
    %13 = vector.load %arg4[%c0_9, %c0_10, %c0_11] : memref<1x1x128xf32, #tpu.memory_space<vmem>>, vector<1x1x128xf32>
    %14 = vector.shape_cast %13 : vector<1x1x128xf32> to vector<1x128xf32>
    %15 = vector.shape_cast %12 : vector<1x128xf32> to vector<1x1x128xf32>
    tpu.vector_store %arg4[%c0_9, %c0_10, %c0_11], %15 {strides = array<i32>} : memref<1x1x128xf32, #tpu.memory_space<vmem>>, vector<1x1x128xf32>,
    return
  }
  func.func @transform_0(%arg0: i32) -> (i32, i32, i32) {
    %c0_i32 = arith.constant 0 : i32
    %c0_i32_0 = arith.constant 0 : i32
    %c0_i32_1 = arith.constant 0 : i32
    return %arg0, %c0_i32, %c0_i32_0 : i32, i32, i32
  }
  func.func @transform_1(%arg0: i32) -> (i32, i32) {
    %c0_i32 = arith.constant 0 : i32
    %c0_i32_0 = arith.constant 0 : i32
    %c0_i32_1 = arith.constant 0 : i32
    return %c0_i32, %c0_i32_0 : i32, i32
  }
  func.func @transform_2(%arg0: i32) -> (i32, i32) {
    %c0_i32 = arith.constant 0 : i32
    %c0_i32_0 = arith.constant 0 : i32
    %c0_i32_1 = arith.constant 0 : i32
    return %c0_i32, %c0_i32_0 : i32, i32
  }
  func.func @transform_3(%arg0: i32) -> (i32, i32, i32) {
    %c0_i32 = arith.constant 0 : i32
    %c0_i32_0 = arith.constant 0 : i32
    %c0_i32_1 = arith.constant 0 : i32
    return %arg0, %c0_i32, %c0_i32_0 : i32, i32, i32
  }
}

</mosaic_0001>

<bundles_post_ra>
// kernel: a_call__.3
= control target key start
LH: loop header
LB: loop body
LE: loop exit
PB: predicated region body
PF: predicated region fallthrough
CT: control target
= control target key end

     0   :  { %v3261_v0 = vmov 0   ;;  %s4076_s1 = inlined_call_operand.vmem [shape: bf16[256,128], index: 1, kind: input, shape index: {}]   ;;  %s4077_s0 = inlined_call_operand.vmem [shape: bf16[1024,256], index: 0, kind: input, shape index: {}]   ;;  %s4078_s2 = inlined_call_operand.vmem [shape: f32[1,128], index: 2, kind: input, shape index: {}]   ;;  %s4079_s3 = inlined_call_operand.vmem [shape: bf16[1024,128], index: 3, kind: output, shape index: {}]  }
   0x1   :  { %918 = vmatprep.subr.bf16.mxu0 %v3261_v0  ;;  %3019 = vmatprep.subr.bf16.mxu1 %v3261_v0  ;;  %v3052_v1 = vld [vmem:[%s4076_s1] sm:$0xff]   ;;  %v3053_v2 = vld [vmem:[%s4076_s1 + $0x8] sm:$0xff]   ;;  %v3054_v3 = vld [vmem:[%s4076_s1 + $0x10] sm:$0xff]  }
   0x2   :  { %919 = vmatpush1.bf16.msra.mxu0 %v3052_v1  ;;  %3035 = vmatpush1.bf16.msra.mxu1 %v3052_v1  ;;  %v3055_v4 = vld [vmem:[%s4076_s1 + $0x18] sm:$0xff]   ;;  %v3056_v5 = vld [vmem:[%s4076_s1 + $0x20] sm:$0xff]   ;;  %v3057_v7 = vld [vmem:[%s4076_s1 + $0x28] sm:$0xff]  }
   0x3   :  { %920 = vmatprep.subr.bf16.mxu0 %v3261_v0  ;;  %3020 = vmatprep.subr.bf16.mxu1 %v3261_v0  ;;  %v3070_v6 = vld [vmem:[%s4077_s0 + $0x4] ss:$8 sps:$4 sm:$0xff]   ;;  %v3058_v9 = vld [vmem:[%s4076_s1 + $0x30] sm:$0xff]   ;;  %v3059_v10 = vld [vmem:[%s4076_s1 + $0x38] sm:$0xff]  }
   0x4   :  { %v3073_v8 = vld [vmem:[%s4077_s0 + $0x204] ss:$8 sps:$4 sm:$0xff]   ;;  %950 = vmatprep.mubr.bf16.mxu0 %v3070_v6  ;;  %v3062_v13 = vld [vmem:[%s4076_s1 + $0x50] sm:$0xff]   ;;  %v3063_v14 = vld [vmem:[%s4076_s1 + $0x58] sm:$0xff]  }
   0x5   :  { %1206 = vmatprep.mubr.bf16.mxu1 %v3073_v8  ;;  %v3060_v11 = vld [vmem:[%s4076_s1 + $0x40] sm:$0xff]   ;;  %v3061_v12 = vld [vmem:[%s4076_s1 + $0x48] sm:$0xff]   ;;  %v3066_v17 = vld [vmem:[%s4076_s1 + $0x70] sm:$0xff]  }
   0x6   :  { %921 = vmatpush1.bf16.msra.mxu0 %v3053_v2  ;;  %3036 = vmatpush1.bf16.msra.mxu1 %v3053_v2  ;;  %v3064_v15 = vld [vmem:[%s4076_s1 + $0x60] sm:$0xff]   ;;  %v3065_v16 = vld [vmem:[%s4076_s1 + $0x68] sm:$0xff]   ;;  %v3067_v18 = vld [vmem:[%s4076_s1 + $0x78] sm:$0xff]  }
   0x7   :  { %922 = vmatprep.subr.bf16.mxu0 %v3261_v0  ;;  %3021 = vmatprep.subr.bf16.mxu1 %v3261_v0  ;;  %v3068_v19 = vld [vmem:[%s4077_s0] ss:$8 sps:$4 sm:$0xff]   ;;  %v3074_v21 = vld [vmem:[%s4077_s0 + $0x14] ss:$8 sps:$4 sm:$0xff]   ;;  %v3078_v23 = vld [vmem:[%s4077_s0 + $0x10] ss:$8 sps:$4 sm:$0xff]  }
   0x8   :  { %v3071_v20 = vld [vmem:[%s4077_s0 + $0x200] ss:$8 sps:$4 sm:$0xff]   ;;  %v3076_v22 = vld [vmem:[%s4077_s0 + $0x214] ss:$8 sps:$4 sm:$0xff]   ;;  %v3079_v24 = vld [vmem:[%s4077_s0 + $0x210] ss:$8 sps:$4 sm:$0xff]  }
   0x9   :  { %v3080_v25 = vld [vmem:[%s4077_s0 + $0x24] ss:$8 sps:$4 sm:$0xff]   ;;  %v3084_v27 = vld [vmem:[%s4077_s0 + $0x20] ss:$8 sps:$4 sm:$0xff]   ;;  %v3086_v29 = vld [vmem:[%s4077_s0 + $0x34] ss:$8 sps:$4 sm:$0xff]  }
   0xa   :  { %923 = vmatpush1.bf16.msra.mxu0 %v3054_v3  ;;  %3037 = vmatpush1.bf16.msra.mxu1 %v3054_v3  ;;  %v3082_v26 = vld [vmem:[%s4077_s0 + $0x224] ss:$8 sps:$4 sm:$0xff]   ;;  %v3085_v28 = vld [vmem:[%s4077_s0 + $0x220] ss:$8 sps:$4 sm:$0xff]   ;;  %v3088_v30 = vld [vmem:[%s4077_s0 + $0x234] ss:$8 sps:$4 sm:$0xff]  }
   0xb   :  { %924 = vmatprep.subr.bf16.mxu0 %v3261_v0  ;;  %3022 = vmatprep.subr.bf16.mxu1 %v3261_v0  ;;  %v3090_v31 = vld [vmem:[%s4077_s0 + $0x30] ss:$8 sps:$4 sm:$0xff]   ;;  %v3092_v33 = vld [vmem:[%s4077_s0 + $0x44] ss:$8 sps:$4 sm:$0xff]   ;;  %v3096_v35 = vld [vmem:[%s4077_s0 + $0x40] ss:$8 sps:$4 sm:$0xff]  }
   0xc   :  { %v3091_v32 = vld [vmem:[%s4077_s0 + $0x230] ss:$8 sps:$4 sm:$0xff]   ;;  %v3094_v34 = vld [vmem:[%s4077_s0 + $0x244] ss:$8 sps:$4 sm:$0xff]   ;;  %v3097_v36 = vld [vmem:[%s4077_s0 + $0x240] ss:$8 sps:$4 sm:$0xff]  }
   0xd   :  { %v3098_v37 = vld [vmem:[%s4077_s0 + $0x54] ss:$8 sps:$4 sm:$0xff]   ;;  %v3102_v39 = vld [vmem:[%s4077_s0 + $0x50] ss:$8 sps:$4 sm:$0xff]   ;;  %v3104_v41 = vld [vmem:[%s4077_s0 + $0x64] ss:$8 sps:$4 sm:$0xff]  }
   0xe   :  { %925 = vmatpush1.bf16.msra.mxu0 %v3055_v4  ;;  %3038 = vmatpush1.bf16.msra.mxu1 %v3055_v4  ;;  %v3100_v38 = vld [vmem:[%s4077_s0 + $0x254] ss:$8 sps:$4 sm:$0xff]   ;;  %v3103_v40 = vld [vmem:[%s4077_s0 + $0x250] ss:$8 sps:$4 sm:$0xff]   ;;  %v3106_v42 = vld [vmem:[%s4077_s0 + $0x264] ss:$8 sps:$4 sm:$0xff]  }
   0xf   :  { %926 = vmatprep.subr.bf16.mxu0 %v3261_v0  ;;  %3023 = vmatprep.subr.bf16.mxu1 %v3261_v0  ;;  %v3108_v43 = vld [vmem:[%s4077_s0 + $0x60] ss:$8 sps:$4 sm:$0xff]   ;;  %v3110_v45 = vld [vmem:[%s4077_s0 + $0x74] ss:$8 sps:$4 sm:$0xff]   ;;  %v3114_v47 = vld [vmem:[%s4077_s0 + $0x70] ss:$8 sps:$4 sm:$0xff]  }
  0x10   :  { %v3109_v44 = vld [vmem:[%s4077_s0 + $0x260] ss:$8 sps:$4 sm:$0xff]   ;;  %v3112_v46 = vld [vmem:[%s4077_s0 + $0x274] ss:$8 sps:$4 sm:$0xff]   ;;  %v3115_v48 = vld [vmem:[%s4077_s0 + $0x270] ss:$8 sps:$4 sm:$0xff]  }
  0x11   :  { %v3116_v49 = vld [vmem:[%s4077_s0 + $0x84] ss:$8 sps:$4 sm:$0xff]   ;;  %v3120_v51 = vld [vmem:[%s4077_s0 + $0x80] ss:$8 sps:$4 sm:$0xff]   ;;  %v3122_v53 = vld [vmem:[%s4077_s0 + $0x94] ss:$8 sps:$4 sm:$0xff]  }
  0x12   :  { %927 = vmatpush1.bf16.msra.mxu0 %v3056_v5  ;;  %3039 = vmatpush1.bf16.msra.mxu1 %v3056_v5  ;;  %v3118_v50 = vld [vmem:[%s4077_s0 + $0x284] ss:$8 sps:$4 sm:$0xff]   ;;  %v3121_v52 = vld [vmem:[%s4077_s0 + $0x280] ss:$8 sps:$4 sm:$0xff]   ;;  %v3124_v54 = vld [vmem:[%s4077_s0 + $0x294] ss:$8 sps:$4 sm:$0xff]  }
  0x13   :  { %928 = vmatprep.subr.bf16.mxu0 %v3261_v0  ;;  %3024 = vmatprep.subr.bf16.mxu1 %v3261_v0  ;;  %v3126_v55 = vld [vmem:[%s4077_s0 + $0x90] ss:$8 sps:$4 sm:$0xff]   ;;  %v3128_v57 = vld [vmem:[%s4077_s0 + $0xa4] ss:$8 sps:$4 sm:$0xff]   ;;  %v3132_v59 = vld [vmem:[%s4077_s0 + $0xa0] ss:$8 sps:$4 sm:$0xff]  }
  0x14   :  { %v3127_v56 = vld [vmem:[%s4077_s0 + $0x290] ss:$8 sps:$4 sm:$0xff]   ;;  %v3130_v58 = vld [vmem:[%s4077_s0 + $0x2a4] ss:$8 sps:$4 sm:$0xff]   ;;  %v3133_v60 = vld [vmem:[%s4077_s0 + $0x2a0] ss:$8 sps:$4 sm:$0xff]  }
  0x15   :  { %v3134_v61 = vld [vmem:[%s4077_s0 + $0xb4] ss:$8 sps:$4 sm:$0xff]   ;;  %v3138_v63 = vld [vmem:[%s4077_s0 + $0xb0] ss:$8 sps:$4 sm:$0xff]   ;;  %v3140_v1 = vld [vmem:[%s4077_s0 + $0xc4] ss:$8 sps:$4 sm:$0xff]  }
  0x16   :  { %929 = vmatpush1.bf16.msra.mxu0 %v3057_v7  ;;  %3040 = vmatpush1.bf16.msra.mxu1 %v3057_v7  ;;  %v3136_v62 = vld [vmem:[%s4077_s0 + $0x2b4] ss:$8 sps:$4 sm:$0xff]   ;;  %v3142_v2 = vld [vmem:[%s4077_s0 + $0x2c4] ss:$8 sps:$4 sm:$0xff]   ;;  %v3144_v3 = vld [vmem:[%s4077_s0 + $0xc0] ss:$8 sps:$4 sm:$0xff]  }
  0x17   :  { %930 = vmatprep.subr.bf16.mxu0 %v3261_v0  ;;  %3025 = vmatprep.subr.bf16.mxu1 %v3261_v0  ;;  %v3145_v4 = vld [vmem:[%s4077_s0 + $0x2c0] ss:$8 sps:$4 sm:$0xff]   ;;  %v3146_v5 = vld [vmem:[%s4077_s0 + $0xd4] ss:$8 sps:$4 sm:$0xff]   ;;  %v3150_v7 = vld [vmem:[%s4077_s0 + $0xd0] ss:$8 sps:$4 sm:$0xff]  }
  0x18   :  { %v3148_v6 = vld [vmem:[%s4077_s0 + $0x2d4] ss:$8 sps:$4 sm:$0xff]   ;;  %v3151_v8 = vld [vmem:[%s4077_s0 + $0x2d0] ss:$8 sps:$4 sm:$0xff]  }
  0x1a   :  { %931 = vmatpush1.bf16.msra.mxu0 %v3058_v9  ;;  %3041 = vmatpush1.bf16.msra.mxu1 %v3058_v9  ;;  %v3152_v9 = vld [vmem:[%s4077_s0 + $0xe4] ss:$8 sps:$4 sm:$0xff]  }
  0x1b   :  { %932 = vmatprep.subr.bf16.mxu0 %v3261_v0  ;;  %3026 = vmatprep.subr.bf16.mxu1 %v3261_v0 }
  0x1e   :  { %933 = vmatpush1.bf16.msra.mxu0 %v3059_v10  ;;  %3042 = vmatpush1.bf16.msra.mxu1 %v3059_v10  ;;  %v3154_v10 = vld [vmem:[%s4077_s0 + $0x2e4] ss:$8 sps:$4 sm:$0xff]  }
  0x1f   :  { %934 = vmatprep.subr.bf16.mxu0 %v3261_v0  ;;  %3027 = vmatprep.subr.bf16.mxu1 %v3261_v0 }
  0x22   :  { %935 = vmatpush1.bf16.msra.mxu0 %v3060_v11  ;;  %3043 = vmatpush1.bf16.msra.mxu1 %v3060_v11  ;;  %v3156_v11 = vld [vmem:[%s4077_s0 + $0xe0] ss:$8 sps:$4 sm:$0xff]  }
  0x23   :  { %936 = vmatprep.subr.bf16.mxu0 %v3261_v0  ;;  %3028 = vmatprep.subr.bf16.mxu1 %v3261_v0 }
  0x26   :  { %937 = vmatpush1.bf16.msra.mxu0 %v3061_v12  ;;  %3044 = vmatpush1.bf16.msra.mxu1 %v3061_v12  ;;  %v3157_v12 = vld [vmem:[%s4077_s0 + $0x2e0] ss:$8 sps:$4 sm:$0xff]  }
  0x27   :  { %938 = vmatprep.subr.bf16.mxu0 %v3261_v0  ;;  %3029 = vmatprep.subr.bf16.mxu1 %v3261_v0 }
  0x2a   :  { %939 = vmatpush1.bf16.msra.mxu0 %v3062_v13  ;;  %3045 = vmatpush1.bf16.msra.mxu1 %v3062_v13  ;;  %v3158_v13 = vld [vmem:[%s4077_s0 + $0xf4] ss:$8 sps:$4 sm:$0xff]  }
  0x2b   :  { %940 = vmatprep.subr.bf16.mxu0 %v3261_v0  ;;  %3030 = vmatprep.subr.bf16.mxu1 %v3261_v0 }
  0x2e   :  { %941 = vmatpush1.bf16.msra.mxu0 %v3063_v14  ;;  %3046 = vmatpush1.bf16.msra.mxu1 %v3063_v14  ;;  %v3160_v14 = vld [vmem:[%s4077_s0 + $0x2f4] ss:$8 sps:$4 sm:$0xff]  }
  0x2f   :  { %942 = vmatprep.subr.bf16.mxu0 %v3261_v0  ;;  %3031 = vmatprep.subr.bf16.mxu1 %v3261_v0 }
  0x32   :  { %943 = vmatpush1.bf16.msra.mxu0 %v3064_v15  ;;  %3047 = vmatpush1.bf16.msra.mxu1 %v3064_v15  ;;  %v3162_v15 = vld [vmem:[%s4077_s0 + $0xf0] ss:$8 sps:$4 sm:$0xff]  }
  0x33   :  { %944 = vmatprep.subr.bf16.mxu0 %v3261_v0  ;;  %3032 = vmatprep.subr.bf16.mxu1 %v3261_v0 }
  0x36   :  { %945 = vmatpush1.bf16.msra.mxu0 %v3065_v16  ;;  %3048 = vmatpush1.bf16.msra.mxu1 %v3065_v16  ;;  %v3163_v16 = vld [vmem:[%s4077_s0 + $0x2f0] ss:$8 sps:$4 sm:$0xff]  }
  0x37   :  { %946 = vmatprep.subr.bf16.mxu0 %v3261_v0  ;;  %3033 = vmatprep.subr.bf16.mxu1 %v3261_v0 }
  0x3a   :  { %947 = vmatpush1.bf16.msra.mxu0 %v3066_v17  ;;  %3049 = vmatpush1.bf16.msra.mxu1 %v3066_v17  ;;  %v3164_v17 = vld [vmem:[%s4077_s0 + $0x104] ss:$8 sps:$4 sm:$0xff]  }
  0x3b   :  { %948 = vmatprep.subr.bf16.mxu0 %v3261_v0  ;;  %3034 = vmatprep.subr.bf16.mxu1 %v3261_v0  ;;  %v3139_v0 = vld [vmem:[%s4077_s0 + $0x2b0] ss:$8 sps:$4 sm:$0xff]  }
  0x3e   :  { %949 = vmatpush1.bf16.msra.mxu0 %v3067_v18  ;;  %3050 = vmatpush1.bf16.msra.mxu1 %v3067_v18  ;;  %v3166_v18 = vld [vmem:[%s4077_s0 + $0x304] ss:$8 sps:$4 sm:$0xff]  }
  0x41   :  { %951 = vmatmul.mubr.bf16.vlgmr.msra.gmra.mrb[0].mxu0 %v3068_v19  ;;  %1207 = vmatmul.mubr.bf16.vlgmr.msra.gmra.mrb[0].mxu1 %v3071_v20  ;;  %v3168_v19 = vld [vmem:[%s4077_s0 + $0x100] ss:$8 sps:$4 sm:$0xff]  }
  0x42   :  { %958 = vmatprep.mubr.bf16.mxu0 %v3074_v21  ;;  %1214 = vmatprep.mubr.bf16.mxu1 %v3076_v22  ;;  %v3169_v20 = vld [vmem:[%s4077_s0 + $0x300] ss:$8 sps:$4 sm:$0xff]   ;;  %v3170_v21 = vld [vmem:[%s4077_s0 + $0x114] ss:$8 sps:$4 sm:$0xff]  }
  0x43   :  { %v3172_v22 = vld [vmem:[%s4077_s0 + $0x314] ss:$8 sps:$4 sm:$0xff]  }
  0x49   :  { %959 = vmatmul.mubr.bf16.gmra.mrb[4].mxu0 %v3078_v23  ;;  %1215 = vmatmul.mubr.bf16.gmra.mrb[4].mxu1 %v3079_v24  ;;  %v3174_v23 = vld [vmem:[%s4077_s0 + $0x110] ss:$8 sps:$4 sm:$0xff]  }
  0x4a   :  { %966 = vmatprep.mubr.bf16.mxu0 %v3080_v25  ;;  %1222 = vmatprep.mubr.bf16.mxu1 %v3082_v26  ;;  %v3175_v24 = vld [vmem:[%s4077_s0 + $0x310] ss:$8 sps:$4 sm:$0xff]   ;;  %v3176_v25 = vld [vmem:[%s4077_s0 + $0x124] ss:$8 sps:$4 sm:$0xff]  }
  0x4b   :  { %v3178_v26 = vld [vmem:[%s4077_s0 + $0x324] ss:$8 sps:$4 sm:$0xff]  }
  0x51   :  { %967 = vmatmul.mubr.bf16.gmra.mrb[8].mxu0 %v3084_v27  ;;  %1223 = vmatmul.mubr.bf16.gmra.mrb[8].mxu1 %v3085_v28  ;;  %v3180_v27 = vld [vmem:[%s4077_s0 + $0x120] ss:$8 sps:$4 sm:$0xff]  }
  0x52   :  { %974 = vmatprep.mubr.bf16.mxu0 %v3086_v29  ;;  %1230 = vmatprep.mubr.bf16.mxu1 %v3088_v30  ;;  %v3181_v28 = vld [vmem:[%s4077_s0 + $0x320] ss:$8 sps:$4 sm:$0xff]   ;;  %v3182_v29 = vld [vmem:[%s4077_s0 + $0x134] ss:$8 sps:$4 sm:$0xff]  }
  0x53   :  { %v3184_v30 = vld [vmem:[%s4077_s0 + $0x334] ss:$8 sps:$4 sm:$0xff]  }
  0x59   :  { %975 = vmatmul.mubr.bf16.gmra.mrb[12].mxu0 %v3090_v31  ;;  %1231 = vmatmul.mubr.bf16.gmra.mrb[12].mxu1 %v3091_v32  ;;  %v3186_v31 = vld [vmem:[%s4077_s0 + $0x130] ss:$8 sps:$4 sm:$0xff]  }
  0x5a   :  { %982 = vmatprep.mubr.bf16.mxu0 %v3092_v33  ;;  %1238 = vmatprep.mubr.bf16.mxu1 %v3094_v34  ;;  %v3187_v32 = vld [vmem:[%s4077_s0 + $0x330] ss:$8 sps:$4 sm:$0xff]   ;;  %v3188_v33 = vld [vmem:[%s4077_s0 + $0x144] ss:$8 sps:$4 sm:$0xff]  }
  0x5b   :  { %v3190_v34 = vld [vmem:[%s4077_s0 + $0x344] ss:$8 sps:$4 sm:$0xff]  }
  0x61   :  { %983 = vmatmul.mubr.bf16.gmra.mrb[16].mxu0 %v3096_v35  ;;  %1239 = vmatmul.mubr.bf16.gmra.mrb[16].mxu1 %v3097_v36  ;;  %v3192_v35 = vld [vmem:[%s4077_s0 + $0x140] ss:$8 sps:$4 sm:$0xff]  }
  0x62   :  { %990 = vmatprep.mubr.bf16.mxu0 %v3098_v37  ;;  %1246 = vmatprep.mubr.bf16.mxu1 %v3100_v38  ;;  %v3193_v36 = vld [vmem:[%s4077_s0 + $0x340] ss:$8 sps:$4 sm:$0xff]   ;;  %v3194_v37 = vld [vmem:[%s4077_s0 + $0x154] ss:$8 sps:$4 sm:$0xff]  }
  0x63   :  { %v3196_v38 = vld [vmem:[%s4077_s0 + $0x354] ss:$8 sps:$4 sm:$0xff]  }
  0x69   :  { %991 = vmatmul.mubr.bf16.gmra.mrb[20].mxu0 %v3102_v39  ;;  %1247 = vmatmul.mubr.bf16.gmra.mrb[20].mxu1 %v3103_v40  ;;  %v3198_v39 = vld [vmem:[%s4077_s0 + $0x150] ss:$8 sps:$4 sm:$0xff]  }
  0x6a   :  { %998 = vmatprep.mubr.bf16.mxu0 %v3104_v41  ;;  %1254 = vmatprep.mubr.bf16.mxu1 %v3106_v42  ;;  %v3199_v40 = vld [vmem:[%s4077_s0 + $0x350] ss:$8 sps:$4 sm:$0xff]   ;;  %v3200_v41 = vld [vmem:[%s4077_s0 + $0x164] ss:$8 sps:$4 sm:$0xff]  }
  0x6b   :  { %v3202_v42 = vld [vmem:[%s4077_s0 + $0x364] ss:$8 sps:$4 sm:$0xff]  }
  0x71   :  { %999 = vmatmul.mubr.bf16.gmra.mrb[24].mxu0 %v3108_v43  ;;  %1255 = vmatmul.mubr.bf16.gmra.mrb[24].mxu1 %v3109_v44  ;;  %v3204_v43 = vld [vmem:[%s4077_s0 + $0x160] ss:$8 sps:$4 sm:$0xff]  }
  0x72   :  { %1006 = vmatprep.mubr.bf16.mxu0 %v3110_v45  ;;  %1262 = vmatprep.mubr.bf16.mxu1 %v3112_v46  ;;  %v3205_v44 = vld [vmem:[%s4077_s0 + $0x360] ss:$8 sps:$4 sm:$0xff]   ;;  %v3206_v45 = vld [vmem:[%s4077_s0 + $0x174] ss:$8 sps:$4 sm:$0xff]  }
  0x73   :  { %v3208_v46 = vld [vmem:[%s4077_s0 + $0x374] ss:$8 sps:$4 sm:$0xff]  }
  0x79   :  { %1007 = vmatmul.mubr.bf16.gmra.mrb[28].mxu0 %v3114_v47  ;;  %1263 = vmatmul.mubr.bf16.gmra.mrb[28].mxu1 %v3115_v48  ;;  %v3210_v47 = vld [vmem:[%s4077_s0 + $0x170] ss:$8 sps:$4 sm:$0xff]  }
  0x7a   :  { %1014 = vmatprep.mubr.bf16.mxu0 %v3116_v49  ;;  %1270 = vmatprep.mubr.bf16.mxu1 %v3118_v50  ;;  %v3211_v48 = vld [vmem:[%s4077_s0 + $0x370] ss:$8 sps:$4 sm:$0xff]   ;;  %v3212_v49 = vld [vmem:[%s4077_s0 + $0x184] ss:$8 sps:$4 sm:$0xff]  }
  0x7b   :  { %v3214_v50 = vld [vmem:[%s4077_s0 + $0x384] ss:$8 sps:$4 sm:$0xff]  }
  0x81   :  { %1015 = vmatmul.mubr.bf16.gmra.mrb[32].mxu0 %v3120_v51  ;;  %1271 = vmatmul.mubr.bf16.gmra.mrb[32].mxu1 %v3121_v52  ;;  %v3216_v51 = vld [vmem:[%s4077_s0 + $0x180] ss:$8 sps:$4 sm:$0xff]  }
  0x82   :  { %1022 = vmatprep.mubr.bf16.mxu0 %v3122_v53  ;;  %1278 = vmatprep.mubr.bf16.mxu1 %v3124_v54  ;;  %v3217_v52 = vld [vmem:[%s4077_s0 + $0x380] ss:$8 sps:$4 sm:$0xff]   ;;  %v3218_v53 = vld [vmem:[%s4077_s0 + $0x194] ss:$8 sps:$4 sm:$0xff]  }
  0x83   :  { %v3220_v54 = vld [vmem:[%s4077_s0 + $0x394] ss:$8 sps:$4 sm:$0xff]  }
  0x89   :  { %1023 = vmatmul.mubr.bf16.gmra.mrb[36].mxu0 %v3126_v55  ;;  %1279 = vmatmul.mubr.bf16.gmra.mrb[36].mxu1 %v3127_v56  ;;  %v3222_v55 = vld [vmem:[%s4077_s0 + $0x190] ss:$8 sps:$4 sm:$0xff]  }
  0x8a   :  { %1030 = vmatprep.mubr.bf16.mxu0 %v3128_v57  ;;  %1286 = vmatprep.mubr.bf16.mxu1 %v3130_v58  ;;  %v3223_v56 = vld [vmem:[%s4077_s0 + $0x390] ss:$8 sps:$4 sm:$0xff]   ;;  %v3224_v57 = vld [vmem:[%s4077_s0 + $0x1a4] ss:$8 sps:$4 sm:$0xff]  }
  0x8b   :  { %v3226_v58 = vld [vmem:[%s4077_s0 + $0x3a4] ss:$8 sps:$4 sm:$0xff]  }
  0x91   :  { %1031 = vmatmul.mubr.bf16.gmra.mrb[40].mxu0 %v3132_v59  ;;  %1287 = vmatmul.mubr.bf16.gmra.mrb[40].mxu1 %v3133_v60  ;;  %v3228_v59 = vld [vmem:[%s4077_s0 + $0x1a0] ss:$8 sps:$4 sm:$0xff]  }
  0x92   :  { %1038 = vmatprep.mubr.bf16.mxu0 %v3134_v61  ;;  %1294 = vmatprep.mubr.bf16.mxu1 %v3136_v62  ;;  %v3229_v60 = vld [vmem:[%s4077_s0 + $0x3a0] ss:$8 sps:$4 sm:$0xff]   ;;  %v3230_v61 = vld [vmem:[%s4077_s0 + $0x1b4] ss:$8 sps:$4 sm:$0xff]  }
  0x93   :  { %v3232_v62 = vld [vmem:[%s4077_s0 + $0x3b4] ss:$8 sps:$4 sm:$0xff]  }
  0x99   :  { %1039 = vmatmul.mubr.bf16.gmra.mrb[44].mxu0 %v3138_v63  ;;  %1295 = vmatmul.mubr.bf16.gmra.mrb[44].mxu1 %v3139_v0  ;;  %v3695_v63 = vld [vmem:[%s4078_s2] ss:$0 sm:$0xff] }
  0x9a   :  { %1046 = vmatprep.mubr.bf16.mxu0 %v3140_v1  ;;  %1302 = vmatprep.mubr.bf16.mxu1 %v3142_v2 }
  0xa1   :  { %1047 = vmatmul.mubr.bf16.gmra.mrb[48].mxu0 %v3144_v3  ;;  %1303 = vmatmul.mubr.bf16.gmra.mrb[48].mxu1 %v3145_v4 }
  0xa2   :  { %1054 = vmatprep.mubr.bf16.mxu0 %v3146_v5  ;;  %1310 = vmatprep.mubr.bf16.mxu1 %v3148_v6  ;;  %v3234_v6 = vld [vmem:[%s4077_s0 + $0x1b0] ss:$8 sps:$4 sm:$0xff]  }
  0xa9   :  { %1055 = vmatmul.mubr.bf16.gmra.mrb[52].mxu0 %v3150_v7  ;;  %1311 = vmatmul.mubr.bf16.gmra.mrb[52].mxu1 %v3151_v8  ;;  %v3235_v7 = vld [vmem:[%s4077_s0 + $0x3b0] ss:$8 sps:$4 sm:$0xff]  }
  0xaa   :  { %1062 = vmatprep.mubr.bf16.mxu0 %v3152_v9  ;;  %1318 = vmatprep.mubr.bf16.mxu1 %v3154_v10  ;;  %v3236_v10 = vld [vmem:[%s4077_s0 + $0x1c4] ss:$8 sps:$4 sm:$0xff]  }
  0xb1   :  { %1063 = vmatmul.mubr.bf16.gmra.mrb[56].mxu0 %v3156_v11  ;;  %1319 = vmatmul.mubr.bf16.gmra.mrb[56].mxu1 %v3157_v12  ;;  %v3238_v11 = vld [vmem:[%s4077_s0 + $0x3c4] ss:$8 sps:$4 sm:$0xff]  }
  0xb2   :  { %1070 = vmatprep.mubr.bf16.mxu0 %v3158_v13  ;;  %1326 = vmatprep.mubr.bf16.mxu1 %v3160_v14 }
  0xb9   :  { %1071 = vmatmul.mubr.bf16.gmra.mrb[60].mxu0 %v3162_v15  ;;  %1327 = vmatmul.mubr.bf16.gmra.mrb[60].mxu1 %v3163_v16 }
  0xba   :  { %1078 = vmatprep.mubr.bf16.mxu0 %v3164_v17  ;;  %1334 = vmatprep.mubr.bf16.mxu1 %v3166_v18 }
  0xc1   :  { %1079 = vmatmul.mubr.bf16.gmra.mrb[64].mxu0 %v3168_v19  ;;  %1335 = vmatmul.mubr.bf16.gmra.mrb[64].mxu1 %v3169_v20 }
  0xc2   :  { %1086 = vmatprep.mubr.bf16.mxu0 %v3170_v21  ;;  %1342 = vmatprep.mubr.bf16.mxu1 %v3172_v22 }
  0xc9   :  { %1087 = vmatmul.mubr.bf16.gmra.mrb[68].mxu0 %v3174_v23  ;;  %1343 = vmatmul.mubr.bf16.gmra.mrb[68].mxu1 %v3175_v24 }
  0xca   :  { %1094 = vmatprep.mubr.bf16.mxu0 %v3176_v25  ;;  %1350 = vmatprep.mubr.bf16.mxu1 %v3178_v26 }
  0xd1   :  { %1095 = vmatmul.mubr.bf16.gmra.mrb[72].mxu0 %v3180_v27  ;;  %1351 = vmatmul.mubr.bf16.gmra.mrb[72].mxu1 %v3181_v28  ;;  %v3240_v28 = vld [vmem:[%s4077_s0 + $0x1c0] ss:$8 sps:$4 sm:$0xff]  }
  0xd2   :  { %1102 = vmatprep.mubr.bf16.mxu0 %v3182_v29  ;;  %1358 = vmatprep.mubr.bf16.mxu1 %v3184_v30  ;;  %v3241_v29 = vld [vmem:[%s4077_s0 + $0x3c0] ss:$8 sps:$4 sm:$0xff]  }
  0xd9   :  { %1103 = vmatmul.mubr.bf16.gmra.mrb[76].mxu0 %v3186_v31  ;;  %1359 = vmatmul.mubr.bf16.gmra.mrb[76].mxu1 %v3187_v32  ;;  %v3242_v32 = vld [vmem:[%s4077_s0 + $0x1d4] ss:$8 sps:$4 sm:$0xff]  }
  0xda   :  { %1110 = vmatprep.mubr.bf16.mxu0 %v3188_v33  ;;  %1366 = vmatprep.mubr.bf16.mxu1 %v3190_v34  ;;  %v3244_v33 = vld [vmem:[%s4077_s0 + $0x3d4] ss:$8 sps:$4 sm:$0xff]  }
  0xe1   :  { %1111 = vmatmul.mubr.bf16.gmra.mrb[80].mxu0 %v3192_v35  ;;  %1367 = vmatmul.mubr.bf16.gmra.mrb[80].mxu1 %v3193_v36 }
  0xe2   :  { %1118 = vmatprep.mubr.bf16.mxu0 %v3194_v37  ;;  %1374 = vmatprep.mubr.bf16.mxu1 %v3196_v38 }
  0xe9   :  { %1119 = vmatmul.mubr.bf16.gmra.mrb[84].mxu0 %v3198_v39  ;;  %1375 = vmatmul.mubr.bf16.gmra.mrb[84].mxu1 %v3199_v40 }
  0xea   :  { %1126 = vmatprep.mubr.bf16.mxu0 %v3200_v41  ;;  %1382 = vmatprep.mubr.bf16.mxu1 %v3202_v42 }
  0xf1   :  { %1127 = vmatmul.mubr.bf16.gmra.mrb[88].mxu0 %v3204_v43  ;;  %1383 = vmatmul.mubr.bf16.gmra.mrb[88].mxu1 %v3205_v44 }
  0xf2   :  { %1134 = vmatprep.mubr.bf16.mxu0 %v3206_v45  ;;  %1390 = vmatprep.mubr.bf16.mxu1 %v3208_v46 }
  0xf9   :  { %1135 = vmatmul.mubr.bf16.gmra.mrb[92].mxu0 %v3210_v47  ;;  %1391 = vmatmul.mubr.bf16.gmra.mrb[92].mxu1 %v3211_v48 }
  0xfa   :  { %1142 = vmatprep.mubr.bf16.mxu0 %v3212_v49  ;;  %1398 = vmatprep.mubr.bf16.mxu1 %v3214_v50  ;;  %v3246_v50 = vld [vmem:[%s4077_s0 + $0x1d0] ss:$8 sps:$4 sm:$0xff]  }
 0x101   :  { %1143 = vmatmul.mubr.bf16.gmra.mrb[96].mxu0 %v3216_v51  ;;  %1399 = vmatmul.mubr.bf16.gmra.mrb[96].mxu1 %v3217_v52  ;;  %v3247_v51 = vld [vmem:[%s4077_s0 + $0x3d0] ss:$8 sps:$4 sm:$0xff]  }
 0x102   :  { %1150 = vmatprep.mubr.bf16.mxu0 %v3218_v53  ;;  %1406 = vmatprep.mubr.bf16.mxu1 %v3220_v54  ;;  %v3248_v54 = vld [vmem:[%s4077_s0 + $0x1e4] ss:$8 sps:$4 sm:$0xff]  }
 0x109   :  { %1151 = vmatmul.mubr.bf16.gmra.mrb[100].mxu0 %v3222_v55  ;;  %1407 = vmatmul.mubr.bf16.gmra.mrb[100].mxu1 %v3223_v56  ;;  %v3250_v55 = vld [vmem:[%s4077_s0 + $0x3e4] ss:$8 sps:$4 sm:$0xff]  }
 0x10a   :  { %1158 = vmatprep.mubr.bf16.mxu0 %v3224_v57  ;;  %1414 = vmatprep.mubr.bf16.mxu1 %v3226_v58 }
 0x111   :  { %1159 = vmatmul.mubr.bf16.gmra.mrb[104].mxu0 %v3228_v59  ;;  %1415 = vmatmul.mubr.bf16.gmra.mrb[104].mxu1 %v3229_v60 }
 0x112   :  { %1166 = vmatprep.mubr.bf16.mxu0 %v3230_v61  ;;  %1422 = vmatprep.mubr.bf16.mxu1 %v3232_v62 }
 0x114   :  { %v952_v0 = vpop.f32.mrb[0].mxu0  ;;  %v1208_v1 = vpop.f32.mrb[0].mxu1 }
 0x115   :  { %v953_v2 = vadd.f32 %v3695_v63, %v952_v0  ;;  %v1209_v3 = vadd.f32 %v3695_v63, %v1208_v1  ;;  %v954_v4 = vpop.f32.mrb[1].mxu0  ;;  %v1210_v5 = vpop.f32.mrb[1].mxu1 }
 0x116   :  { %v955_v8 = vpop.f32.mrb[2].mxu0  ;;  %v1211_v9 = vpop.f32.mrb[2].mxu1 }
 0x117   :  { %v956_v12 = vadd.f32 %v3695_v63, %v955_v8  ;;  %v1212_v13 = vadd.f32 %v3695_v63, %v1211_v9  ;;  %v957_v14 = vpop.f32.mrb[3].mxu0  ;;  %v1213_v15 = vpop.f32.mrb[3].mxu1  ;;  %v1463_v16 = vmax.f32 %v953_v2, 0.0  ;;  %v1527_v17 = vmax.f32 %v1209_v3, 0.0  ;;  %v3252_v9 = vld [vmem:[%s4077_s0 + $0x1e0] ss:$8 sps:$4 sm:$0xff]  }
 0x118   :  { %v3256_v14 = vld [vmem:[%s4077_s0 + $0x3f4] ss:$8 sps:$4 sm:$0xff]  }
 0x119   :  { %v1464_v18 = vmax.f32 %v956_v12, 0.0  ;;  %v1528_v19 = vmax.f32 %v1212_v13, 0.0  ;;  %1167 = vmatmul.mubr.bf16.gmra.mrb[108].mxu0 %v3234_v6  ;;  %1423 = vmatmul.mubr.bf16.gmra.mrb[108].mxu1 %v3235_v7  ;;  %v3254_v13 = vld [vmem:[%s4077_s0 + $0x1f4] ss:$8 sps:$4 sm:$0xff]  }
 0x11a   :  { %1174 = vmatprep.mubr.bf16.mxu0 %v3236_v10  ;;  %1430 = vmatprep.mubr.bf16.mxu1 %v3238_v11  ;;  %v3253_v10 = vld [vmem:[%s4077_s0 + $0x3e0] ss:$8 sps:$4 sm:$0xff]  }
 0x11b   :  { %v2639_v20 = vpack.c.bf16 %v1464_v18, %v1463_v16  ;;  %v2799_v21 = vpack.c.bf16 %v1528_v19, %v1527_v17 }
 0x11c   :  { %v960_v22 = vpop.f32.mrb[4].mxu0  ;;  %v1216_v23 = vpop.f32.mrb[4].mxu1 }
 0x11d   :  { %2640 = vst [vmem:[%s4079_s3] sm:$0xff] %v2639_v20   ;;  %2987 = vst [vmem:[%s4079_s3 + $0x100] sm:$0xff] %v2799_v21   ;;  %v961_v24 = vadd.f32 %v3695_v63, %v960_v22  ;;  %v1217_v25 = vadd.f32 %v3695_v63, %v1216_v23  ;;  %v962_v26 = vpop.f32.mrb[5].mxu0  ;;  %v1218_v27 = vpop.f32.mrb[5].mxu1 }
 0x11e   :  { %v963_v30 = vpop.f32.mrb[6].mxu0  ;;  %v1219_v31 = vpop.f32.mrb[6].mxu1 }
 0x11f   :  { %v964_v34 = vadd.f32 %v3695_v63, %v963_v30  ;;  %v1220_v35 = vadd.f32 %v3695_v63, %v1219_v31  ;;  %v965_v36 = vpop.f32.mrb[7].mxu0  ;;  %v1221_v37 = vpop.f32.mrb[7].mxu1  ;;  %v1465_v38 = vmax.f32 %v961_v24, 0.0  ;;  %v1529_v39 = vmax.f32 %v1217_v25, 0.0  ;;  %v3258_v31 = vld [vmem:[%s4077_s0 + $0x1f0] ss:$8 sps:$4 sm:$0xff]  }
 0x121   :  { %v1466_v40 = vmax.f32 %v964_v34, 0.0  ;;  %v1530_v41 = vmax.f32 %v1220_v35, 0.0  ;;  %1175 = vmatmul.mubr.bf16.gmra.mrb[112].mxu0 %v3240_v28  ;;  %1431 = vmatmul.mubr.bf16.gmra.mrb[112].mxu1 %v3241_v29 }
 0x122   :  { %1182 = vmatprep.mubr.bf16.mxu0 %v3242_v32  ;;  %1438 = vmatprep.mubr.bf16.mxu1 %v3244_v33  ;;  %v3259_v32 = vld [vmem:[%s4077_s0 + $0x3f0] ss:$8 sps:$4 sm:$0xff]  }
 0x123   :  { %v2644_v42 = vpack.c.bf16 %v1466_v40, %v1465_v38  ;;  %v2804_v43 = vpack.c.bf16 %v1530_v41, %v1529_v39 }
 0x124   :  { %v968_v44 = vpop.f32.mrb[8].mxu0  ;;  %v1224_v45 = vpop.f32.mrb[8].mxu1 }
 0x125   :  { %2956 = vst [vmem:[%s4079_s3 + $0x8] sm:$0xff] %v2644_v42   ;;  %2988 = vst [vmem:[%s4079_s3 + $0x108] sm:$0xff] %v2804_v43   ;;  %v969_v46 = vadd.f32 %v3695_v63, %v968_v44  ;;  %v1225_v47 = vadd.f32 %v3695_v63, %v1224_v45  ;;  %v970_v48 = vpop.f32.mrb[9].mxu0  ;;  %v1226_v49 = vpop.f32.mrb[9].mxu1 }
 0x126   :  { %v971_v52 = vpop.f32.mrb[10].mxu0  ;;  %v1227_v53 = vpop.f32.mrb[10].mxu1 }
 0x127   :  { %v972_v56 = vadd.f32 %v3695_v63, %v971_v52  ;;  %v1228_v57 = vadd.f32 %v3695_v63, %v1227_v53  ;;  %v973_v58 = vpop.f32.mrb[11].mxu0  ;;  %v1229_v59 = vpop.f32.mrb[11].mxu1  ;;  %v1467_v60 = vmax.f32 %v969_v46, 0.0  ;;  %v1531_v61 = vmax.f32 %v1225_v47, 0.0 }
 0x129   :  { %v1468_v62 = vmax.f32 %v972_v56, 0.0  ;;  %v1532_v0 = vmax.f32 %v1228_v57, 0.0  ;;  %1183 = vmatmul.mubr.bf16.gmra.mrb[116].mxu0 %v3246_v50  ;;  %1439 = vmatmul.mubr.bf16.gmra.mrb[116].mxu1 %v3247_v51 }
 0x12a   :  { %1190 = vmatprep.mubr.bf16.mxu0 %v3248_v54  ;;  %1446 = vmatprep.mubr.bf16.mxu1 %v3250_v55 }
 0x12b   :  { %v2649_v1 = vpack.c.bf16 %v1468_v62, %v1467_v60  ;;  %v2809_v2 = vpack.c.bf16 %v1532_v0, %v1531_v61 }
 0x12c   :  { %v976_v3 = vpop.f32.mrb[12].mxu0  ;;  %v1232_v4 = vpop.f32.mrb[12].mxu1 }
 0x12d   :  { %2957 = vst [vmem:[%s4079_s3 + $0x10] sm:$0xff] %v2649_v1   ;;  %2989 = vst [vmem:[%s4079_s3 + $0x110] sm:$0xff] %v2809_v2   ;;  %v977_v5 = vadd.f32 %v3695_v63, %v976_v3  ;;  %v1233_v6 = vadd.f32 %v3695_v63, %v1232_v4  ;;  %v978_v7 = vpop.f32.mrb[13].mxu0  ;;  %v1234_v8 = vpop.f32.mrb[13].mxu1 }
 0x12e   :  { %v979_v11 = vpop.f32.mrb[14].mxu0  ;;  %v1235_v12 = vpop.f32.mrb[14].mxu1 }
 0x12f   :  { %v980_v15 = vadd.f32 %v3695_v63, %v979_v11  ;;  %v1236_v16 = vadd.f32 %v3695_v63, %v1235_v12  ;;  %v981_v17 = vpop.f32.mrb[15].mxu0  ;;  %v1237_v18 = vpop.f32.mrb[15].mxu1  ;;  %v1469_v19 = vmax.f32 %v977_v5, 0.0  ;;  %v1533_v20 = vmax.f32 %v1233_v6, 0.0 }
 0x131   :  { %v1470_v21 = vmax.f32 %v980_v15, 0.0  ;;  %v1534_v22 = vmax.f32 %v1236_v16, 0.0  ;;  %1191 = vmatmul.mubr.bf16.gmra.mrb[120].mxu0 %v3252_v9  ;;  %1447 = vmatmul.mubr.bf16.gmra.mrb[120].mxu1 %v3253_v10 }
 0x132   :  { %1198 = vmatprep.mubr.bf16.mxu0 %v3254_v13  ;;  %1454 = vmatprep.mubr.bf16.mxu1 %v3256_v14 }
 0x133   :  { %v2654_v23 = vpack.c.bf16 %v1470_v21, %v1469_v19  ;;  %v2814_v24 = vpack.c.bf16 %v1534_v22, %v1533_v20 }
 0x134   :  { %v984_v25 = vpop.f32.mrb[16].mxu0  ;;  %v1240_v26 = vpop.f32.mrb[16].mxu1 }
 0x135   :  { %2958 = vst [vmem:[%s4079_s3 + $0x18] sm:$0xff] %v2654_v23   ;;  %2990 = vst [vmem:[%s4079_s3 + $0x118] sm:$0xff] %v2814_v24   ;;  %v985_v27 = vadd.f32 %v3695_v63, %v984_v25  ;;  %v1241_v28 = vadd.f32 %v3695_v63, %v1240_v26  ;;  %v986_v29 = vpop.f32.mrb[17].mxu0  ;;  %v1242_v30 = vpop.f32.mrb[17].mxu1 }
 0x136   :  { %v987_v33 = vpop.f32.mrb[18].mxu0  ;;  %v1243_v34 = vpop.f32.mrb[18].mxu1 }
 0x137   :  { %v988_v35 = vadd.f32 %v3695_v63, %v987_v33  ;;  %v1244_v36 = vadd.f32 %v3695_v63, %v1243_v34  ;;  %v989_v37 = vpop.f32.mrb[19].mxu0  ;;  %v1245_v38 = vpop.f32.mrb[19].mxu1  ;;  %v1471_v39 = vmax.f32 %v985_v27, 0.0  ;;  %v1535_v40 = vmax.f32 %v1241_v28, 0.0 }
 0x139   :  { %v1472_v41 = vmax.f32 %v988_v35, 0.0  ;;  %v1536_v42 = vmax.f32 %v1244_v36, 0.0  ;;  %1199 = vmatmul.mubr.bf16.gmra.mrb[124].mxu0 %v3258_v31  ;;  %1455 = vmatmul.mubr.bf16.gmra.mrb[124].mxu1 %v3259_v32 }
 0x13b   :  { %v2659_v43 = vpack.c.bf16 %v1472_v41, %v1471_v39  ;;  %v2819_v44 = vpack.c.bf16 %v1536_v42, %v1535_v40 }
 0x13c   :  { %v992_v45 = vpop.f32.mrb[20].mxu0  ;;  %v1248_v46 = vpop.f32.mrb[20].mxu1 }
 0x13d   :  { %2959 = vst [vmem:[%s4079_s3 + $0x20] sm:$0xff] %v2659_v43   ;;  %2991 = vst [vmem:[%s4079_s3 + $0x120] sm:$0xff] %v2819_v44   ;;  %v993_v47 = vadd.f32 %v3695_v63, %v992_v45  ;;  %v1249_v48 = vadd.f32 %v3695_v63, %v1248_v46  ;;  %v994_v49 = vpop.f32.mrb[21].mxu0  ;;  %v1250_v50 = vpop.f32.mrb[21].mxu1 }
 0x13e   :  { %v995_v51 = vpop.f32.mrb[22].mxu0  ;;  %v1251_v52 = vpop.f32.mrb[22].mxu1 }
 0x13f   :  { %v996_v53 = vadd.f32 %v3695_v63, %v995_v51  ;;  %v1252_v54 = vadd.f32 %v3695_v63, %v1251_v52  ;;  %v997_v55 = vpop.f32.mrb[23].mxu0  ;;  %v1253_v56 = vpop.f32.mrb[23].mxu1  ;;  %v1473_v57 = vmax.f32 %v993_v47, 0.0  ;;  %v1537_v58 = vmax.f32 %v1249_v48, 0.0 }
 0x141   :  { %v1474_v59 = vmax.f32 %v996_v53, 0.0  ;;  %v1538_v60 = vmax.f32 %v1252_v54, 0.0 }
 0x143   :  { %v2664_v61 = vpack.c.bf16 %v1474_v59, %v1473_v57  ;;  %v2824_v62 = vpack.c.bf16 %v1538_v60, %v1537_v58 }
 0x144   :  { %v1000_v0 = vpop.f32.mrb[24].mxu0  ;;  %v1256_v1 = vpop.f32.mrb[24].mxu1 }
 0x145   :  { %2960 = vst [vmem:[%s4079_s3 + $0x28] sm:$0xff] %v2664_v61   ;;  %2992 = vst [vmem:[%s4079_s3 + $0x128] sm:$0xff] %v2824_v62   ;;  %v1001_v2 = vadd.f32 %v3695_v63, %v1000_v0  ;;  %v1257_v3 = vadd.f32 %v3695_v63, %v1256_v1  ;;  %v1002_v4 = vpop.f32.mrb[25].mxu0  ;;  %v1258_v5 = vpop.f32.mrb[25].mxu1 }
 0x146   :  { %v1003_v6 = vpop.f32.mrb[26].mxu0  ;;  %v1259_v7 = vpop.f32.mrb[26].mxu1 }
 0x147   :  { %v1004_v8 = vadd.f32 %v3695_v63, %v1003_v6  ;;  %v1260_v9 = vadd.f32 %v3695_v63, %v1259_v7  ;;  %v1005_v10 = vpop.f32.mrb[27].mxu0  ;;  %v1261_v11 = vpop.f32.mrb[27].mxu1  ;;  %v1475_v12 = vmax.f32 %v1001_v2, 0.0  ;;  %v1539_v13 = vmax.f32 %v1257_v3, 0.0 }
 0x149   :  { %v1476_v14 = vmax.f32 %v1004_v8, 0.0  ;;  %v1540_v15 = vmax.f32 %v1260_v9, 0.0 }
 0x14b   :  { %v2669_v16 = vpack.c.bf16 %v1476_v14, %v1475_v12  ;;  %v2829_v17 = vpack.c.bf16 %v1540_v15, %v1539_v13 }
 0x14c   :  { %v1008_v18 = vpop.f32.mrb[28].mxu0  ;;  %v1264_v19 = vpop.f32.mrb[28].mxu1 }
 0x14d   :  { %2961 = vst [vmem:[%s4079_s3 + $0x30] sm:$0xff] %v2669_v16   ;;  %2993 = vst [vmem:[%s4079_s3 + $0x130] sm:$0xff] %v2829_v17   ;;  %v1009_v20 = vadd.f32 %v3695_v63, %v1008_v18  ;;  %v1265_v21 = vadd.f32 %v3695_v63, %v1264_v19  ;;  %v1010_v22 = vpop.f32.mrb[29].mxu0  ;;  %v1266_v23 = vpop.f32.mrb[29].mxu1 }
 0x14e   :  { %v1011_v24 = vpop.f32.mrb[30].mxu0  ;;  %v1267_v25 = vpop.f32.mrb[30].mxu1 }
 0x14f   :  { %v1012_v26 = vadd.f32 %v3695_v63, %v1011_v24  ;;  %v1268_v27 = vadd.f32 %v3695_v63, %v1267_v25  ;;  %v1013_v28 = vpop.f32.mrb[31].mxu0  ;;  %v1269_v29 = vpop.f32.mrb[31].mxu1  ;;  %v1477_v30 = vmax.f32 %v1009_v20, 0.0  ;;  %v1541_v31 = vmax.f32 %v1265_v21, 0.0 }
 0x151   :  { %v1478_v32 = vmax.f32 %v1012_v26, 0.0  ;;  %v1542_v33 = vmax.f32 %v1268_v27, 0.0 }
 0x153   :  { %v2674_v34 = vpack.c.bf16 %v1478_v32, %v1477_v30  ;;  %v2834_v35 = vpack.c.bf16 %v1542_v33, %v1541_v31 }
 0x154   :  { %v1016_v36 = vpop.f32.mrb[32].mxu0  ;;  %v1272_v37 = vpop.f32.mrb[32].mxu1 }
 0x155   :  { %2962 = vst [vmem:[%s4079_s3 + $0x38] sm:$0xff] %v2674_v34   ;;  %2994 = vst [vmem:[%s4079_s3 + $0x138] sm:$0xff] %v2834_v35   ;;  %v1017_v38 = vadd.f32 %v3695_v63, %v1016_v36  ;;  %v1273_v39 = vadd.f32 %v3695_v63, %v1272_v37  ;;  %v1018_v40 = vpop.f32.mrb[33].mxu0  ;;  %v1274_v41 = vpop.f32.mrb[33].mxu1 }
 0x156   :  { %v1019_v42 = vpop.f32.mrb[34].mxu0  ;;  %v1275_v43 = vpop.f32.mrb[34].mxu1 }
 0x157   :  { %v1020_v44 = vadd.f32 %v3695_v63, %v1019_v42  ;;  %v1276_v45 = vadd.f32 %v3695_v63, %v1275_v43  ;;  %v1021_v46 = vpop.f32.mrb[35].mxu0  ;;  %v1277_v47 = vpop.f32.mrb[35].mxu1  ;;  %v1479_v48 = vmax.f32 %v1017_v38, 0.0  ;;  %v1543_v49 = vmax.f32 %v1273_v39, 0.0 }
 0x159   :  { %v1480_v50 = vmax.f32 %v1020_v44, 0.0  ;;  %v1544_v51 = vmax.f32 %v1276_v45, 0.0 }
 0x15b   :  { %v2679_v52 = vpack.c.bf16 %v1480_v50, %v1479_v48  ;;  %v2839_v53 = vpack.c.bf16 %v1544_v51, %v1543_v49 }
 0x15c   :  { %v1024_v54 = vpop.f32.mrb[36].mxu0  ;;  %v1280_v55 = vpop.f32.mrb[36].mxu1 }
 0x15d   :  { %2963 = vst [vmem:[%s4079_s3 + $0x40] sm:$0xff] %v2679_v52   ;;  %2995 = vst [vmem:[%s4079_s3 + $0x140] sm:$0xff] %v2839_v53   ;;  %v1025_v56 = vadd.f32 %v3695_v63, %v1024_v54  ;;  %v1281_v57 = vadd.f32 %v3695_v63, %v1280_v55  ;;  %v1026_v58 = vpop.f32.mrb[37].mxu0  ;;  %v1282_v59 = vpop.f32.mrb[37].mxu1 }
 0x15e   :  { %v1027_v60 = vpop.f32.mrb[38].mxu0  ;;  %v1283_v61 = vpop.f32.mrb[38].mxu1 }
 0x15f   :  { %v1028_v62 = vadd.f32 %v3695_v63, %v1027_v60  ;;  %v1284_v0 = vadd.f32 %v3695_v63, %v1283_v61  ;;  %v1029_v1 = vpop.f32.mrb[39].mxu0  ;;  %v1285_v2 = vpop.f32.mrb[39].mxu1  ;;  %v1481_v3 = vmax.f32 %v1025_v56, 0.0  ;;  %v1545_v4 = vmax.f32 %v1281_v57, 0.0 }
 0x161   :  { %v1482_v5 = vmax.f32 %v1028_v62, 0.0  ;;  %v1546_v6 = vmax.f32 %v1284_v0, 0.0 }
 0x163   :  { %v2684_v7 = vpack.c.bf16 %v1482_v5, %v1481_v3  ;;  %v2844_v8 = vpack.c.bf16 %v1546_v6, %v1545_v4 }
 0x164   :  { %v1032_v9 = vpop.f32.mrb[40].mxu0  ;;  %v1288_v10 = vpop.f32.mrb[40].mxu1 }
 0x165   :  { %2964 = vst [vmem:[%s4079_s3 + $0x48] sm:$0xff] %v2684_v7   ;;  %2996 = vst [vmem:[%s4079_s3 + $0x148] sm:$0xff] %v2844_v8   ;;  %v1033_v11 = vadd.f32 %v3695_v63, %v1032_v9  ;;  %v1289_v12 = vadd.f32 %v3695_v63, %v1288_v10  ;;  %v1034_v13 = vpop.f32.mrb[41].mxu0  ;;  %v1290_v14 = vpop.f32.mrb[41].mxu1 }
 0x166   :  { %v1035_v15 = vpop.f32.mrb[42].mxu0  ;;  %v1291_v16 = vpop.f32.mrb[42].mxu1 }
 0x167   :  { %v1036_v17 = vadd.f32 %v3695_v63, %v1035_v15  ;;  %v1292_v18 = vadd.f32 %v3695_v63, %v1291_v16  ;;  %v1037_v19 = vpop.f32.mrb[43].mxu0  ;;  %v1293_v20 = vpop.f32.mrb[43].mxu1  ;;  %v1483_v21 = vmax.f32 %v1033_v11, 0.0  ;;  %v1547_v22 = vmax.f32 %v1289_v12, 0.0 }
 0x169   :  { %v1484_v23 = vmax.f32 %v1036_v17, 0.0  ;;  %v1548_v24 = vmax.f32 %v1292_v18, 0.0 }
 0x16b   :  { %v2689_v25 = vpack.c.bf16 %v1484_v23, %v1483_v21  ;;  %v2849_v26 = vpack.c.bf16 %v1548_v24, %v1547_v22 }
 0x16c   :  { %v1040_v27 = vpop.f32.mrb[44].mxu0  ;;  %v1296_v28 = vpop.f32.mrb[44].mxu1 }
 0x16d   :  { %2965 = vst [vmem:[%s4079_s3 + $0x50] sm:$0xff] %v2689_v25   ;;  %2997 = vst [vmem:[%s4079_s3 + $0x150] sm:$0xff] %v2849_v26   ;;  %v1041_v29 = vadd.f32 %v3695_v63, %v1040_v27  ;;  %v1297_v30 = vadd.f32 %v3695_v63, %v1296_v28  ;;  %v1042_v31 = vpop.f32.mrb[45].mxu0  ;;  %v1298_v32 = vpop.f32.mrb[45].mxu1 }
 0x16e   :  { %v1043_v33 = vpop.f32.mrb[46].mxu0  ;;  %v1299_v34 = vpop.f32.mrb[46].mxu1 }
 0x16f   :  { %v1044_v35 = vadd.f32 %v3695_v63, %v1043_v33  ;;  %v1300_v36 = vadd.f32 %v3695_v63, %v1299_v34  ;;  %v1045_v37 = vpop.f32.mrb[47].mxu0  ;;  %v1301_v38 = vpop.f32.mrb[47].mxu1  ;;  %v1485_v39 = vmax.f32 %v1041_v29, 0.0  ;;  %v1549_v40 = vmax.f32 %v1297_v30, 0.0 }
 0x171   :  { %v1486_v41 = vmax.f32 %v1044_v35, 0.0  ;;  %v1550_v42 = vmax.f32 %v1300_v36, 0.0 }
 0x173   :  { %v2694_v43 = vpack.c.bf16 %v1486_v41, %v1485_v39  ;;  %v2854_v44 = vpack.c.bf16 %v1550_v42, %v1549_v40 }
 0x174   :  { %v1048_v45 = vpop.f32.mrb[48].mxu0  ;;  %v1304_v46 = vpop.f32.mrb[48].mxu1 }
 0x175   :  { %2966 = vst [vmem:[%s4079_s3 + $0x58] sm:$0xff] %v2694_v43   ;;  %2998 = vst [vmem:[%s4079_s3 + $0x158] sm:$0xff] %v2854_v44   ;;  %v1049_v47 = vadd.f32 %v3695_v63, %v1048_v45  ;;  %v1305_v48 = vadd.f32 %v3695_v63, %v1304_v46  ;;  %v1050_v49 = vpop.f32.mrb[49].mxu0  ;;  %v1306_v50 = vpop.f32.mrb[49].mxu1 }
 0x176   :  { %v1051_v51 = vpop.f32.mrb[50].mxu0  ;;  %v1307_v52 = vpop.f32.mrb[50].mxu1 }
 0x177   :  { %v1052_v53 = vadd.f32 %v3695_v63, %v1051_v51  ;;  %v1308_v54 = vadd.f32 %v3695_v63, %v1307_v52  ;;  %v1053_v55 = vpop.f32.mrb[51].mxu0  ;;  %v1309_v56 = vpop.f32.mrb[51].mxu1  ;;  %v1487_v57 = vmax.f32 %v1049_v47, 0.0  ;;  %v1551_v58 = vmax.f32 %v1305_v48, 0.0 }
 0x179   :  { %v1488_v59 = vmax.f32 %v1052_v53, 0.0  ;;  %v1552_v60 = vmax.f32 %v1308_v54, 0.0 }
 0x17b   :  { %v2699_v61 = vpack.c.bf16 %v1488_v59, %v1487_v57  ;;  %v2859_v62 = vpack.c.bf16 %v1552_v60, %v1551_v58 }
 0x17c   :  { %v1056_v0 = vpop.f32.mrb[52].mxu0  ;;  %v1312_v1 = vpop.f32.mrb[52].mxu1 }
 0x17d   :  { %2967 = vst [vmem:[%s4079_s3 + $0x60] sm:$0xff] %v2699_v61   ;;  %2999 = vst [vmem:[%s4079_s3 + $0x160] sm:$0xff] %v2859_v62   ;;  %v1057_v2 = vadd.f32 %v3695_v63, %v1056_v0  ;;  %v1313_v3 = vadd.f32 %v3695_v63, %v1312_v1  ;;  %v1058_v4 = vpop.f32.mrb[53].mxu0  ;;  %v1314_v5 = vpop.f32.mrb[53].mxu1 }
 0x17e   :  { %v1059_v6 = vpop.f32.mrb[54].mxu0  ;;  %v1315_v7 = vpop.f32.mrb[54].mxu1 }
 0x17f   :  { %v1060_v8 = vadd.f32 %v3695_v63, %v1059_v6  ;;  %v1316_v9 = vadd.f32 %v3695_v63, %v1315_v7  ;;  %v1061_v10 = vpop.f32.mrb[55].mxu0  ;;  %v1317_v11 = vpop.f32.mrb[55].mxu1  ;;  %v1489_v12 = vmax.f32 %v1057_v2, 0.0  ;;  %v1553_v13 = vmax.f32 %v1313_v3, 0.0 }
 0x181   :  { %v1490_v14 = vmax.f32 %v1060_v8, 0.0  ;;  %v1554_v15 = vmax.f32 %v1316_v9, 0.0 }
 0x183   :  { %v2704_v16 = vpack.c.bf16 %v1490_v14, %v1489_v12  ;;  %v2864_v17 = vpack.c.bf16 %v1554_v15, %v1553_v13 }
 0x184   :  { %v1064_v18 = vpop.f32.mrb[56].mxu0  ;;  %v1320_v19 = vpop.f32.mrb[56].mxu1 }
 0x185   :  { %2968 = vst [vmem:[%s4079_s3 + $0x68] sm:$0xff] %v2704_v16   ;;  %3000 = vst [vmem:[%s4079_s3 + $0x168] sm:$0xff] %v2864_v17   ;;  %v1065_v20 = vadd.f32 %v3695_v63, %v1064_v18  ;;  %v1321_v21 = vadd.f32 %v3695_v63, %v1320_v19  ;;  %v1066_v22 = vpop.f32.mrb[57].mxu0  ;;  %v1322_v23 = vpop.f32.mrb[57].mxu1 }
 0x186   :  { %v1067_v24 = vpop.f32.mrb[58].mxu0  ;;  %v1323_v25 = vpop.f32.mrb[58].mxu1 }
 0x187   :  { %v1068_v26 = vadd.f32 %v3695_v63, %v1067_v24  ;;  %v1324_v27 = vadd.f32 %v3695_v63, %v1323_v25  ;;  %v1069_v28 = vpop.f32.mrb[59].mxu0  ;;  %v1325_v29 = vpop.f32.mrb[59].mxu1  ;;  %v1491_v30 = vmax.f32 %v1065_v20, 0.0  ;;  %v1555_v31 = vmax.f32 %v1321_v21, 0.0 }
 0x189   :  { %v1492_v32 = vmax.f32 %v1068_v26, 0.0  ;;  %v1556_v33 = vmax.f32 %v1324_v27, 0.0 }
 0x18b   :  { %v2709_v34 = vpack.c.bf16 %v1492_v32, %v1491_v30  ;;  %v2869_v35 = vpack.c.bf16 %v1556_v33, %v1555_v31 }
 0x18c   :  { %v1072_v36 = vpop.f32.mrb[60].mxu0  ;;  %v1328_v37 = vpop.f32.mrb[60].mxu1 }
 0x18d   :  { %2969 = vst [vmem:[%s4079_s3 + $0x70] sm:$0xff] %v2709_v34   ;;  %3001 = vst [vmem:[%s4079_s3 + $0x170] sm:$0xff] %v2869_v35   ;;  %v1073_v38 = vadd.f32 %v3695_v63, %v1072_v36  ;;  %v1329_v39 = vadd.f32 %v3695_v63, %v1328_v37  ;;  %v1074_v40 = vpop.f32.mrb[61].mxu0  ;;  %v1330_v41 = vpop.f32.mrb[61].mxu1 }
 0x18e   :  { %v1075_v42 = vpop.f32.mrb[62].mxu0  ;;  %v1331_v43 = vpop.f32.mrb[62].mxu1 }
 0x18f   :  { %v1076_v44 = vadd.f32 %v3695_v63, %v1075_v42  ;;  %v1332_v45 = vadd.f32 %v3695_v63, %v1331_v43  ;;  %v1077_v46 = vpop.f32.mrb[63].mxu0  ;;  %v1333_v47 = vpop.f32.mrb[63].mxu1  ;;  %v1493_v48 = vmax.f32 %v1073_v38, 0.0  ;;  %v1557_v49 = vmax.f32 %v1329_v39, 0.0 }
 0x191   :  { %v1494_v50 = vmax.f32 %v1076_v44, 0.0  ;;  %v1558_v51 = vmax.f32 %v1332_v45, 0.0 }
 0x193   :  { %v2714_v52 = vpack.c.bf16 %v1494_v50, %v1493_v48  ;;  %v2874_v53 = vpack.c.bf16 %v1558_v51, %v1557_v49 }
 0x194   :  { %v1080_v54 = vpop.f32.mrb[64].mxu0  ;;  %v1336_v55 = vpop.f32.mrb[64].mxu1 }
 0x195   :  { %2970 = vst [vmem:[%s4079_s3 + $0x78] sm:$0xff] %v2714_v52   ;;  %3002 = vst [vmem:[%s4079_s3 + $0x178] sm:$0xff] %v2874_v53   ;;  %v1081_v56 = vadd.f32 %v3695_v63, %v1080_v54  ;;  %v1337_v57 = vadd.f32 %v3695_v63, %v1336_v55  ;;  %v1082_v58 = vpop.f32.mrb[65].mxu0  ;;  %v1338_v59 = vpop.f32.mrb[65].mxu1 }
 0x196   :  { %v1083_v60 = vpop.f32.mrb[66].mxu0  ;;  %v1339_v61 = vpop.f32.mrb[66].mxu1 }
 0x197   :  { %v1084_v62 = vadd.f32 %v3695_v63, %v1083_v60  ;;  %v1340_v0 = vadd.f32 %v3695_v63, %v1339_v61  ;;  %v1085_v1 = vpop.f32.mrb[67].mxu0  ;;  %v1341_v2 = vpop.f32.mrb[67].mxu1  ;;  %v1495_v3 = vmax.f32 %v1081_v56, 0.0  ;;  %v1559_v4 = vmax.f32 %v1337_v57, 0.0 }
 0x199   :  { %v1496_v5 = vmax.f32 %v1084_v62, 0.0  ;;  %v1560_v6 = vmax.f32 %v1340_v0, 0.0 }
 0x19b   :  { %v2719_v7 = vpack.c.bf16 %v1496_v5, %v1495_v3  ;;  %v2879_v8 = vpack.c.bf16 %v1560_v6, %v1559_v4 }
 0x19c   :  { %v1088_v9 = vpop.f32.mrb[68].mxu0  ;;  %v1344_v10 = vpop.f32.mrb[68].mxu1 }
 0x19d   :  { %2971 = vst [vmem:[%s4079_s3 + $0x80] sm:$0xff] %v2719_v7   ;;  %3003 = vst [vmem:[%s4079_s3 + $0x180] sm:$0xff] %v2879_v8   ;;  %v1089_v11 = vadd.f32 %v3695_v63, %v1088_v9  ;;  %v1345_v12 = vadd.f32 %v3695_v63, %v1344_v10  ;;  %v1090_v13 = vpop.f32.mrb[69].mxu0  ;;  %v1346_v14 = vpop.f32.mrb[69].mxu1 }
 0x19e   :  { %v1091_v15 = vpop.f32.mrb[70].mxu0  ;;  %v1347_v16 = vpop.f32.mrb[70].mxu1 }
 0x19f   :  { %v1092_v17 = vadd.f32 %v3695_v63, %v1091_v15  ;;  %v1348_v18 = vadd.f32 %v3695_v63, %v1347_v16  ;;  %v1093_v19 = vpop.f32.mrb[71].mxu0  ;;  %v1349_v20 = vpop.f32.mrb[71].mxu1  ;;  %v1497_v21 = vmax.f32 %v1089_v11, 0.0  ;;  %v1561_v22 = vmax.f32 %v1345_v12, 0.0 }
 0x1a1   :  { %v1498_v23 = vmax.f32 %v1092_v17, 0.0  ;;  %v1562_v24 = vmax.f32 %v1348_v18, 0.0 }
 0x1a3   :  { %v2724_v25 = vpack.c.bf16 %v1498_v23, %v1497_v21  ;;  %v2884_v26 = vpack.c.bf16 %v1562_v24, %v1561_v22 }
 0x1a4   :  { %v1096_v27 = vpop.f32.mrb[72].mxu0  ;;  %v1352_v28 = vpop.f32.mrb[72].mxu1 }
 0x1a5   :  { %2972 = vst [vmem:[%s4079_s3 + $0x88] sm:$0xff] %v2724_v25   ;;  %3004 = vst [vmem:[%s4079_s3 + $0x188] sm:$0xff] %v2884_v26   ;;  %v1097_v29 = vadd.f32 %v3695_v63, %v1096_v27  ;;  %v1353_v30 = vadd.f32 %v3695_v63, %v1352_v28  ;;  %v1098_v31 = vpop.f32.mrb[73].mxu0  ;;  %v1354_v32 = vpop.f32.mrb[73].mxu1 }
 0x1a6   :  { %v1099_v33 = vpop.f32.mrb[74].mxu0  ;;  %v1355_v34 = vpop.f32.mrb[74].mxu1 }
 0x1a7   :  { %v1100_v35 = vadd.f32 %v3695_v63, %v1099_v33  ;;  %v1356_v36 = vadd.f32 %v3695_v63, %v1355_v34  ;;  %v1101_v37 = vpop.f32.mrb[75].mxu0  ;;  %v1357_v38 = vpop.f32.mrb[75].mxu1  ;;  %v1499_v39 = vmax.f32 %v1097_v29, 0.0  ;;  %v1563_v40 = vmax.f32 %v1353_v30, 0.0 }
 0x1a9   :  { %v1500_v41 = vmax.f32 %v1100_v35, 0.0  ;;  %v1564_v42 = vmax.f32 %v1356_v36, 0.0 }
 0x1ab   :  { %v2729_v43 = vpack.c.bf16 %v1500_v41, %v1499_v39  ;;  %v2889_v44 = vpack.c.bf16 %v1564_v42, %v1563_v40 }
 0x1ac   :  { %v1104_v45 = vpop.f32.mrb[76].mxu0  ;;  %v1360_v46 = vpop.f32.mrb[76].mxu1 }
 0x1ad   :  { %2973 = vst [vmem:[%s4079_s3 + $0x90] sm:$0xff] %v2729_v43   ;;  %3005 = vst [vmem:[%s4079_s3 + $0x190] sm:$0xff] %v2889_v44   ;;  %v1105_v47 = vadd.f32 %v3695_v63, %v1104_v45  ;;  %v1361_v48 = vadd.f32 %v3695_v63, %v1360_v46  ;;  %v1106_v49 = vpop.f32.mrb[77].mxu0  ;;  %v1362_v50 = vpop.f32.mrb[77].mxu1 }
 0x1ae   :  { %v1107_v51 = vpop.f32.mrb[78].mxu0  ;;  %v1363_v52 = vpop.f32.mrb[78].mxu1 }
 0x1af   :  { %v1108_v53 = vadd.f32 %v3695_v63, %v1107_v51  ;;  %v1364_v54 = vadd.f32 %v3695_v63, %v1363_v52  ;;  %v1109_v55 = vpop.f32.mrb[79].mxu0  ;;  %v1365_v56 = vpop.f32.mrb[79].mxu1  ;;  %v1501_v57 = vmax.f32 %v1105_v47, 0.0  ;;  %v1565_v58 = vmax.f32 %v1361_v48, 0.0 }
 0x1b1   :  { %v1502_v59 = vmax.f32 %v1108_v53, 0.0  ;;  %v1566_v60 = vmax.f32 %v1364_v54, 0.0 }
 0x1b3   :  { %v2734_v61 = vpack.c.bf16 %v1502_v59, %v1501_v57  ;;  %v2894_v62 = vpack.c.bf16 %v1566_v60, %v1565_v58 }
 0x1b4   :  { %v1112_v0 = vpop.f32.mrb[80].mxu0  ;;  %v1368_v1 = vpop.f32.mrb[80].mxu1 }
 0x1b5   :  { %2974 = vst [vmem:[%s4079_s3 + $0x98] sm:$0xff] %v2734_v61   ;;  %3006 = vst [vmem:[%s4079_s3 + $0x198] sm:$0xff] %v2894_v62   ;;  %v1113_v2 = vadd.f32 %v3695_v63, %v1112_v0  ;;  %v1369_v3 = vadd.f32 %v3695_v63, %v1368_v1  ;;  %v1114_v4 = vpop.f32.mrb[81].mxu0  ;;  %v1370_v5 = vpop.f32.mrb[81].mxu1 }
 0x1b6   :  { %v1115_v6 = vpop.f32.mrb[82].mxu0  ;;  %v1371_v7 = vpop.f32.mrb[82].mxu1 }
 0x1b7   :  { %v1116_v8 = vadd.f32 %v3695_v63, %v1115_v6  ;;  %v1372_v9 = vadd.f32 %v3695_v63, %v1371_v7  ;;  %v1117_v10 = vpop.f32.mrb[83].mxu0  ;;  %v1373_v11 = vpop.f32.mrb[83].mxu1  ;;  %v1503_v12 = vmax.f32 %v1113_v2, 0.0  ;;  %v1567_v13 = vmax.f32 %v1369_v3, 0.0 }
 0x1b9   :  { %v1504_v14 = vmax.f32 %v1116_v8, 0.0  ;;  %v1568_v15 = vmax.f32 %v1372_v9, 0.0 }
 0x1bb   :  { %v2739_v16 = vpack.c.bf16 %v1504_v14, %v1503_v12  ;;  %v2899_v17 = vpack.c.bf16 %v1568_v15, %v1567_v13 }
 0x1bc   :  { %v1120_v18 = vpop.f32.mrb[84].mxu0  ;;  %v1376_v19 = vpop.f32.mrb[84].mxu1 }
 0x1bd   :  { %2975 = vst [vmem:[%s4079_s3 + $0xa0] sm:$0xff] %v2739_v16   ;;  %3007 = vst [vmem:[%s4079_s3 + $0x1a0] sm:$0xff] %v2899_v17   ;;  %v1121_v20 = vadd.f32 %v3695_v63, %v1120_v18  ;;  %v1377_v21 = vadd.f32 %v3695_v63, %v1376_v19  ;;  %v1122_v22 = vpop.f32.mrb[85].mxu0  ;;  %v1378_v23 = vpop.f32.mrb[85].mxu1 }
 0x1be   :  { %v1123_v24 = vpop.f32.mrb[86].mxu0  ;;  %v1379_v25 = vpop.f32.mrb[86].mxu1 }
 0x1bf   :  { %v1124_v26 = vadd.f32 %v3695_v63, %v1123_v24  ;;  %v1380_v27 = vadd.f32 %v3695_v63, %v1379_v25  ;;  %v1125_v28 = vpop.f32.mrb[87].mxu0  ;;  %v1381_v29 = vpop.f32.mrb[87].mxu1  ;;  %v1505_v30 = vmax.f32 %v1121_v20, 0.0  ;;  %v1569_v31 = vmax.f32 %v1377_v21, 0.0 }
 0x1c1   :  { %v1506_v32 = vmax.f32 %v1124_v26, 0.0  ;;  %v1570_v33 = vmax.f32 %v1380_v27, 0.0 }
 0x1c3   :  { %v2744_v34 = vpack.c.bf16 %v1506_v32, %v1505_v30  ;;  %v2904_v35 = vpack.c.bf16 %v1570_v33, %v1569_v31 }
 0x1c4   :  { %v1128_v36 = vpop.f32.mrb[88].mxu0  ;;  %v1384_v37 = vpop.f32.mrb[88].mxu1 }
 0x1c5   :  { %2976 = vst [vmem:[%s4079_s3 + $0xa8] sm:$0xff] %v2744_v34   ;;  %3008 = vst [vmem:[%s4079_s3 + $0x1a8] sm:$0xff] %v2904_v35   ;;  %v1129_v38 = vadd.f32 %v3695_v63, %v1128_v36  ;;  %v1385_v39 = vadd.f32 %v3695_v63, %v1384_v37  ;;  %v1130_v40 = vpop.f32.mrb[89].mxu0  ;;  %v1386_v41 = vpop.f32.mrb[89].mxu1 }
 0x1c6   :  { %v1131_v42 = vpop.f32.mrb[90].mxu0  ;;  %v1387_v43 = vpop.f32.mrb[90].mxu1 }
 0x1c7   :  { %v1132_v44 = vadd.f32 %v3695_v63, %v1131_v42  ;;  %v1388_v45 = vadd.f32 %v3695_v63, %v1387_v43  ;;  %v1133_v46 = vpop.f32.mrb[91].mxu0  ;;  %v1389_v47 = vpop.f32.mrb[91].mxu1  ;;  %v1507_v48 = vmax.f32 %v1129_v38, 0.0  ;;  %v1571_v49 = vmax.f32 %v1385_v39, 0.0 }
 0x1c9   :  { %v1508_v50 = vmax.f32 %v1132_v44, 0.0  ;;  %v1572_v51 = vmax.f32 %v1388_v45, 0.0 }
 0x1cb   :  { %v2749_v52 = vpack.c.bf16 %v1508_v50, %v1507_v48  ;;  %v2909_v53 = vpack.c.bf16 %v1572_v51, %v1571_v49 }
 0x1cc   :  { %v1136_v54 = vpop.f32.mrb[92].mxu0  ;;  %v1392_v55 = vpop.f32.mrb[92].mxu1 }
 0x1cd   :  { %2977 = vst [vmem:[%s4079_s3 + $0xb0] sm:$0xff] %v2749_v52   ;;  %3009 = vst [vmem:[%s4079_s3 + $0x1b0] sm:$0xff] %v2909_v53   ;;  %v1137_v56 = vadd.f32 %v3695_v63, %v1136_v54  ;;  %v1393_v57 = vadd.f32 %v3695_v63, %v1392_v55  ;;  %v1138_v58 = vpop.f32.mrb[93].mxu0  ;;  %v1394_v59 = vpop.f32.mrb[93].mxu1 }
 0x1ce   :  { %v1139_v60 = vpop.f32.mrb[94].mxu0  ;;  %v1395_v61 = vpop.f32.mrb[94].mxu1 }
 0x1cf   :  { %v1140_v62 = vadd.f32 %v3695_v63, %v1139_v60  ;;  %v1396_v0 = vadd.f32 %v3695_v63, %v1395_v61  ;;  %v1141_v1 = vpop.f32.mrb[95].mxu0  ;;  %v1397_v2 = vpop.f32.mrb[95].mxu1  ;;  %v1509_v3 = vmax.f32 %v1137_v56, 0.0  ;;  %v1573_v4 = vmax.f32 %v1393_v57, 0.0  ;;  %v3994_v63 = vld [vmem:[%s4078_s2] ss:$0 sm:$0xff] }
 0x1d1   :  { %v1510_v5 = vmax.f32 %v1140_v62, 0.0  ;;  %v1574_v6 = vmax.f32 %v1396_v0, 0.0 }
 0x1d3   :  { %v2754_v7 = vpack.c.bf16 %v1510_v5, %v1509_v3  ;;  %v2914_v8 = vpack.c.bf16 %v1574_v6, %v1573_v4 }
 0x1d4   :  { %v1144_v9 = vpop.f32.mrb[96].mxu0  ;;  %v1400_v10 = vpop.f32.mrb[96].mxu1 }
 0x1d5   :  { %2978 = vst [vmem:[%s4079_s3 + $0xb8] sm:$0xff] %v2754_v7   ;;  %3010 = vst [vmem:[%s4079_s3 + $0x1b8] sm:$0xff] %v2914_v8   ;;  %v1145_v11 = vadd.f32 %v3994_v63, %v1144_v9  ;;  %v1401_v12 = vadd.f32 %v3994_v63, %v1400_v10  ;;  %v1146_v13 = vpop.f32.mrb[97].mxu0  ;;  %v1402_v14 = vpop.f32.mrb[97].mxu1 }
 0x1d6   :  { %v1147_v15 = vpop.f32.mrb[98].mxu0  ;;  %v1403_v16 = vpop.f32.mrb[98].mxu1 }
 0x1d7   :  { %v1148_v17 = vadd.f32 %v3994_v63, %v1147_v15  ;;  %v1404_v18 = vadd.f32 %v3994_v63, %v1403_v16  ;;  %v1149_v19 = vpop.f32.mrb[99].mxu0  ;;  %v1405_v20 = vpop.f32.mrb[99].mxu1  ;;  %v1511_v21 = vmax.f32 %v1145_v11, 0.0  ;;  %v1575_v22 = vmax.f32 %v1401_v12, 0.0 }
 0x1d9   :  { %v1512_v23 = vmax.f32 %v1148_v17, 0.0  ;;  %v1576_v24 = vmax.f32 %v1404_v18, 0.0 }
 0x1db   :  { %v2759_v25 = vpack.c.bf16 %v1512_v23, %v1511_v21  ;;  %v2919_v26 = vpack.c.bf16 %v1576_v24, %v1575_v22 }
 0x1dc   :  { %v1152_v27 = vpop.f32.mrb[100].mxu0  ;;  %v1408_v28 = vpop.f32.mrb[100].mxu1 }
 0x1dd   :  { %2979 = vst [vmem:[%s4079_s3 + $0xc0] sm:$0xff] %v2759_v25   ;;  %3011 = vst [vmem:[%s4079_s3 + $0x1c0] sm:$0xff] %v2919_v26   ;;  %v1153_v29 = vadd.f32 %v3994_v63, %v1152_v27  ;;  %v1409_v30 = vadd.f32 %v3994_v63, %v1408_v28  ;;  %v1154_v31 = vpop.f32.mrb[101].mxu0  ;;  %v1410_v32 = vpop.f32.mrb[101].mxu1 }
 0x1de   :  { %v1155_v33 = vpop.f32.mrb[102].mxu0  ;;  %v1411_v34 = vpop.f32.mrb[102].mxu1 }
 0x1df   :  { %v1156_v35 = vadd.f32 %v3994_v63, %v1155_v33  ;;  %v1412_v36 = vadd.f32 %v3994_v63, %v1411_v34  ;;  %v1157_v37 = vpop.f32.mrb[103].mxu0  ;;  %v1413_v38 = vpop.f32.mrb[103].mxu1  ;;  %v1513_v39 = vmax.f32 %v1153_v29, 0.0  ;;  %v1577_v40 = vmax.f32 %v1409_v30, 0.0 }
 0x1e1   :  { %v1514_v41 = vmax.f32 %v1156_v35, 0.0  ;;  %v1578_v42 = vmax.f32 %v1412_v36, 0.0 }
 0x1e3   :  { %v2764_v43 = vpack.c.bf16 %v1514_v41, %v1513_v39  ;;  %v2924_v44 = vpack.c.bf16 %v1578_v42, %v1577_v40 }
 0x1e4   :  { %v1160_v45 = vpop.f32.mrb[104].mxu0  ;;  %v1416_v46 = vpop.f32.mrb[104].mxu1 }
 0x1e5   :  { %2980 = vst [vmem:[%s4079_s3 + $0xc8] sm:$0xff] %v2764_v43   ;;  %3012 = vst [vmem:[%s4079_s3 + $0x1c8] sm:$0xff] %v2924_v44   ;;  %v1161_v47 = vadd.f32 %v3994_v63, %v1160_v45  ;;  %v1417_v48 = vadd.f32 %v3994_v63, %v1416_v46  ;;  %v1162_v49 = vpop.f32.mrb[105].mxu0  ;;  %v1418_v50 = vpop.f32.mrb[105].mxu1 }
 0x1e6   :  { %v1163_v51 = vpop.f32.mrb[106].mxu0  ;;  %v1419_v52 = vpop.f32.mrb[106].mxu1 }
 0x1e7   :  { %v1164_v53 = vadd.f32 %v3994_v63, %v1163_v51  ;;  %v1420_v54 = vadd.f32 %v3994_v63, %v1419_v52  ;;  %v1165_v55 = vpop.f32.mrb[107].mxu0  ;;  %v1421_v56 = vpop.f32.mrb[107].mxu1  ;;  %v1515_v57 = vmax.f32 %v1161_v47, 0.0  ;;  %v1579_v58 = vmax.f32 %v1417_v48, 0.0 }
 0x1e9   :  { %v1516_v59 = vmax.f32 %v1164_v53, 0.0  ;;  %v1580_v60 = vmax.f32 %v1420_v54, 0.0 }
 0x1eb   :  { %v2769_v61 = vpack.c.bf16 %v1516_v59, %v1515_v57  ;;  %v2929_v62 = vpack.c.bf16 %v1580_v60, %v1579_v58 }
 0x1ec   :  { %v1168_v0 = vpop.f32.mrb[108].mxu0  ;;  %v1424_v1 = vpop.f32.mrb[108].mxu1 }
 0x1ed   :  { %2981 = vst [vmem:[%s4079_s3 + $0xd0] sm:$0xff] %v2769_v61   ;;  %3013 = vst [vmem:[%s4079_s3 + $0x1d0] sm:$0xff] %v2929_v62   ;;  %v1169_v2 = vadd.f32 %v3994_v63, %v1168_v0  ;;  %v1425_v3 = vadd.f32 %v3994_v63, %v1424_v1  ;;  %v1170_v4 = vpop.f32.mrb[109].mxu0  ;;  %v1426_v5 = vpop.f32.mrb[109].mxu1 }
 0x1ee   :  { %v1171_v6 = vpop.f32.mrb[110].mxu0  ;;  %v1427_v7 = vpop.f32.mrb[110].mxu1 }
 0x1ef   :  { %v1172_v8 = vadd.f32 %v3994_v63, %v1171_v6  ;;  %v1428_v9 = vadd.f32 %v3994_v63, %v1427_v7  ;;  %v1173_v10 = vpop.f32.mrb[111].mxu0  ;;  %v1429_v11 = vpop.f32.mrb[111].mxu1  ;;  %v1517_v12 = vmax.f32 %v1169_v2, 0.0  ;;  %v1581_v13 = vmax.f32 %v1425_v3, 0.0 }
 0x1f1   :  { %v1518_v14 = vmax.f32 %v1172_v8, 0.0  ;;  %v1582_v15 = vmax.f32 %v1428_v9, 0.0 }
 0x1f3   :  { %v2774_v16 = vpack.c.bf16 %v1518_v14, %v1517_v12  ;;  %v2934_v17 = vpack.c.bf16 %v1582_v15, %v1581_v13 }
 0x1f4   :  { %v1176_v18 = vpop.f32.mrb[112].mxu0  ;;  %v1432_v19 = vpop.f32.mrb[112].mxu1 }
 0x1f5   :  { %2982 = vst [vmem:[%s4079_s3 + $0xd8] sm:$0xff] %v2774_v16   ;;  %3014 = vst [vmem:[%s4079_s3 + $0x1d8] sm:$0xff] %v2934_v17   ;;  %v1177_v20 = vadd.f32 %v3994_v63, %v1176_v18  ;;  %v1433_v21 = vadd.f32 %v3994_v63, %v1432_v19  ;;  %v1178_v22 = vpop.f32.mrb[113].mxu0  ;;  %v1434_v23 = vpop.f32.mrb[113].mxu1 }
 0x1f6   :  { %v1179_v24 = vpop.f32.mrb[114].mxu0  ;;  %v1435_v25 = vpop.f32.mrb[114].mxu1 }
 0x1f7   :  { %v1180_v26 = vadd.f32 %v3994_v63, %v1179_v24  ;;  %v1436_v27 = vadd.f32 %v3994_v63, %v1435_v25  ;;  %v1181_v28 = vpop.f32.mrb[115].mxu0  ;;  %v1437_v29 = vpop.f32.mrb[115].mxu1  ;;  %v1519_v30 = vmax.f32 %v1177_v20, 0.0  ;;  %v1583_v31 = vmax.f32 %v1433_v21, 0.0 }
 0x1f9   :  { %v1520_v32 = vmax.f32 %v1180_v26, 0.0  ;;  %v1584_v33 = vmax.f32 %v1436_v27, 0.0 }
 0x1fb   :  { %v2779_v34 = vpack.c.bf16 %v1520_v32, %v1519_v30  ;;  %v2939_v35 = vpack.c.bf16 %v1584_v33, %v1583_v31 }
 0x1fc   :  { %v1184_v36 = vpop.f32.mrb[116].mxu0  ;;  %v1440_v37 = vpop.f32.mrb[116].mxu1 }
 0x1fd   :  { %2983 = vst [vmem:[%s4079_s3 + $0xe0] sm:$0xff] %v2779_v34   ;;  %3015 = vst [vmem:[%s4079_s3 + $0x1e0] sm:$0xff] %v2939_v35   ;;  %v1185_v38 = vadd.f32 %v3994_v63, %v1184_v36  ;;  %v1441_v39 = vadd.f32 %v3994_v63, %v1440_v37  ;;  %v1186_v40 = vpop.f32.mrb[117].mxu0  ;;  %v1442_v41 = vpop.f32.mrb[117].mxu1 }
 0x1fe   :  { %v1187_v42 = vpop.f32.mrb[118].mxu0  ;;  %v1443_v43 = vpop.f32.mrb[118].mxu1 }
 0x1ff   :  { %v1188_v44 = vadd.f32 %v3994_v63, %v1187_v42  ;;  %v1444_v45 = vadd.f32 %v3994_v63, %v1443_v43  ;;  %v1189_v46 = vpop.f32.mrb[119].mxu0  ;;  %v1445_v47 = vpop.f32.mrb[119].mxu1  ;;  %v1521_v48 = vmax.f32 %v1185_v38, 0.0  ;;  %v1585_v49 = vmax.f32 %v1441_v39, 0.0 }
 0x201   :  { %v1522_v50 = vmax.f32 %v1188_v44, 0.0  ;;  %v1586_v51 = vmax.f32 %v1444_v45, 0.0 }
 0x203   :  { %v2784_v52 = vpack.c.bf16 %v1522_v50, %v1521_v48  ;;  %v2944_v53 = vpack.c.bf16 %v1586_v51, %v1585_v49 }
 0x204   :  { %v1192_v54 = vpop.f32.mrb[120].mxu0  ;;  %v1448_v55 = vpop.f32.mrb[120].mxu1 }
 0x205   :  { %2984 = vst [vmem:[%s4079_s3 + $0xe8] sm:$0xff] %v2784_v52   ;;  %3016 = vst [vmem:[%s4079_s3 + $0x1e8] sm:$0xff] %v2944_v53   ;;  %v1193_v56 = vadd.f32 %v3994_v63, %v1192_v54  ;;  %v1449_v57 = vadd.f32 %v3994_v63, %v1448_v55  ;;  %v1194_v58 = vpop.f32.mrb[121].mxu0  ;;  %v1450_v59 = vpop.f32.mrb[121].mxu1 }
 0x206   :  { %v1195_v60 = vpop.f32.mrb[122].mxu0  ;;  %v1451_v61 = vpop.f32.mrb[122].mxu1 }
 0x207   :  { %v1196_v62 = vadd.f32 %v3994_v63, %v1195_v60  ;;  %v1452_v0 = vadd.f32 %v3994_v63, %v1451_v61  ;;  %v1197_v1 = vpop.f32.mrb[123].mxu0  ;;  %v1453_v2 = vpop.f32.mrb[123].mxu1  ;;  %v1523_v3 = vmax.f32 %v1193_v56, 0.0  ;;  %v1587_v4 = vmax.f32 %v1449_v57, 0.0 }
 0x209   :  { %v1524_v5 = vmax.f32 %v1196_v62, 0.0  ;;  %v1588_v6 = vmax.f32 %v1452_v0, 0.0 }
 0x20b   :  { %v2789_v7 = vpack.c.bf16 %v1524_v5, %v1523_v3  ;;  %v2949_v8 = vpack.c.bf16 %v1588_v6, %v1587_v4 }
 0x20c   :  { %v1200_v9 = vpop.f32.mrb[124].mxu0  ;;  %v1456_v10 = vpop.f32.mrb[124].mxu1 }
 0x20d   :  { %2985 = vst [vmem:[%s4079_s3 + $0xf0] sm:$0xff] %v2789_v7   ;;  %3017 = vst [vmem:[%s4079_s3 + $0x1f0] sm:$0xff] %v2949_v8   ;;  %v1201_v11 = vadd.f32 %v3994_v63, %v1200_v9  ;;  %v1457_v12 = vadd.f32 %v3994_v63, %v1456_v10  ;;  %v1202_v13 = vpop.f32.mrb[125].mxu0  ;;  %v1458_v14 = vpop.f32.mrb[125].mxu1 }
 0x20e   :  { %v1203_v15 = vpop.f32.mrb[126].mxu0  ;;  %v1459_v16 = vpop.f32.mrb[126].mxu1 }
 0x20f   :  { %v1204_v17 = vadd.f32 %v3994_v63, %v1203_v15  ;;  %v1460_v18 = vadd.f32 %v3994_v63, %v1459_v16  ;;  %v1205_v19 = vpop.f32.mrb[127].mxu0  ;;  %v1461_v20 = vpop.f32.mrb[127].mxu1  ;;  %v1525_v21 = vmax.f32 %v1201_v11, 0.0  ;;  %v1589_v22 = vmax.f32 %v1457_v12, 0.0 }
 0x211   :  { %v1526_v23 = vmax.f32 %v1204_v17, 0.0  ;;  %v1590_v24 = vmax.f32 %v1460_v18, 0.0 }
 0x213   :  { %v2794_v25 = vpack.c.bf16 %v1526_v23, %v1525_v21  ;;  %v2954_v26 = vpack.c.bf16 %v1590_v24, %v1589_v22 }
 0x215   :  { %2986 = vst [vmem:[%s4079_s3 + $0xf8] sm:$0xff] %v2794_v25   ;;  %3018 = vst [vmem:[%s4079_s3 + $0x1f8] sm:$0xff] %v2954_v26  }

// kernel: a_call__.4
= control target key start
LH: loop header
LB: loop body
LE: loop exit
PB: predicated region body
PF: predicated region fallthrough
CT: control target
= control target key end

     0   :  { %s8104_s1 = inlined_call_operand.vmem [shape: bf16[3456,128], index: 1, kind: input, shape index: {}]   ;;  %s8105_s0 = inlined_call_operand.vmem [shape: bf16[128,3456], index: 0, kind: input, shape index: {}]   ;;  %s8106_s2 = inlined_call_operand.vmem [shape: f32[1,128], index: 2, kind: input, shape index: {}]   ;;  %s8107_s3 = inlined_call_operand.vmem [shape: bf16[128,128], index: 3, kind: output, shape index: {}]  }
   0x1   :  { %v5912_v0 = vld [vmem:[%s8104_s1 + $0x40] sm:$0xff]   ;;  %v5916_v4 = vld [vmem:[%s8104_s1 + $0x48] sm:$0xff]   ;;  %v5920_v8 = vld [vmem:[%s8104_s1 + $0x50] sm:$0xff]  }
   0x2   :  { %v5913_v1 = vld [vmem:[%s8104_s1] sm:$0xff]   ;;  %5032 = vmatprep.subr.bf16.mxu0 %v5912_v0  ;;  %v5917_v5 = vld [vmem:[%s8104_s1 + $0x8] sm:$0xff]   ;;  %v5921_v9 = vld [vmem:[%s8104_s1 + $0x10] sm:$0xff]  }
   0x3   :  { %v5914_v2 = vld [vmem:[%s8104_s1 + $0xc0] sm:$0xff]   ;;  %5033 = vmatpush3.bf16.msra.mxu0 %v5913_v1  ;;  %v5918_v6 = vld [vmem:[%s8104_s1 + $0xc8] sm:$0xff]   ;;  %v5922_v10 = vld [vmem:[%s8104_s1 + $0xd0] sm:$0xff]  }
   0x4   :  { %v5915_v3 = vld [vmem:[%s8104_s1 + $0x80] sm:$0xff]   ;;  %5096 = vmatprep.subr.bf16.mxu1 %v5914_v2  ;;  %5034 = vmatprep.subr.bf16.mxu0 %v5916_v4  ;;  %v5919_v7 = vld [vmem:[%s8104_s1 + $0x88] sm:$0xff]   ;;  %v5923_v11 = vld [vmem:[%s8104_s1 + $0x90] sm:$0xff]  }
   0x5   :  { %5097 = vmatpush3.bf16.msra.mxu1 %v5915_v3  ;;  %v5924_v12 = vld [vmem:[%s8104_s1 + $0x58] sm:$0xff]   ;;  %v5928_v16 = vld [vmem:[%s8104_s1 + $0x60] sm:$0xff]   ;;  %v5932_v20 = vld [vmem:[%s8104_s1 + $0x68] sm:$0xff]  }
   0x6   :  { %5098 = vmatprep.subr.bf16.mxu1 %v5918_v6  ;;  %v5925_v13 = vld [vmem:[%s8104_s1 + $0x18] sm:$0xff]   ;;  %v5929_v17 = vld [vmem:[%s8104_s1 + $0x20] sm:$0xff]   ;;  %v5933_v21 = vld [vmem:[%s8104_s1 + $0x28] sm:$0xff]  }
   0x7   :  { %5035 = vmatpush3.bf16.msra.mxu0 %v5917_v5  ;;  %v5926_v14 = vld [vmem:[%s8104_s1 + $0xd8] sm:$0xff]   ;;  %v5930_v18 = vld [vmem:[%s8104_s1 + $0xe0] sm:$0xff]   ;;  %v5934_v22 = vld [vmem:[%s8104_s1 + $0xe8] sm:$0xff]  }
   0x8   :  { %5036 = vmatprep.subr.bf16.mxu0 %v5920_v8  ;;  %v5927_v15 = vld [vmem:[%s8104_s1 + $0x98] sm:$0xff]   ;;  %v5931_v19 = vld [vmem:[%s8104_s1 + $0xa0] sm:$0xff]   ;;  %v5935_v23 = vld [vmem:[%s8104_s1 + $0xa8] sm:$0xff]  }
   0x9   :  { %5099 = vmatpush3.bf16.msra.mxu1 %v5919_v7  ;;  %v5936_v24 = vld [vmem:[%s8104_s1 + $0x70] sm:$0xff]   ;;  %v5940_v28 = vld [vmem:[%s8104_s1 + $0x78] sm:$0xff]   ;;  %v5943_v31 = vld [vmem:[%s8105_s0] ss:$108 sps:$4 sm:$0xff]  }
   0xa   :  { %5100 = vmatprep.subr.bf16.mxu1 %v5922_v10  ;;  %v5937_v25 = vld [vmem:[%s8104_s1 + $0x30] sm:$0xff]   ;;  %v5941_v29 = vld [vmem:[%s8104_s1 + $0x38] sm:$0xff]   ;;  %v5947_v34 = vld [vmem:[%s8104_s1 + $0x140] sm:$0xff]  }
   0xb   :  { %5037 = vmatpush3.bf16.msra.mxu0 %v5921_v9  ;;  %v5938_v26 = vld [vmem:[%s8104_s1 + $0xf0] sm:$0xff]   ;;  %v5942_v30 = vld [vmem:[%s8104_s1 + $0xf8] sm:$0xff]   ;;  %v5951_v37 = vld [vmem:[%s8104_s1 + $0x100] sm:$0xff]  }
   0xc   :  { %5038 = vmatprep.subr.bf16.mxu0 %v5924_v12  ;;  %v5939_v27 = vld [vmem:[%s8104_s1 + $0xb0] sm:$0xff]   ;;  %v5946_v33 = vld [vmem:[%s8104_s1 + $0xb8] sm:$0xff]   ;;  %v5955_v40 = vld [vmem:[%s8104_s1 + $0x148] sm:$0xff]  }
   0xd   :  { %5101 = vmatpush3.bf16.msra.mxu1 %v5923_v11  ;;  %v5945_v32 = vld [vmem:[%s8105_s0 + $0x4] ss:$108 sps:$4 sm:$0xff]   ;;  %v5948_v35 = vld [vmem:[%s8105_s0 + $0x8] ss:$108 sps:$4 sm:$0xff]   ;;  %v5950_v36 = vld [vmem:[%s8105_s0 + $0xc] ss:$108 sps:$4 sm:$0xff]  }
   0xe   :  { %5102 = vmatprep.subr.bf16.mxu1 %v5926_v14  ;;  %3094 = vmatprep.mubr.bf16.mxu0 %v5945_v32  ;;  %v5952_v38 = vld [vmem:[%s8105_s0 + $0xdc] ss:$108 sps:$4 sm:$0xff]   ;;  %v5954_v39 = vld [vmem:[%s8105_s0 + $0xd8] ss:$108 sps:$4 sm:$0xff]   ;;  %v5959_v43 = vld [vmem:[%s8105_s0 + $0xe0] ss:$108 sps:$4 sm:$0xff]  }
   0xf   :  { %5039 = vmatpush3.bf16.msra.mxu0 %v5925_v13  ;;  %3191 = vmatprep.mubr.bf16.mxu1 %v5950_v36  ;;  %v5956_v41 = vld [vmem:[%s8105_s0 + $0xe4] ss:$108 sps:$4 sm:$0xff]   ;;  %v5958_v42 = vld [vmem:[%s8104_s1 + $0x108] sm:$0xff]   ;;  %v5960_v44 = vld [vmem:[%s8105_s0 + $0x1b4] ss:$108 sps:$4 sm:$0xff]  }
  0x10   :  { %5040 = vmatprep.subr.bf16.mxu0 %v5928_v16  ;;  %v5963_v45 = vld [vmem:[%s8104_s1 + $0x150] sm:$0xff]   ;;  %v5964_v46 = vld [vmem:[%s8105_s0 + $0x1bc] ss:$108 sps:$4 sm:$0xff]   ;;  %v5968_v49 = vld [vmem:[%s8105_s0 + $0x28c] ss:$108 sps:$4 sm:$0xff]  }
  0x11   :  { %5103 = vmatpush3.bf16.msra.mxu1 %v5927_v15  ;;  %v5966_v47 = vld [vmem:[%s8104_s1 + $0x110] sm:$0xff]   ;;  %v5971_v50 = vld [vmem:[%s8104_s1 + $0x158] sm:$0xff]   ;;  %v5979_v54 = vld [vmem:[%s8104_s1 + $0x160] sm:$0xff]  }
  0x12   :  { %5104 = vmatprep.subr.bf16.mxu1 %v5930_v18  ;;  %v5962_v48 = vld [vmem:[%s8105_s0 + $0x1b0] ss:$108 sps:$4 sm:$0xff]   ;;  %v5967_v51 = vld [vmem:[%s8105_s0 + $0x1b8] ss:$108 sps:$4 sm:$0xff]   ;;  %v5972_v53 = vld [vmem:[%s8105_s0 + $0x294] ss:$108 sps:$4 sm:$0xff]  }
  0x13   :  { %5041 = vmatpush3.bf16.msra.mxu0 %v5929_v17  ;;  %v5974_v52 = vld [vmem:[%s8104_s1 + $0x118] sm:$0xff]   ;;  %v5970_v55 = vld [vmem:[%s8105_s0 + $0x288] ss:$108 sps:$4 sm:$0xff]   ;;  %v5982_v56 = vld [vmem:[%s8104_s1 + $0x120] sm:$0xff]  }
  0x14   :  { %5042 = vmatprep.subr.bf16.mxu0 %v5932_v20  ;;  %v5976_v57 = vld [vmem:[%s8105_s0 + $0x364] ss:$108 sps:$4 sm:$0xff]   ;;  %v5986_v61 = vld [vmem:[%s8104_s1 + $0x1c8] sm:$0xff]   ;;  %v5998_v7 = vld [vmem:[%s8104_s1 + $0x1d8] sm:$0xff]  }
  0x15   :  { %5105 = vmatpush3.bf16.msra.mxu1 %v5931_v19  ;;  %v5975_v58 = vld [vmem:[%s8105_s0 + $0x290] ss:$108 sps:$4 sm:$0xff]   ;;  %v5984_v59 = vld [vmem:[%s8104_s1 + $0x1c0] sm:$0xff]   ;;  %v5980_v62 = vld [vmem:[%s8105_s0 + $0x36c] ss:$108 sps:$4 sm:$0xff]  }
  0x16   :  { %5106 = vmatprep.subr.bf16.mxu1 %v5934_v22  ;;  %v5985_v60 = vld [vmem:[%s8104_s1 + $0x180] sm:$0xff]   ;;  %v5989_v63 = vld [vmem:[%s8104_s1 + $0x188] sm:$0xff]   ;;  %v5996_v5 = vld [vmem:[%s8104_s1 + $0x1d0] sm:$0xff]  }
  0x17   :  { %5043 = vmatpush3.bf16.msra.mxu0 %v5933_v21  ;;  %v5991_v0 = vld [vmem:[%s8104_s1 + $0x168] sm:$0xff]   ;;  %v5997_v6 = vld [vmem:[%s8104_s1 + $0x190] sm:$0xff]   ;;  %v6001_v9 = vld [vmem:[%s8104_s1 + $0x198] sm:$0xff]  }
  0x18   :  { %5044 = vmatprep.subr.bf16.mxu0 %v5936_v24  ;;  %v5978_v1 = vld [vmem:[%s8105_s0 + $0x360] ss:$108 sps:$4 sm:$0xff]   ;;  %v5987_v2 = vld [vmem:[%s8105_s0 + $0x43c] ss:$108 sps:$4 sm:$0xff]   ;;  %v5992_v8 = vld [vmem:[%s8105_s0 + $0x444] ss:$108 sps:$4 sm:$0xff]  }
  0x19   :  { %5107 = vmatpush3.bf16.msra.mxu1 %v5935_v23  ;;  %v5994_v3 = vld [vmem:[%s8104_s1 + $0x128] sm:$0xff]   ;;  %v6003_v10 = vld [vmem:[%s8104_s1 + $0x170] sm:$0xff]   ;;  %v5990_v11 = vld [vmem:[%s8105_s0 + $0x438] ss:$108 sps:$4 sm:$0xff]  }
  0x1a   :  { %5108 = vmatprep.subr.bf16.mxu1 %v5938_v26  ;;  %v5983_v4 = vld [vmem:[%s8105_s0 + $0x368] ss:$108 sps:$4 sm:$0xff]   ;;  %v5995_v12 = vld [vmem:[%s8105_s0 + $0x440] ss:$108 sps:$4 sm:$0xff]   ;;  %v6002_v19 = vld [vmem:[%s8105_s0 + $0x510] ss:$108 sps:$4 sm:$0xff]  }
  0x1b   :  { %5045 = vmatpush3.bf16.msra.mxu0 %v5937_v25  ;;  %v5999_v13 = vld [vmem:[%s8105_s0 + $0x514] ss:$108 sps:$4 sm:$0xff]   ;;  %v6004_v15 = vld [vmem:[%s8105_s0 + $0x51c] ss:$108 sps:$4 sm:$0xff]   ;;  %v6011_v22 = vld [vmem:[%s8105_s0 + $0x5ec] ss:$108 sps:$4 sm:$0xff]  }
  0x1c   :  { %5046 = vmatprep.subr.bf16.mxu0 %v5940_v28  ;;  %v6006_v14 = vld [vmem:[%s8104_s1 + $0x130] sm:$0xff]   ;;  %v6008_v16 = vld [vmem:[%s8104_s1 + $0x1e0] sm:$0xff]   ;;  %v6010_v18 = vld [vmem:[%s8104_s1 + $0x1e8] sm:$0xff]  }
  0x1d   :  { %5109 = vmatpush3.bf16.msra.mxu1 %v5939_v27  ;;  %v6009_v17 = vld [vmem:[%s8104_s1 + $0x1a0] sm:$0xff]   ;;  %v6013_v20 = vld [vmem:[%s8104_s1 + $0x1a8] sm:$0xff]   ;;  %v6015_v21 = vld [vmem:[%s8104_s1 + $0x178] sm:$0xff]  }
  0x1e   :  { %5110 = vmatprep.subr.bf16.mxu1 %v5942_v30  ;;  %v6007_v23 = vld [vmem:[%s8105_s0 + $0x518] ss:$108 sps:$4 sm:$0xff]   ;;  %v6016_v25 = vld [vmem:[%s8105_s0 + $0x5f4] ss:$108 sps:$4 sm:$0xff]  }
  0x1f   :  { %5047 = vmatpush3.bf16.msra.mxu0 %v5941_v29  ;;  %v6018_v24 = vld [vmem:[%s8104_s1 + $0x138] sm:$0xff]   ;;  %v6020_v26 = vld [vmem:[%s8104_s1 + $0x1f0] sm:$0xff]   ;;  %v6031_v36 = vld [vmem:[%s8104_s1 + $0x200] sm:$0xff]  }
  0x20   :  { %5160 = vmatprep.subr.bf16.mxu0 %v5947_v34  ;;  %v6021_v27 = vld [vmem:[%s8104_s1 + $0x1b0] sm:$0xff]   ;;  %v6022_v28 = vld [vmem:[%s8104_s1 + $0x1f8] sm:$0xff]  }
  0x21   :  { %5111 = vmatpush3.bf16.msra.mxu1 %v5946_v33  ;;  %v6014_v29 = vld [vmem:[%s8105_s0 + $0x5e8] ss:$108 sps:$4 sm:$0xff]   ;;  %v6026_v30 = vld [vmem:[%s8104_s1 + $0x1b8] sm:$0xff]  }
  0x22   :  { %3095 = vmatmul.mubr.bf16.vlgmr.msra.gmra.mrb[0].mxu0 %v5943_v31  ;;  %5224 = vmatprep.subr.bf16.mxu1 %v5984_v59  ;;  %v6027_v31 = vld [vmem:[%s8104_s1 + $0x240] sm:$0xff]   ;;  %v6019_v33 = vld [vmem:[%s8105_s0 + $0x5f0] ss:$108 sps:$4 sm:$0xff]   ;;  %v6071_v59 = vld [vmem:[%s8104_s1 + $0x268] sm:$0xff]  }
  0x23   :  { %5161 = vmatpush3.bf16.msra.mxu0 %v5951_v37  ;;  %3102 = vmatprep.mubr.bf16.mxu0 %v5952_v38  ;;  %v6025_v32 = vld [vmem:[%s8105_s0 + $0x14] ss:$108 sps:$4 sm:$0xff]   ;;  %v6030_v34 = vld [vmem:[%s8105_s0 + $0x1c] ss:$108 sps:$4 sm:$0xff]   ;;  %v6032_v37 = vld [vmem:[%s8105_s0 + $0xec] ss:$108 sps:$4 sm:$0xff]  }
  0x24   :  { %3192 = vmatmul.mubr.bf16.vlgmr.msra.gmra.mrb[0].mxu1 %v5948_v35  ;;  %5162 = vmatprep.subr.bf16.mxu0 %v5955_v40  ;;  %v6023_v35 = vld [vmem:[%s8105_s0 + $0x10] ss:$108 sps:$4 sm:$0xff]   ;;  %v6035_v38 = vld [vmem:[%s8104_s1 + $0x248] sm:$0xff]   ;;  %v6036_v40 = vld [vmem:[%s8105_s0 + $0xf4] ss:$108 sps:$4 sm:$0xff]  }
  0x25   :  { %3199 = vmatprep.mubr.bf16.mxu1 %v5956_v41  ;;  %5225 = vmatpush3.bf16.msra.mxu1 %v5985_v60  ;;  %v6038_v41 = vld [vmem:[%s8104_s1 + $0x208] sm:$0xff]   ;;  %v6052_v60 = vld [vmem:[%s8105_s0 + $0x2a4] ss:$108 sps:$4 sm:$0xff]  }
  0x26   :  { %5226 = vmatprep.subr.bf16.mxu1 %v5986_v61  ;;  %v6074_v61 = vld [vmem:[%s8104_s1 + $0x228] sm:$0xff]  }
  0x27   :  { %5163 = vmatpush3.bf16.msra.mxu0 %v5958_v42  ;;  %v6043_v42 = vld [vmem:[%s8104_s1 + $0x250] sm:$0xff]  }
  0x28   :  { %5164 = vmatprep.subr.bf16.mxu0 %v5963_v45  ;;  %v6046_v45 = vld [vmem:[%s8104_s1 + $0x210] sm:$0xff]  }
  0x29   :  { %5227 = vmatpush3.bf16.msra.mxu1 %v5989_v63  ;;  %v6056_v63 = vld [vmem:[%s8105_s0 + $0x374] ss:$108 sps:$4 sm:$0xff]  }
  0x2a   :  { %3103 = vmatmul.mubr.bf16.gmra.mrb[4].mxu0 %v5954_v39  ;;  %5228 = vmatprep.subr.bf16.mxu1 %v5996_v5  ;;  %v6028_v39 = vld [vmem:[%s8105_s0 + $0x18] ss:$108 sps:$4 sm:$0xff]  }
  0x2b   :  { %3110 = vmatprep.mubr.bf16.mxu0 %v5960_v44  ;;  %5165 = vmatpush3.bf16.msra.mxu0 %v5966_v47  ;;  %v6040_v44 = vld [vmem:[%s8105_s0 + $0x1c4] ss:$108 sps:$4 sm:$0xff]   ;;  %v6081_v5 = vld [vmem:[%s8104_s1 + $0x298] sm:$0xff]  }
  0x2c   :  { %3200 = vmatmul.mubr.bf16.gmra.mrb[4].mxu1 %v5959_v43  ;;  %5166 = vmatprep.subr.bf16.mxu0 %v5971_v50  ;;  %v6034_v43 = vld [vmem:[%s8105_s0 + $0xe8] ss:$108 sps:$4 sm:$0xff]   ;;  %v6039_v47 = vld [vmem:[%s8105_s0 + $0xf0] ss:$108 sps:$4 sm:$0xff]   ;;  %v6059_v50 = vld [vmem:[%s8104_s1 + $0x260] sm:$0xff]  }
  0x2d   :  { %3207 = vmatprep.mubr.bf16.mxu1 %v5964_v46  ;;  %5229 = vmatpush3.bf16.msra.mxu1 %v5997_v6  ;;  %v6051_v46 = vld [vmem:[%s8104_s1 + $0x258] sm:$0xff]   ;;  %v6083_v6 = vld [vmem:[%s8104_s1 + $0x270] sm:$0xff]  }
  0x2e   :  { %5230 = vmatprep.subr.bf16.mxu1 %v5998_v7  ;;  %v6058_v7 = vld [vmem:[%s8105_s0 + $0x370] ss:$108 sps:$4 sm:$0xff]  }
  0x2f   :  { %5167 = vmatpush3.bf16.msra.mxu0 %v5974_v52  ;;  %v6064_v52 = vld [vmem:[%s8104_s1 + $0x2c0] sm:$0xff]  }
  0x30   :  { %5168 = vmatprep.subr.bf16.mxu0 %v5979_v54  ;;  %v6065_v54 = vld [vmem:[%s8104_s1 + $0x280] sm:$0xff]  }
  0x31   :  { %5231 = vmatpush3.bf16.msra.mxu1 %v6001_v9  ;;  %v6067_v9 = vld [vmem:[%s8105_s0 + $0x44c] ss:$108 sps:$4 sm:$0xff]  }
  0x32   :  { %3111 = vmatmul.mubr.bf16.gmra.mrb[8].mxu0 %v5962_v48  ;;  %5232 = vmatprep.subr.bf16.mxu1 %v6008_v16  ;;  %v6044_v48 = vld [vmem:[%s8105_s0 + $0x1cc] ss:$108 sps:$4 sm:$0xff]  }
  0x33   :  { %3118 = vmatprep.mubr.bf16.mxu0 %v5968_v49  ;;  %5169 = vmatpush3.bf16.msra.mxu0 %v5982_v56  ;;  %v6054_v49 = vld [vmem:[%s8104_s1 + $0x218] sm:$0xff]   ;;  %v6062_v56 = vld [vmem:[%s8104_s1 + $0x220] sm:$0xff]  }
  0x34   :  { %3208 = vmatmul.mubr.bf16.gmra.mrb[8].mxu1 %v5967_v51  ;;  %5170 = vmatprep.subr.bf16.mxu0 %v5991_v0  ;;  %v6042_v51 = vld [vmem:[%s8105_s0 + $0x1c0] ss:$108 sps:$4 sm:$0xff]   ;;  %v6076_v0 = vld [vmem:[%s8104_s1 + $0x2d0] sm:$0xff]   ;;  %v6095_v16 = vld [vmem:[%s8104_s1 + $0x278] sm:$0xff]  }
  0x35   :  { %3215 = vmatprep.mubr.bf16.mxu1 %v5972_v53  ;;  %5233 = vmatpush3.bf16.msra.mxu1 %v6009_v17  ;;  %v6048_v53 = vld [vmem:[%s8105_s0 + $0x29c] ss:$108 sps:$4 sm:$0xff]  }
  0x36   :  { %5234 = vmatprep.subr.bf16.mxu1 %v6010_v18  ;;  %v6070_v17 = vld [vmem:[%s8105_s0 + $0x448] ss:$108 sps:$4 sm:$0xff]   ;;  %v6079_v18 = vld [vmem:[%s8105_s0 + $0x524] ss:$108 sps:$4 sm:$0xff]  }
  0x37   :  { %5171 = vmatpush3.bf16.msra.mxu0 %v5994_v3  ;;  %v6055_v3 = vld [vmem:[%s8105_s0 + $0x2a0] ss:$108 sps:$4 sm:$0xff]  }
  0x38   :  { %5172 = vmatprep.subr.bf16.mxu0 %v6003_v10  ;;  %v6088_v10 = vld [vmem:[%s8104_s1 + $0x2e0] sm:$0xff]  }
  0x39   :  { %5235 = vmatpush3.bf16.msra.mxu1 %v6013_v20  ;;  %v6100_v20 = vld [vmem:[%s8104_s1 + $0x2f0] sm:$0xff]  }
  0x3a   :  { %3119 = vmatmul.mubr.bf16.gmra.mrb[12].mxu0 %v5970_v55  ;;  %5236 = vmatprep.subr.bf16.mxu1 %v6020_v26  ;;  %v6066_v55 = vld [vmem:[%s8104_s1 + $0x2c8] sm:$0xff]   ;;  %v6107_v26 = vld [vmem:[%s8104_s1 + $0x340] sm:$0xff]  }
  0x3b   :  { %3126 = vmatprep.mubr.bf16.mxu0 %v5976_v57  ;;  %5173 = vmatpush3.bf16.msra.mxu0 %v6006_v14  ;;  %v6047_v57 = vld [vmem:[%s8105_s0 + $0x1c8] ss:$108 sps:$4 sm:$0xff]  }
  0x3c   :  { %3216 = vmatmul.mubr.bf16.gmra.mrb[12].mxu1 %v5975_v58  ;;  %5174 = vmatprep.subr.bf16.mxu0 %v6015_v21  ;;  %v6069_v58 = vld [vmem:[%s8104_s1 + $0x288] sm:$0xff]   ;;  %v6101_v21 = vld [vmem:[%s8104_s1 + $0x2b0] sm:$0xff]  }
  0x3d   :  { %3223 = vmatprep.mubr.bf16.mxu1 %v5980_v62  ;;  %5237 = vmatpush3.bf16.msra.mxu1 %v6021_v27  ;;  %v6050_v62 = vld [vmem:[%s8105_s0 + $0x298] ss:$108 sps:$4 sm:$0xff]   ;;  %v6093_v14 = vld [vmem:[%s8104_s1 + $0x2a8] sm:$0xff]  }
  0x3e   :  { %5238 = vmatprep.subr.bf16.mxu1 %v6022_v28  ;;  %v6082_v27 = vld [vmem:[%s8105_s0 + $0x520] ss:$108 sps:$4 sm:$0xff]   ;;  %v6091_v28 = vld [vmem:[%s8105_s0 + $0x5fc] ss:$108 sps:$4 sm:$0xff]  }
  0x3f   :  { %5175 = vmatpush3.bf16.msra.mxu0 %v6018_v24  ;;  %v6084_v24 = vld [vmem:[%s8105_s0 + $0x52c] ss:$108 sps:$4 sm:$0xff]  }
  0x40   :  { %5288 = vmatprep.subr.bf16.mxu0 %v6027_v31  ;;  %v6094_v31 = vld [vmem:[%s8105_s0 + $0x5f8] ss:$108 sps:$4 sm:$0xff]  }
  0x41   :  { %5239 = vmatpush3.bf16.msra.mxu1 %v6026_v30  ;;  %v6096_v30 = vld [vmem:[%s8105_s0 + $0x604] ss:$108 sps:$4 sm:$0xff]  }
  0x42   :  { %3127 = vmatmul.mubr.bf16.gmra.mrb[16].mxu0 %v5978_v1  ;;  %5352 = vmatprep.subr.bf16.mxu1 %v6064_v52  ;;  %v6077_v1 = vld [vmem:[%s8104_s1 + $0x290] sm:$0xff]   ;;  %v6124_v52 = vld [vmem:[%s8105_s0 + $0x1dc] ss:$108 sps:$4 sm:$0xff]  }
  0x43   :  { %3134 = vmatprep.mubr.bf16.mxu0 %v5987_v2  ;;  %v6078_v2 = vld [vmem:[%s8104_s1 + $0x2d8] sm:$0xff]  }
  0x44   :  { %3224 = vmatmul.mubr.bf16.gmra.mrb[16].mxu1 %v5983_v4  ;;  %v6060_v4 = vld [vmem:[%s8105_s0 + $0x37c] ss:$108 sps:$4 sm:$0xff]  }
  0x45   :  { %3231 = vmatprep.mubr.bf16.mxu1 %v5992_v8  ;;  %v6086_v8 = vld [vmem:[%s8104_s1 + $0x230] sm:$0xff]  }
  0x4a   :  { %3135 = vmatmul.mubr.bf16.gmra.mrb[20].mxu0 %v5990_v11  ;;  %v6089_v11 = vld [vmem:[%s8104_s1 + $0x2a0] sm:$0xff]  }
  0x4b   :  { %3142 = vmatprep.mubr.bf16.mxu0 %v5999_v13  ;;  %v6063_v13 = vld [vmem:[%s8105_s0 + $0x378] ss:$108 sps:$4 sm:$0xff]  }
  0x4c   :  { %3232 = vmatmul.mubr.bf16.gmra.mrb[20].mxu1 %v5995_v12  ;;  %v6090_v12 = vld [vmem:[%s8104_s1 + $0x2e8] sm:$0xff]  }
  0x4d   :  { %3239 = vmatprep.mubr.bf16.mxu1 %v6004_v15  ;;  %v6072_v15 = vld [vmem:[%s8105_s0 + $0x454] ss:$108 sps:$4 sm:$0xff]  }
  0x52   :  { %3143 = vmatmul.mubr.bf16.gmra.mrb[24].mxu0 %v6002_v19  ;;  %v6098_v19 = vld [vmem:[%s8104_s1 + $0x238] sm:$0xff]  }
  0x53   :  { %3150 = vmatprep.mubr.bf16.mxu0 %v6011_v22  ;;  %v6102_v22 = vld [vmem:[%s8104_s1 + $0x2f8] sm:$0xff]  }
  0x54   :  { %3240 = vmatmul.mubr.bf16.gmra.mrb[24].mxu1 %v6007_v23  ;;  %v6075_v23 = vld [vmem:[%s8105_s0 + $0x450] ss:$108 sps:$4 sm:$0xff]  }
  0x55   :  { %3247 = vmatprep.mubr.bf16.mxu1 %v6016_v25  ;;  %v6106_v25 = vld [vmem:[%s8104_s1 + $0x2b8] sm:$0xff]  }
  0x5a   :  { %3151 = vmatmul.mubr.bf16.gmra.mrb[28].mxu0 %v6014_v29  ;;  %v6087_v29 = vld [vmem:[%s8105_s0 + $0x528] ss:$108 sps:$4 sm:$0xff]  }
  0x5b   :  { %3288 = vmatprep.mubr.bf16.mxu0 %v6025_v32  ;;  %v6105_v32 = vld [vmem:[%s8105_s0 + $0x24] ss:$108 sps:$4 sm:$0xff]  }
  0x5c   :  { %3248 = vmatmul.mubr.bf16.gmra.mrb[28].mxu1 %v6019_v33  ;;  %v6099_v33 = vld [vmem:[%s8105_s0 + $0x600] ss:$108 sps:$4 sm:$0xff]  }
  0x5d   :  { %3385 = vmatprep.mubr.bf16.mxu1 %v6030_v34  ;;  %v6110_v34 = vld [vmem:[%s8105_s0 + $0x2c] ss:$108 sps:$4 sm:$0xff]  }
  0x62   :  { %3289 = vmatmul.mubr.bf16.vlgmr.msra.gmra.mrb[32].mxu0 %v6023_v35  ;;  %v6103_v35 = vld [vmem:[%s8105_s0 + $0x20] ss:$108 sps:$4 sm:$0xff]  }
  0x63   :  { %5289 = vmatpush3.bf16.msra.mxu0 %v6031_v36  ;;  %3296 = vmatprep.mubr.bf16.mxu0 %v6032_v37  ;;  %v6111_v36 = vld [vmem:[%s8104_s1 + $0x300] sm:$0xff]   ;;  %v6108_v37 = vld [vmem:[%s8105_s0 + $0x28] ss:$108 sps:$4 sm:$0xff]  }
  0x64   :  { %5290 = vmatprep.subr.bf16.mxu0 %v6035_v38  ;;  %3386 = vmatmul.mubr.bf16.vlgmr.msra.gmra.mrb[32].mxu1 %v6028_v39  ;;  %v6112_v38 = vld [vmem:[%s8105_s0 + $0xfc] ss:$108 sps:$4 sm:$0xff]  }
  0x65   :  { %3393 = vmatprep.mubr.bf16.mxu1 %v6036_v40  ;;  %5353 = vmatpush3.bf16.msra.mxu1 %v6065_v54  ;;  %v6115_v39 = vld [vmem:[%s8104_s1 + $0x348] sm:$0xff]   ;;  %v6116_v40 = vld [vmem:[%s8105_s0 + $0x104] ss:$108 sps:$4 sm:$0xff]  }
  0x66   :  { %5354 = vmatprep.subr.bf16.mxu1 %v6066_v55  ;;  %v6139_v54 = vld [vmem:[%s8104_s1 + $0x360] sm:$0xff]   ;;  %v6156_v55 = vld [vmem:[%s8104_s1 + $0x3d0] sm:$0xff]  }
  0x67   :  { %5291 = vmatpush3.bf16.msra.mxu0 %v6038_v41  ;;  %v6118_v41 = vld [vmem:[%s8104_s1 + $0x308] sm:$0xff]  }
  0x68   :  { %5292 = vmatprep.subr.bf16.mxu0 %v6043_v42  ;;  %v6144_v42 = vld [vmem:[%s8104_s1 + $0x3c0] sm:$0xff]  }
  0x69   :  { %5355 = vmatpush3.bf16.msra.mxu1 %v6069_v58  ;;  %v6122_v58 = vld [vmem:[%s8105_s0 + $0x1d0] ss:$108 sps:$4 sm:$0xff]  }
  0x6a   :  { %3297 = vmatmul.mubr.bf16.gmra.mrb[36].mxu0 %v6034_v43  ;;  %5356 = vmatprep.subr.bf16.mxu1 %v6076_v0  ;;  %v6145_v43 = vld [vmem:[%s8104_s1 + $0x380] sm:$0xff]   ;;  %v6151_v0 = vld [vmem:[%s8104_s1 + $0x368] sm:$0xff]  }
  0x6b   :  { %3304 = vmatprep.mubr.bf16.mxu0 %v6040_v44  ;;  %5293 = vmatpush3.bf16.msra.mxu0 %v6046_v45  ;;  %v6146_v44 = vld [vmem:[%s8104_s1 + $0x3c8] sm:$0xff]   ;;  %v6114_v45 = vld [vmem:[%s8105_s0 + $0xf8] ss:$108 sps:$4 sm:$0xff]  }
  0x6c   :  { %5294 = vmatprep.subr.bf16.mxu0 %v6051_v46  ;;  %3394 = vmatmul.mubr.bf16.gmra.mrb[36].mxu1 %v6039_v47  ;;  %v6123_v46 = vld [vmem:[%s8104_s1 + $0x350] sm:$0xff]  }
  0x6d   :  { %3401 = vmatprep.mubr.bf16.mxu1 %v6044_v48  ;;  %5357 = vmatpush3.bf16.msra.mxu1 %v6077_v1  ;;  %v6120_v47 = vld [vmem:[%s8105_s0 + $0x1d4] ss:$108 sps:$4 sm:$0xff]   ;;  %v6149_v48 = vld [vmem:[%s8104_s1 + $0x388] sm:$0xff]  }
  0x6e   :  { %5358 = vmatprep.subr.bf16.mxu1 %v6078_v2  ;;  %v6154_v1 = vld [vmem:[%s8104_s1 + $0x328] sm:$0xff]   ;;  %v6163_v2 = vld [vmem:[%s8104_s1 + $0x370] sm:$0xff]  }
  0x6f   :  { %5295 = vmatpush3.bf16.msra.mxu0 %v6054_v49  ;;  %v6119_v49 = vld [vmem:[%s8105_s0 + $0x100] ss:$108 sps:$4 sm:$0xff]  }
  0x70   :  { %5296 = vmatprep.subr.bf16.mxu0 %v6059_v50  ;;  %v6126_v50 = vld [vmem:[%s8104_s1 + $0x310] sm:$0xff]  }
  0x71   :  { %5359 = vmatpush3.bf16.msra.mxu1 %v6081_v5  ;;  %v6169_v5 = vld [vmem:[%s8104_s1 + $0x3a0] sm:$0xff]  }
  0x72   :  { %3305 = vmatmul.mubr.bf16.gmra.mrb[40].mxu0 %v6042_v51  ;;  %5360 = vmatprep.subr.bf16.mxu1 %v6088_v10  ;;  %v6131_v51 = vld [vmem:[%s8104_s1 + $0x358] sm:$0xff]  }
  0x73   :  { %3312 = vmatprep.mubr.bf16.mxu0 %v6048_v53  ;;  %5297 = vmatpush3.bf16.msra.mxu0 %v6062_v56  ;;  %v6134_v53 = vld [vmem:[%s8104_s1 + $0x318] sm:$0xff]   ;;  %v6157_v56 = vld [vmem:[%s8104_s1 + $0x390] sm:$0xff]  }
  0x74   :  { %5298 = vmatprep.subr.bf16.mxu0 %v6071_v59  ;;  %3402 = vmatmul.mubr.bf16.gmra.mrb[40].mxu1 %v6047_v57  ;;  %v6158_v57 = vld [vmem:[%s8104_s1 + $0x3d8] sm:$0xff]  }
  0x75   :  { %3409 = vmatprep.mubr.bf16.mxu1 %v6052_v60  ;;  %5361 = vmatpush3.bf16.msra.mxu1 %v6089_v11  ;;  %v6128_v59 = vld [vmem:[%s8105_s0 + $0x2ac] ss:$108 sps:$4 sm:$0xff]   ;;  %v6135_v11 = vld [vmem:[%s8105_s0 + $0x2b0] ss:$108 sps:$4 sm:$0xff]  }
  0x76   :  { %5362 = vmatprep.subr.bf16.mxu1 %v6090_v12  ;;  %v6161_v60 = vld [vmem:[%s8104_s1 + $0x398] sm:$0xff]  }
  0x77   :  { %5299 = vmatpush3.bf16.msra.mxu0 %v6074_v61  ;;  %v6127_v61 = vld [vmem:[%s8105_s0 + $0x1d8] ss:$108 sps:$4 sm:$0xff]  }
  0x78   :  { %5300 = vmatprep.subr.bf16.mxu0 %v6083_v6  ;;  %v6170_v6 = vld [vmem:[%s8104_s1 + $0x3e8] sm:$0xff]   ;;  %v6175_v10 = vld [vmem:[%s8104_s1 + $0x378] sm:$0xff]  }
  0x79   :  { %5363 = vmatpush3.bf16.msra.mxu1 %v6093_v14  ;;  %v6140_v12 = vld [vmem:[%s8105_s0 + $0x38c] ss:$108 sps:$4 sm:$0xff]   ;;  %v6180_v14 = vld [vmem:[%s8104_s1 + $0x3f0] sm:$0xff]  }
  0x7a   :  { %3313 = vmatmul.mubr.bf16.gmra.mrb[44].mxu0 %v6050_v62  ;;  %5364 = vmatprep.subr.bf16.mxu1 %v6100_v20  ;;  %v6142_v62 = vld [vmem:[%s8104_s1 + $0x320] sm:$0xff]   ;;  %v6186_v20 = vld [vmem:[%s8104_s1 + $0x3b8] sm:$0xff]  }
  0x7b   :  { %3320 = vmatprep.mubr.bf16.mxu0 %v6056_v63  ;;  %5301 = vmatpush3.bf16.msra.mxu0 %v6086_v8  ;;  %v6132_v63 = vld [vmem:[%s8105_s0 + $0x2b4] ss:$108 sps:$4 sm:$0xff]  }
  0x7c   :  { %3410 = vmatmul.mubr.bf16.gmra.mrb[44].mxu1 %v6055_v3  ;;  %5302 = vmatprep.subr.bf16.mxu0 %v6095_v16  ;;  %v6168_v3 = vld [vmem:[%s8104_s1 + $0x3e0] sm:$0xff]   ;;  %v6166_v8 = vld [vmem:[%s8104_s1 + $0x330] sm:$0xff]   ;;  %v6182_v16 = vld [vmem:[%s8104_s1 + $0x3f8] sm:$0xff]  }
  0x7d   :  { %3417 = vmatprep.mubr.bf16.mxu1 %v6060_v4  ;;  %5365 = vmatpush3.bf16.msra.mxu1 %v6101_v21  ;;  %v6130_v4 = vld [vmem:[%s8105_s0 + $0x2a8] ss:$108 sps:$4 sm:$0xff]   ;;  %v6187_v21 = vld [vmem:[%s8104_s1 + $0x440] sm:$0xff]  }
  0x7e   :  { %5366 = vmatprep.subr.bf16.mxu1 %v6102_v22  ;;  %v6152_v22 = vld [vmem:[%s8105_s0 + $0x464] ss:$108 sps:$4 sm:$0xff]  }
  0x7f   :  { %5303 = vmatpush3.bf16.msra.mxu0 %v6098_v19  ;;  %v6147_v19 = vld [vmem:[%s8105_s0 + $0x45c] ss:$108 sps:$4 sm:$0xff]  }
  0x80   :  { %5416 = vmatprep.subr.bf16.mxu0 %v6107_v26  ;;  %v6164_v26 = vld [vmem:[%s8105_s0 + $0x53c] ss:$108 sps:$4 sm:$0xff]  }
  0x81   :  { %5367 = vmatpush3.bf16.msra.mxu1 %v6106_v25  ;;  %v6155_v25 = vld [vmem:[%s8105_s0 + $0x460] ss:$108 sps:$4 sm:$0xff]  }
  0x82   :  { %3321 = vmatmul.mubr.bf16.gmra.mrb[48].mxu0 %v6058_v7  ;;  %5480 = vmatprep.subr.bf16.mxu1 %v6144_v42  ;;  %v6136_v7 = vld [vmem:[%s8105_s0 + $0x384] ss:$108 sps:$4 sm:$0xff]   ;;  %v6198_v42 = vld [vmem:[%s8104_s1 + $0x408] sm:$0xff]  }
  0x83   :  { %3328 = vmatprep.mubr.bf16.mxu0 %v6067_v9  ;;  %v6173_v9 = vld [vmem:[%s8104_s1 + $0x3a8] sm:$0xff]  }
  0x84   :  { %3418 = vmatmul.mubr.bf16.gmra.mrb[48].mxu1 %v6063_v13  ;;  %v6178_v13 = vld [vmem:[%s8104_s1 + $0x338] sm:$0xff]  }
  0x85   :  { %3425 = vmatprep.mubr.bf16.mxu1 %v6072_v15  ;;  %v6181_v15 = vld [vmem:[%s8104_s1 + $0x3b0] sm:$0xff]  }
  0x8a   :  { %3329 = vmatmul.mubr.bf16.gmra.mrb[52].mxu0 %v6070_v17  ;;  %v6138_v17 = vld [vmem:[%s8105_s0 + $0x380] ss:$108 sps:$4 sm:$0xff]  }
  0x8b   :  { %3336 = vmatprep.mubr.bf16.mxu0 %v6079_v18  ;;  %v6143_v18 = vld [vmem:[%s8105_s0 + $0x388] ss:$108 sps:$4 sm:$0xff]  }
  0x8c   :  { %3426 = vmatmul.mubr.bf16.gmra.mrb[52].mxu1 %v6075_v23  ;;  %v6150_v23 = vld [vmem:[%s8105_s0 + $0x458] ss:$108 sps:$4 sm:$0xff]  }
  0x8d   :  { %3433 = vmatprep.mubr.bf16.mxu1 %v6084_v24  ;;  %v6159_v24 = vld [vmem:[%s8105_s0 + $0x534] ss:$108 sps:$4 sm:$0xff]  }
  0x92   :  { %3337 = vmatmul.mubr.bf16.gmra.mrb[56].mxu0 %v6082_v27  ;;  %v6162_v27 = vld [vmem:[%s8105_s0 + $0x530] ss:$108 sps:$4 sm:$0xff]  }
  0x93   :  { %3344 = vmatprep.mubr.bf16.mxu0 %v6091_v28  ;;  %v6171_v28 = vld [vmem:[%s8105_s0 + $0x60c] ss:$108 sps:$4 sm:$0xff]  }
  0x94   :  { %3434 = vmatmul.mubr.bf16.gmra.mrb[56].mxu1 %v6087_v29  ;;  %v6167_v29 = vld [vmem:[%s8105_s0 + $0x538] ss:$108 sps:$4 sm:$0xff]  }
  0x95   :  { %3441 = vmatprep.mubr.bf16.mxu1 %v6096_v30  ;;  %v6176_v30 = vld [vmem:[%s8105_s0 + $0x614] ss:$108 sps:$4 sm:$0xff]  }
  0x9a   :  { %3345 = vmatmul.mubr.bf16.gmra.mrb[60].mxu0 %v6094_v31  ;;  %v6174_v31 = vld [vmem:[%s8105_s0 + $0x608] ss:$108 sps:$4 sm:$0xff]  }
  0x9b   :  { %3482 = vmatprep.mubr.bf16.mxu0 %v6105_v32  ;;  %v6185_v32 = vld [vmem:[%s8105_s0 + $0x34] ss:$108 sps:$4 sm:$0xff]  }
  0x9c   :  { %3442 = vmatmul.mubr.bf16.gmra.mrb[60].mxu1 %v6099_v33  ;;  %v6224_v33 = vld [vmem:[%s8104_s1 + $0x4c0] sm:$0xff]  }
  0x9d   :  { %3579 = vmatprep.mubr.bf16.mxu1 %v6110_v34  ;;  %v6179_v34 = vld [vmem:[%s8105_s0 + $0x610] ss:$108 sps:$4 sm:$0xff]  }
  0xa2   :  { %3483 = vmatmul.mubr.bf16.vlgmr.msra.gmra.mrb[64].mxu0 %v6103_v35  ;;  %v6190_v35 = vld [vmem:[%s8105_s0 + $0x3c] ss:$108 sps:$4 sm:$0xff]  }
  0xa3   :  { %5417 = vmatpush3.bf16.msra.mxu0 %v6111_v36  ;;  %3490 = vmatprep.mubr.bf16.mxu0 %v6112_v38  ;;  %v6183_v36 = vld [vmem:[%s8105_s0 + $0x30] ss:$108 sps:$4 sm:$0xff]   ;;  %v6192_v38 = vld [vmem:[%s8105_s0 + $0x10c] ss:$108 sps:$4 sm:$0xff]  }
  0xa4   :  { %5418 = vmatprep.subr.bf16.mxu0 %v6115_v39  ;;  %3580 = vmatmul.mubr.bf16.vlgmr.msra.gmra.mrb[64].mxu1 %v6108_v37  ;;  %v6191_v37 = vld [vmem:[%s8104_s1 + $0x400] sm:$0xff]  }
  0xa5   :  { %3587 = vmatprep.mubr.bf16.mxu1 %v6116_v40  ;;  %5481 = vmatpush3.bf16.msra.mxu1 %v6145_v43  ;;  %v6188_v39 = vld [vmem:[%s8105_s0 + $0x38] ss:$108 sps:$4 sm:$0xff]   ;;  %v6195_v40 = vld [vmem:[%s8104_s1 + $0x448] sm:$0xff]  }
  0xa6   :  { %5482 = vmatprep.subr.bf16.mxu1 %v6146_v44  ;;  %v6225_v43 = vld [vmem:[%s8104_s1 + $0x480] sm:$0xff]   ;;  %v6226_v44 = vld [vmem:[%s8104_s1 + $0x4c8] sm:$0xff]  }
  0xa7   :  { %5419 = vmatpush3.bf16.msra.mxu0 %v6118_v41  ;;  %v6196_v41 = vld [vmem:[%s8105_s0 + $0x114] ss:$108 sps:$4 sm:$0xff]  }
  0xa8   :  { %5420 = vmatprep.subr.bf16.mxu0 %v6123_v46  ;;  %v6203_v46 = vld [vmem:[%s8104_s1 + $0x450] sm:$0xff]  }
  0xa9   :  { %5483 = vmatpush3.bf16.msra.mxu1 %v6149_v48  ;;  %v6229_v48 = vld [vmem:[%s8104_s1 + $0x488] sm:$0xff]  }
  0xaa   :  { %3491 = vmatmul.mubr.bf16.gmra.mrb[68].mxu0 %v6114_v45  ;;  %5484 = vmatprep.subr.bf16.mxu1 %v6156_v55  ;;  %v6194_v45 = vld [vmem:[%s8105_s0 + $0x108] ss:$108 sps:$4 sm:$0xff]  }
  0xab   :  { %3498 = vmatprep.mubr.bf16.mxu0 %v6120_v47  ;;  %5421 = vmatpush3.bf16.msra.mxu0 %v6126_v50  ;;  %v6200_v47 = vld [vmem:[%s8105_s0 + $0x1e4] ss:$108 sps:$4 sm:$0xff]  }
  0xac   :  { %5422 = vmatprep.subr.bf16.mxu0 %v6131_v51  ;;  %3588 = vmatmul.mubr.bf16.gmra.mrb[68].mxu1 %v6119_v49  ;;  %v6199_v49 = vld [vmem:[%s8105_s0 + $0x110] ss:$108 sps:$4 sm:$0xff]  }
  0xad   :  { %3595 = vmatprep.mubr.bf16.mxu1 %v6124_v52  ;;  %5485 = vmatpush3.bf16.msra.mxu1 %v6157_v56  ;;  %v6206_v50 = vld [vmem:[%s8104_s1 + $0x410] sm:$0xff]   ;;  %v6211_v51 = vld [vmem:[%s8104_s1 + $0x458] sm:$0xff]  }
  0xae   :  { %5486 = vmatprep.subr.bf16.mxu1 %v6158_v57  ;;  %v6204_v52 = vld [vmem:[%s8105_s0 + $0x1ec] ss:$108 sps:$4 sm:$0xff]   ;;  %v6237_v55 = vld [vmem:[%s8104_s1 + $0x490] sm:$0xff]  }
  0xaf   :  { %5423 = vmatpush3.bf16.msra.mxu0 %v6134_v53  ;;  %v6236_v53 = vld [vmem:[%s8104_s1 + $0x4d0] sm:$0xff]   ;;  %v6238_v56 = vld [vmem:[%s8104_s1 + $0x4d8] sm:$0xff]   ;;  %v6202_v57 = vld [vmem:[%s8105_s0 + $0x1e0] ss:$108 sps:$4 sm:$0xff]  }
  0xb0   :  { %5424 = vmatprep.subr.bf16.mxu0 %v6139_v54  ;;  %v6214_v54 = vld [vmem:[%s8104_s1 + $0x418] sm:$0xff]  }
  0xb1   :  { %5487 = vmatpush3.bf16.msra.mxu1 %v6161_v60  ;;  %v6241_v60 = vld [vmem:[%s8104_s1 + $0x498] sm:$0xff]  }
  0xb2   :  { %3499 = vmatmul.mubr.bf16.gmra.mrb[72].mxu0 %v6122_v58  ;;  %5488 = vmatprep.subr.bf16.mxu1 %v6168_v3  ;;  %v6219_v58 = vld [vmem:[%s8104_s1 + $0x460] sm:$0xff]  }
  0xb3   :  { %3506 = vmatprep.mubr.bf16.mxu0 %v6128_v59  ;;  %5425 = vmatpush3.bf16.msra.mxu0 %v6142_v62  ;;  %v6208_v59 = vld [vmem:[%s8105_s0 + $0x2bc] ss:$108 sps:$4 sm:$0xff]   ;;  %v6222_v62 = vld [vmem:[%s8104_s1 + $0x420] sm:$0xff]  }
  0xb4   :  { %5426 = vmatprep.subr.bf16.mxu0 %v6151_v0  ;;  %3596 = vmatmul.mubr.bf16.gmra.mrb[72].mxu1 %v6127_v61  ;;  %v6207_v61 = vld [vmem:[%s8105_s0 + $0x1e8] ss:$108 sps:$4 sm:$0xff]   ;;  %v6249_v3 = vld [vmem:[%s8104_s1 + $0x4a0] sm:$0xff]  }
  0xb5   :  { %3603 = vmatprep.mubr.bf16.mxu1 %v6132_v63  ;;  %5489 = vmatpush3.bf16.msra.mxu1 %v6169_v5  ;;  %v6212_v63 = vld [vmem:[%s8105_s0 + $0x2c4] ss:$108 sps:$4 sm:$0xff]   ;;  %v6231_v0 = vld [vmem:[%s8104_s1 + $0x468] sm:$0xff]   ;;  %v7254_v5 = vld [vmem:[%s8106_s2] ss:$0 sm:$0xff] }
  0xb6   :  { %5490 = vmatprep.subr.bf16.mxu1 %v6170_v6  ;;  %v6210_v6 = vld [vmem:[%s8105_s0 + $0x2b8] ss:$108 sps:$4 sm:$0xff]  }
  0xb7   :  { %5427 = vmatpush3.bf16.msra.mxu0 %v6154_v1  ;;  %v6248_v1 = vld [vmem:[%s8104_s1 + $0x4e0] sm:$0xff]  }
  0xb8   :  { %5428 = vmatprep.subr.bf16.mxu0 %v6163_v2  ;;  %v6234_v2 = vld [vmem:[%s8104_s1 + $0x428] sm:$0xff]  }
  0xb9   :  { %5491 = vmatpush3.bf16.msra.mxu1 %v6173_v9  ;;  %v6216_v9 = vld [vmem:[%s8105_s0 + $0x394] ss:$108 sps:$4 sm:$0xff]  }
  0xba   :  { %3507 = vmatmul.mubr.bf16.gmra.mrb[76].mxu0 %v6130_v4  ;;  %5492 = vmatprep.subr.bf16.mxu1 %v6180_v14  ;;  %v6250_v4 = vld [vmem:[%s8104_s1 + $0x4e8] sm:$0xff]  }
  0xbb   :  { %3514 = vmatprep.mubr.bf16.mxu0 %v6136_v7  ;;  %5429 = vmatpush3.bf16.msra.mxu0 %v6166_v8  ;;  %v6243_v7 = vld [vmem:[%s8104_s1 + $0x470] sm:$0xff]   ;;  %v6215_v14 = vld [vmem:[%s8105_s0 + $0x2c0] ss:$108 sps:$4 sm:$0xff]  }
  0xbc   :  { %5430 = vmatprep.subr.bf16.mxu0 %v6175_v10  ;;  %3604 = vmatmul.mubr.bf16.gmra.mrb[76].mxu1 %v6135_v11  ;;  %v6253_v11 = vld [vmem:[%s8104_s1 + $0x4a8] sm:$0xff]  }
  0xbd   :  { %3611 = vmatprep.mubr.bf16.mxu1 %v6140_v12  ;;  %5493 = vmatpush3.bf16.msra.mxu1 %v6181_v15  ;;  %v6246_v15 = vld [vmem:[%s8104_s1 + $0x430] sm:$0xff]  }
  0xbe   :  { %5494 = vmatprep.subr.bf16.mxu1 %v6182_v16 }
  0xbf   :  { %5431 = vmatpush3.bf16.msra.mxu0 %v6178_v13 }
  0xc0   :  { %5544 = vmatprep.subr.bf16.mxu0 %v6187_v21 }
  0xc1   :  { %5495 = vmatpush3.bf16.msra.mxu1 %v6186_v20 }
  0xc2   :  { %3515 = vmatmul.mubr.bf16.gmra.mrb[80].mxu0 %v6138_v17  ;;  %5608 = vmatprep.subr.bf16.mxu1 %v6224_v33  ;;  %v6218_v33 = vld [vmem:[%s8105_s0 + $0x390] ss:$108 sps:$4 sm:$0xff]  }
  0xc3   :  { %3522 = vmatprep.mubr.bf16.mxu0 %v6147_v19  ;;  %v6260_v19 = vld [vmem:[%s8104_s1 + $0x4f0] sm:$0xff]  }
  0xc4   :  { %3612 = vmatmul.mubr.bf16.gmra.mrb[80].mxu1 %v6143_v18  ;;  %v6255_v18 = vld [vmem:[%s8104_s1 + $0x478] sm:$0xff]  }
  0xc5   :  { %3619 = vmatprep.mubr.bf16.mxu1 %v6152_v22 }
  0xca   :  { %3523 = vmatmul.mubr.bf16.gmra.mrb[84].mxu0 %v6150_v23  ;;  %v6220_v23 = vld [vmem:[%s8105_s0 + $0x39c] ss:$108 sps:$4 sm:$0xff]  }
  0xcb   :  { %3530 = vmatprep.mubr.bf16.mxu0 %v6159_v24 }
  0xcc   :  { %3620 = vmatmul.mubr.bf16.gmra.mrb[84].mxu1 %v6155_v25 }
  0xcd   :  { %3627 = vmatprep.mubr.bf16.mxu1 %v6164_v26  ;;  %v6258_v26 = vld [vmem:[%s8104_s1 + $0x438] sm:$0xff]  }
  0xd2   :  { %3531 = vmatmul.mubr.bf16.gmra.mrb[88].mxu0 %v6162_v27  ;;  %v6261_v27 = vld [vmem:[%s8104_s1 + $0x4b0] sm:$0xff]  }
  0xd3   :  { %3538 = vmatprep.mubr.bf16.mxu0 %v6171_v28 }
  0xd4   :  { %3628 = vmatmul.mubr.bf16.gmra.mrb[88].mxu1 %v6167_v29 }
  0xd5   :  { %3635 = vmatprep.mubr.bf16.mxu1 %v6176_v30  ;;  %v6262_v30 = vld [vmem:[%s8104_s1 + $0x4f8] sm:$0xff]  }
  0xda   :  { %3539 = vmatmul.mubr.bf16.gmra.mrb[92].mxu0 %v6174_v31 }
  0xdb   :  { %3676 = vmatprep.mubr.bf16.mxu0 %v6185_v32 }
  0xdc   :  { %3636 = vmatmul.mubr.bf16.gmra.mrb[92].mxu1 %v6179_v34  ;;  %v6267_v34 = vld [vmem:[%s8104_s1 + $0x540] sm:$0xff]  }
  0xdd   :  { %3773 = vmatprep.mubr.bf16.mxu1 %v6190_v35 }
  0xe2   :  { %3677 = vmatmul.mubr.bf16.vlgmr.msra.gmra.mrb[96].mxu0 %v6183_v36 }
  0xe3   :  { %5545 = vmatpush3.bf16.msra.mxu0 %v6191_v37  ;;  %3684 = vmatprep.mubr.bf16.mxu0 %v6192_v38  ;;  %v6266_v38 = vld [vmem:[%s8104_s1 + $0x4b8] sm:$0xff]  }
  0xe4   :  { %5546 = vmatprep.subr.bf16.mxu0 %v6195_v40  ;;  %3774 = vmatmul.mubr.bf16.vlgmr.msra.gmra.mrb[96].mxu1 %v6188_v39 }
  0xe5   :  { %3781 = vmatprep.mubr.bf16.mxu1 %v6196_v41  ;;  %5609 = vmatpush3.bf16.msra.mxu1 %v6225_v43  ;;  %v6223_v41 = vld [vmem:[%s8105_s0 + $0x398] ss:$108 sps:$4 sm:$0xff]  }
  0xe6   :  { %5610 = vmatprep.subr.bf16.mxu1 %v6226_v44 }
  0xe7   :  { %5547 = vmatpush3.bf16.msra.mxu0 %v6198_v42  ;;  %v6227_v42 = vld [vmem:[%s8105_s0 + $0x46c] ss:$108 sps:$4 sm:$0xff]  }
  0xe8   :  { %5548 = vmatprep.subr.bf16.mxu0 %v6203_v46 }
  0xe9   :  { %5611 = vmatpush3.bf16.msra.mxu1 %v6229_v48  ;;  %v6232_v48 = vld [vmem:[%s8105_s0 + $0x474] ss:$108 sps:$4 sm:$0xff]  }
  0xea   :  { %3685 = vmatmul.mubr.bf16.gmra.mrb[100].mxu0 %v6194_v45  ;;  %5612 = vmatprep.subr.bf16.mxu1 %v6236_v53 }
  0xeb   :  { %3692 = vmatprep.mubr.bf16.mxu0 %v6200_v47  ;;  %5549 = vmatpush3.bf16.msra.mxu0 %v6206_v50 }
  0xec   :  { %5550 = vmatprep.subr.bf16.mxu0 %v6211_v51  ;;  %3782 = vmatmul.mubr.bf16.gmra.mrb[100].mxu1 %v6199_v49 }
  0xed   :  { %3789 = vmatprep.mubr.bf16.mxu1 %v6204_v52  ;;  %5613 = vmatpush3.bf16.msra.mxu1 %v6237_v55 }
  0xee   :  { %5614 = vmatprep.subr.bf16.mxu1 %v6238_v56 }
  0xef   :  { %5551 = vmatpush3.bf16.msra.mxu0 %v6214_v54 }
  0xf0   :  { %5552 = vmatprep.subr.bf16.mxu0 %v6219_v58  ;;  %v6230_v58 = vld [vmem:[%s8105_s0 + $0x468] ss:$108 sps:$4 sm:$0xff]  }
  0xf1   :  { %5615 = vmatpush3.bf16.msra.mxu1 %v6241_v60 }
  0xf2   :  { %3693 = vmatmul.mubr.bf16.gmra.mrb[104].mxu0 %v6202_v57  ;;  %5616 = vmatprep.subr.bf16.mxu1 %v6248_v1 }
  0xf3   :  { %3700 = vmatprep.mubr.bf16.mxu0 %v6208_v59  ;;  %5553 = vmatpush3.bf16.msra.mxu0 %v6222_v62 }
  0xf4   :  { %5554 = vmatprep.subr.bf16.mxu0 %v6231_v0  ;;  %3790 = vmatmul.mubr.bf16.gmra.mrb[104].mxu1 %v6207_v61  ;;  %v6239_v61 = vld [vmem:[%s8105_s0 + $0x544] ss:$108 sps:$4 sm:$0xff]  }
  0xf5   :  { %v5048_v8 = vpop.f32.mrb[0].mxu0  ;;  %3797 = vmatprep.mubr.bf16.mxu1 %v6212_v63  ;;  %5617 = vmatpush3.bf16.msra.mxu1 %v6249_v3  ;;  %v6235_v0 = vld [vmem:[%s8105_s0 + $0x470] ss:$108 sps:$4 sm:$0xff]  }
  0xf6   :  { %v5049_v10 = vpop.f32.mrb[1].mxu0  ;;  %5618 = vmatprep.subr.bf16.mxu1 %v6250_v4  ;;  %v6244_v4 = vld [vmem:[%s8105_s0 + $0x54c] ss:$108 sps:$4 sm:$0xff]  }
  0xf7   :  { %v5050_v12 = vadd.f32 %v5049_v10, %v5048_v8  ;;  %v5051_v13 = vpop.f32.mrb[2].mxu0  ;;  %5555 = vmatpush3.bf16.msra.mxu0 %v6234_v2  ;;  %v5112_v16 = vpop.f32.mrb[0].mxu1 }
  0xf8   :  { %v5052_v17 = vpop.f32.mrb[3].mxu0  ;;  %5556 = vmatprep.subr.bf16.mxu0 %v6243_v7  ;;  %v5113_v22 = vpop.f32.mrb[1].mxu1 }
  0xf9   :  { %v3097_v20 = vadd.f32 %v5050_v12, %v7254_v5  ;;  %v5053_v21 = vadd.f32 %v5052_v17, %v5051_v13  ;;  %v5114_v24 = vadd.f32 %v5113_v22, %v5112_v16  ;;  %v5115_v25 = vpop.f32.mrb[2].mxu1  ;;  %5619 = vmatpush3.bf16.msra.mxu1 %v6253_v11  ;;  %v6242_v12 = vld [vmem:[%s8105_s0 + $0x540] ss:$108 sps:$4 sm:$0xff]   ;;  %v6247_v22 = vld [vmem:[%s8105_s0 + $0x548] ss:$108 sps:$4 sm:$0xff]  }
  0xfa   :  { %3701 = vmatmul.mubr.bf16.gmra.mrb[108].mxu0 %v6210_v6  ;;  %v5116_v29 = vpop.f32.mrb[3].mxu1  ;;  %5620 = vmatprep.subr.bf16.mxu1 %v6260_v19  ;;  %v6251_v19 = vld [vmem:[%s8105_s0 + $0x61c] ss:$108 sps:$4 sm:$0xff]  }
  0xfb   :  { %v3100_v28 = vadd.f32 %v5053_v21, %v7254_v5  ;;  %3708 = vmatprep.mubr.bf16.mxu0 %v6216_v9  ;;  %5557 = vmatpush3.bf16.msra.mxu0 %v6246_v15  ;;  %v7294_v31 = vadd.f32 %v5114_v24, %v3097_v20  ;;  %v5117_v32 = vadd.f32 %v5116_v29, %v5115_v25 }
  0xfc   :  { %5558 = vmatprep.subr.bf16.mxu0 %v6255_v18  ;;  %3798 = vmatmul.mubr.bf16.gmra.mrb[108].mxu1 %v6215_v14  ;;  %v6304_v14 = vld [vmem:[%s8104_s1 + $0x5c0] sm:$0xff]  }
  0xfd   :  { %v5054_v35 = vpop.f32.mrb[4].mxu0  ;;  %v7302_v36 = vadd.f32 %v5117_v32, %v3100_v28  ;;  %3805 = vmatprep.mubr.bf16.mxu1 %v6220_v23  ;;  %5621 = vmatpush3.bf16.msra.mxu1 %v6261_v27  ;;  %v6256_v28 = vld [vmem:[%s8105_s0 + $0x624] ss:$108 sps:$4 sm:$0xff]  }
  0xfe   :  { %v5055_v37 = vpop.f32.mrb[5].mxu0  ;;  %5622 = vmatprep.subr.bf16.mxu1 %v6262_v30 }
  0xff   :  { %v5056_v39 = vadd.f32 %v5055_v37, %v5054_v35  ;;  %v5057_v40 = vpop.f32.mrb[6].mxu0  ;;  %5559 = vmatpush3.bf16.msra.mxu0 %v6258_v26  ;;  %v5118_v43 = vpop.f32.mrb[4].mxu1  ;;  %v6265_v37 = vld [vmem:[%s8105_s0 + $0x44] ss:$108 sps:$4 sm:$0xff]  }
 0x100   :  { %v5058_v44 = vpop.f32.mrb[7].mxu0  ;;  %5672 = vmatprep.subr.bf16.mxu0 %v6267_v34  ;;  %v5119_v47 = vpop.f32.mrb[5].mxu1  ;;  %v6254_v34 = vld [vmem:[%s8105_s0 + $0x618] ss:$108 sps:$4 sm:$0xff]  }
 0x101   :  { %v3105_v45 = vadd.f32 %v5056_v39, %v7254_v5  ;;  %v5059_v46 = vadd.f32 %v5058_v44, %v5057_v40  ;;  %v5120_v49 = vadd.f32 %v5119_v47, %v5118_v43  ;;  %v5121_v50 = vpop.f32.mrb[6].mxu1  ;;  %5623 = vmatpush3.bf16.msra.mxu1 %v6266_v38  ;;  %v6259_v47 = vld [vmem:[%s8105_s0 + $0x620] ss:$108 sps:$4 sm:$0xff]  }
 0x102   :  { %3709 = vmatmul.mubr.bf16.gmra.mrb[112].mxu0 %v6218_v33  ;;  %v5122_v52 = vpop.f32.mrb[7].mxu1  ;;  %5736 = vmatprep.subr.bf16.mxu1 %v6304_v14  ;;  %v6305_v14 = vld [vmem:[%s8104_s1 + $0x580] sm:$0xff]  }
 0x103   :  { %v3108_v51 = vadd.f32 %v5059_v46, %v7254_v5  ;;  %3716 = vmatprep.mubr.bf16.mxu0 %v6227_v42  ;;  %v7318_v53 = vadd.f32 %v5120_v49, %v3105_v45  ;;  %v5123_v54 = vadd.f32 %v5122_v52, %v5121_v50  ;;  %v6270_v50 = vld [vmem:[%s8105_s0 + $0x4c] ss:$108 sps:$4 sm:$0xff]  }
 0x104   :  { %3806 = vmatmul.mubr.bf16.gmra.mrb[112].mxu1 %v6223_v41 }
 0x105   :  { %v5060_v55 = vpop.f32.mrb[8].mxu0  ;;  %v7320_v56 = vadd.f32 %v5123_v54, %v3108_v51  ;;  %3813 = vmatprep.mubr.bf16.mxu1 %v6232_v48 }
 0x106   :  { %v5061_v57 = vpop.f32.mrb[9].mxu0 }
 0x107   :  { %v5062_v59 = vadd.f32 %v5061_v57, %v5060_v55  ;;  %v5063_v60 = vpop.f32.mrb[10].mxu0  ;;  %v5124_v62 = vpop.f32.mrb[8].mxu1  ;;  %v6263_v57 = vld [vmem:[%s8105_s0 + $0x40] ss:$108 sps:$4 sm:$0xff]  }
 0x108   :  { %v5064_v63 = vpop.f32.mrb[11].mxu0  ;;  %v5125_v3 = vpop.f32.mrb[9].mxu1 }
 0x109   :  { %v3113_v1 = vadd.f32 %v5062_v59, %v7254_v5  ;;  %v5065_v2 = vadd.f32 %v5064_v63, %v5063_v60  ;;  %v5126_v6 = vadd.f32 %v5125_v3, %v5124_v62  ;;  %v5127_v7 = vpop.f32.mrb[10].mxu1  ;;  %v6272_v59 = vld [vmem:[%s8105_s0 + $0x11c] ss:$108 sps:$4 sm:$0xff]   ;;  %v6271_v62 = vld [vmem:[%s8104_s1 + $0x500] sm:$0xff]  }
 0x10a   :  { %3717 = vmatmul.mubr.bf16.gmra.mrb[116].mxu0 %v6230_v58  ;;  %v5128_v9 = vpop.f32.mrb[11].mxu1 }
 0x10b   :  { %v3116_v8 = vadd.f32 %v5065_v2, %v7254_v5  ;;  %3724 = vmatprep.mubr.bf16.mxu0 %v6239_v61  ;;  %v7336_v10 = vadd.f32 %v5126_v6, %v3113_v1  ;;  %v5129_v11 = vadd.f32 %v5128_v9, %v5127_v7  ;;  %v6268_v1 = vld [vmem:[%s8105_s0 + $0x48] ss:$108 sps:$4 sm:$0xff]   ;;  %v6276_v9 = vld [vmem:[%s8105_s0 + $0x124] ss:$108 sps:$4 sm:$0xff]  }
 0x10c   :  { %3814 = vmatmul.mubr.bf16.gmra.mrb[116].mxu1 %v6235_v0  ;;  %v6275_v2 = vld [vmem:[%s8104_s1 + $0x548] sm:$0xff]  }
 0x10d   :  { %v5066_v13 = vpop.f32.mrb[12].mxu0  ;;  %v7344_v15 = vadd.f32 %v5129_v11, %v3116_v8  ;;  %3821 = vmatprep.mubr.bf16.mxu1 %v6244_v4 }
 0x10e   :  { %v5067_v16 = vpop.f32.mrb[13].mxu0 }
 0x10f   :  { %v5068_v17 = vadd.f32 %v5067_v16, %v5066_v13  ;;  %v5069_v18 = vpop.f32.mrb[14].mxu0  ;;  %v5130_v20 = vpop.f32.mrb[12].mxu1  ;;  %v6278_v13 = vld [vmem:[%s8104_s1 + $0x508] sm:$0xff]  }
 0x110   :  { %v5070_v21 = vpop.f32.mrb[15].mxu0  ;;  %v5131_v25 = vpop.f32.mrb[13].mxu1 }
 0x111   :  { %v3121_v23 = vadd.f32 %v5068_v17, %v7254_v5  ;;  %v5071_v24 = vadd.f32 %v5070_v21, %v5069_v18  ;;  %v5132_v26 = vadd.f32 %v5131_v25, %v5130_v20  ;;  %v5133_v27 = vpop.f32.mrb[14].mxu1  ;;  %v6283_v18 = vld [vmem:[%s8104_s1 + $0x550] sm:$0xff]  }
 0x112   :  { %3725 = vmatmul.mubr.bf16.gmra.mrb[120].mxu0 %v6242_v12  ;;  %v5134_v30 = vpop.f32.mrb[15].mxu1  ;;  %v6286_v25 = vld [vmem:[%s8104_s1 + $0x510] sm:$0xff]  }
 0x113   :  { %v3124_v29 = vadd.f32 %v5071_v24, %v7254_v5  ;;  %3732 = vmatprep.mubr.bf16.mxu0 %v6251_v19  ;;  %v7357_v32 = vadd.f32 %v5132_v26, %v3121_v23  ;;  %v5135_v33 = vadd.f32 %v5134_v30, %v5133_v27  ;;  %v6306_v19 = vld [vmem:[%s8104_s1 + $0x5c8] sm:$0xff]   ;;  %v6280_v24 = vld [vmem:[%s8105_s0 + $0x1f4] ss:$108 sps:$4 sm:$0xff]  }
 0x114   :  { %3822 = vmatmul.mubr.bf16.gmra.mrb[120].mxu1 %v6247_v22  ;;  %v6274_v22 = vld [vmem:[%s8105_s0 + $0x118] ss:$108 sps:$4 sm:$0xff]  }
 0x115   :  { %v5072_v35 = vpop.f32.mrb[16].mxu0  ;;  %v7365_v38 = vadd.f32 %v5135_v33, %v3124_v29  ;;  %3829 = vmatprep.mubr.bf16.mxu1 %v6256_v28  ;;  %v6291_v28 = vld [vmem:[%s8104_s1 + $0x558] sm:$0xff]   ;;  %v6309_v29 = vld [vmem:[%s8104_s1 + $0x588] sm:$0xff]  }
 0x116   :  { %v5073_v39 = vpop.f32.mrb[17].mxu0 }
 0x117   :  { %v5074_v40 = vadd.f32 %v5073_v39, %v5072_v35  ;;  %v5075_v41 = vpop.f32.mrb[18].mxu0  ;;  %v5136_v42 = vpop.f32.mrb[16].mxu1  ;;  %v6316_v35 = vld [vmem:[%s8104_s1 + $0x5d0] sm:$0xff]  }
 0x118   :  { %v5076_v43 = vpop.f32.mrb[19].mxu0  ;;  %v5137_v46 = vpop.f32.mrb[17].mxu1 }
 0x119   :  { %v3129_v44 = vadd.f32 %v5074_v40, %v7254_v5  ;;  %v5077_v45 = vadd.f32 %v5076_v43, %v5075_v41  ;;  %v5138_v48 = vadd.f32 %v5137_v46, %v5136_v42  ;;  %v5139_v49 = vpop.f32.mrb[18].mxu1  ;;  %v6284_v40 = vld [vmem:[%s8105_s0 + $0x1fc] ss:$108 sps:$4 sm:$0xff]   ;;  %v6317_v46 = vld [vmem:[%s8104_s1 + $0x590] sm:$0xff]  }
 0x11a   :  { %3733 = vmatmul.mubr.bf16.gmra.mrb[124].mxu0 %v6254_v34  ;;  %v5140_v52 = vpop.f32.mrb[19].mxu1  ;;  %v6279_v34 = vld [vmem:[%s8105_s0 + $0x120] ss:$108 sps:$4 sm:$0xff]  }
 0x11b   :  { %v3132_v51 = vadd.f32 %v5077_v45, %v7254_v5  ;;  %3870 = vmatprep.mubr.bf16.mxu0 %v6265_v37  ;;  %v7375_v54 = vadd.f32 %v5138_v48, %v3129_v44  ;;  %v5141_v55 = vadd.f32 %v5140_v52, %v5139_v49  ;;  %v6294_v49 = vld [vmem:[%s8104_s1 + $0x518] sm:$0xff]  }
 0x11c   :  { %3830 = vmatmul.mubr.bf16.gmra.mrb[124].mxu1 %v6259_v47 }
 0x11d   :  { %v5078_v58 = vpop.f32.mrb[20].mxu0  ;;  %v7383_v60 = vadd.f32 %v5141_v55, %v3132_v51  ;;  %3967 = vmatprep.mubr.bf16.mxu1 %v6270_v50  ;;  %v6299_v50 = vld [vmem:[%s8104_s1 + $0x560] sm:$0xff]   ;;  %v6318_v51 = vld [vmem:[%s8104_s1 + $0x5d8] sm:$0xff]  }
 0x11e   :  { %v5079_v61 = vpop.f32.mrb[21].mxu0 }
 0x11f   :  { %v5080_v63 = vadd.f32 %v5079_v61, %v5078_v58  ;;  %v5081_v0 = vpop.f32.mrb[22].mxu0  ;;  %v5142_v3 = vpop.f32.mrb[20].mxu1 }
 0x120   :  { %v5082_v4 = vpop.f32.mrb[23].mxu0  ;;  %v5143_v8 = vpop.f32.mrb[21].mxu1 }
 0x121   :  { %v3137_v6 = vadd.f32 %v5080_v63, %v7254_v5  ;;  %v5083_v7 = vadd.f32 %v5082_v4, %v5081_v0  ;;  %v5144_v11 = vadd.f32 %v5143_v8, %v5142_v3  ;;  %v5145_v12 = vpop.f32.mrb[22].mxu1  ;;  %v6302_v63 = vld [vmem:[%s8104_s1 + $0x520] sm:$0xff]   ;;  %v6321_v0 = vld [vmem:[%s8104_s1 + $0x598] sm:$0xff]   ;;  %v6311_v4 = vld [vmem:[%s8104_s1 + $0x568] sm:$0xff]  }
 0x122   :  { %3871 = vmatmul.mubr.bf16.vlgmr.msra.gmra.mrb[128].mxu0 %v6263_v57  ;;  %v5146_v17 = vpop.f32.mrb[23].mxu1  ;;  %v6282_v57 = vld [vmem:[%s8105_s0 + $0x1f0] ss:$108 sps:$4 sm:$0xff]   ;;  %v6287_v3 = vld [vmem:[%s8105_s0 + $0x1f8] ss:$108 sps:$4 sm:$0xff]  }
 0x123   :  { %v3140_v16 = vadd.f32 %v5083_v7, %v7254_v5  ;;  %5673 = vmatpush3.bf16.msra.mxu0 %v6271_v62  ;;  %3878 = vmatprep.mubr.bf16.mxu0 %v6272_v59  ;;  %v7411_v20 = vadd.f32 %v5144_v11, %v3137_v6  ;;  %v5147_v21 = vadd.f32 %v5146_v17, %v5145_v12  ;;  %v6288_v59 = vld [vmem:[%s8105_s0 + $0x2cc] ss:$108 sps:$4 sm:$0xff]   ;;  %v6328_v8 = vld [vmem:[%s8104_s1 + $0x5e0] sm:$0xff]  }
 0x124   :  { %5674 = vmatprep.subr.bf16.mxu0 %v6275_v2  ;;  %3968 = vmatmul.mubr.bf16.vlgmr.msra.gmra.mrb[128].mxu1 %v6268_v1 }
 0x125   :  { %v5084_v23 = vpop.f32.mrb[24].mxu0  ;;  %v7422_v26 = vadd.f32 %v5147_v21, %v3140_v16  ;;  %3975 = vmatprep.mubr.bf16.mxu1 %v6276_v9  ;;  %5737 = vmatpush3.bf16.msra.mxu1 %v6305_v14  ;;  %v6329_v14 = vld [vmem:[%s8104_s1 + $0x5a0] sm:$0xff]   ;;  %v6314_v21 = vld [vmem:[%s8104_s1 + $0x528] sm:$0xff]  }
 0x126   :  { %v5085_v27 = vpop.f32.mrb[25].mxu0  ;;  %5738 = vmatprep.subr.bf16.mxu1 %v6306_v19 }
 0x127   :  { %v5086_v30 = vadd.f32 %v5085_v27, %v5084_v23  ;;  %v5087_v33 = vpop.f32.mrb[26].mxu0  ;;  %5675 = vmatpush3.bf16.msra.mxu0 %v6278_v13  ;;  %v5148_v37 = vpop.f32.mrb[24].mxu1  ;;  %v6292_v13 = vld [vmem:[%s8105_s0 + $0x2d4] ss:$108 sps:$4 sm:$0xff]  }
 0x128   :  { %v5088_v39 = vpop.f32.mrb[27].mxu0  ;;  %5676 = vmatprep.subr.bf16.mxu0 %v6283_v18  ;;  %v5149_v43 = vpop.f32.mrb[25].mxu1 }
 0x129   :  { %v3145_v41 = vadd.f32 %v5086_v30, %v7254_v5  ;;  %v5089_v42 = vadd.f32 %v5088_v39, %v5087_v33  ;;  %v5150_v44 = vadd.f32 %v5149_v43, %v5148_v37  ;;  %v5151_v45 = vpop.f32.mrb[26].mxu1  ;;  %5739 = vmatpush3.bf16.msra.mxu1 %v6309_v29  ;;  %v6326_v29 = vld [vmem:[%s8104_s1 + $0x530] sm:$0xff]   ;;  %v6333_v30 = vld [vmem:[%s8104_s1 + $0x5a8] sm:$0xff]  }
 0x12a   :  { %3879 = vmatmul.mubr.bf16.gmra.mrb[132].mxu0 %v6274_v22  ;;  %v5152_v48 = vpop.f32.mrb[27].mxu1  ;;  %5740 = vmatprep.subr.bf16.mxu1 %v6316_v35  ;;  %v6330_v22 = vld [vmem:[%s8104_s1 + $0x5e8] sm:$0xff]   ;;  %v6335_v35 = vld [vmem:[%s8104_s1 + $0x578] sm:$0xff]  }
 0x12b   :  { %v3148_v47 = vadd.f32 %v5089_v42, %v7254_v5  ;;  %3886 = vmatprep.mubr.bf16.mxu0 %v6280_v24  ;;  %5677 = vmatpush3.bf16.msra.mxu0 %v6286_v25  ;;  %v7453_v52 = vadd.f32 %v5150_v44, %v3145_v41  ;;  %v5153_v55 = vadd.f32 %v5152_v48, %v5151_v45  ;;  %v6290_v25 = vld [vmem:[%s8105_s0 + $0x2c8] ss:$108 sps:$4 sm:$0xff]  }
 0x12c   :  { %5678 = vmatprep.subr.bf16.mxu0 %v6291_v28  ;;  %3976 = vmatmul.mubr.bf16.gmra.mrb[132].mxu1 %v6279_v34  ;;  %v6296_v28 = vld [vmem:[%s8105_s0 + $0x3a4] ss:$108 sps:$4 sm:$0xff]  }
 0x12d   :  { %v5090_v58 = vpop.f32.mrb[28].mxu0  ;;  %v7461_v61 = vadd.f32 %v5153_v55, %v3148_v47  ;;  %3983 = vmatprep.mubr.bf16.mxu1 %v6284_v40  ;;  %5741 = vmatpush3.bf16.msra.mxu1 %v6317_v46  ;;  %v6340_v40 = vld [vmem:[%s8104_s1 + $0x5f0] sm:$0xff]   ;;  %v6300_v47 = vld [vmem:[%s8105_s0 + $0x3ac] ss:$108 sps:$4 sm:$0xff]  }
 0x12e   :  { %v5091_v62 = vpop.f32.mrb[29].mxu0  ;;  %5742 = vmatprep.subr.bf16.mxu1 %v6318_v51  ;;  %v6295_v46 = vld [vmem:[%s8105_s0 + $0x2d0] ss:$108 sps:$4 sm:$0xff]  }
 0x12f   :  { %v5092_v1 = vadd.f32 %v5091_v62, %v5090_v58  ;;  %v5093_v2 = vpop.f32.mrb[30].mxu0  ;;  %5679 = vmatpush3.bf16.msra.mxu0 %v6294_v49  ;;  %v5154_v6 = vpop.f32.mrb[28].mxu1  ;;  %v6298_v62 = vld [vmem:[%s8105_s0 + $0x3a0] ss:$108 sps:$4 sm:$0xff]  }
 0x130   :  { %v5094_v7 = vpop.f32.mrb[31].mxu0  ;;  %5680 = vmatprep.subr.bf16.mxu0 %v6299_v50  ;;  %v5155_v12 = vpop.f32.mrb[29].mxu1  ;;  %v6338_v50 = vld [vmem:[%s8104_s1 + $0x538] sm:$0xff]  }
 0x131   :  { %v3153_v9 = vadd.f32 %v5092_v1, %v7254_v5  ;;  %v5095_v11 = vadd.f32 %v5094_v7, %v5093_v2  ;;  %v5156_v16 = vadd.f32 %v5155_v12, %v5154_v6  ;;  %v5157_v17 = vpop.f32.mrb[30].mxu1  ;;  %5743 = vmatpush3.bf16.msra.mxu1 %v6321_v0  ;;  %v6346_v2 = vld [vmem:[%s8104_s1 + $0x5b8] sm:$0xff]   ;;  %v6303_v6 = vld [vmem:[%s8105_s0 + $0x3a8] ss:$108 sps:$4 sm:$0xff]  }
 0x132   :  { %3887 = vmatmul.mubr.bf16.gmra.mrb[136].mxu0 %v6282_v57  ;;  %v5158_v19 = vpop.f32.mrb[31].mxu1  ;;  %5744 = vmatprep.subr.bf16.mxu1 %v6328_v8  ;;  %v6342_v57 = vld [vmem:[%s8104_s1 + $0x5f8] sm:$0xff]  }
 0x133   :  { %v3156_v18 = vadd.f32 %v5095_v11, %v7254_v5  ;;  %3894 = vmatprep.mubr.bf16.mxu0 %v6288_v59  ;;  %5681 = vmatpush3.bf16.msra.mxu0 %v6302_v63  ;;  %v7492_v23 = vadd.f32 %v5156_v16, %v3153_v9  ;;  %v5159_v24 = vadd.f32 %v5158_v19, %v5157_v17  ;;  %v6323_v5 = vld [vmem:[%s8104_s1 + $0x570] sm:$0xff]   ;;  %v6307_v7 = vld [vmem:[%s8105_s0 + $0x47c] ss:$108 sps:$4 sm:$0xff]  }
 0x134   :  { %5682 = vmatprep.subr.bf16.mxu0 %v6311_v4  ;;  %3984 = vmatmul.mubr.bf16.gmra.mrb[136].mxu1 %v6287_v3 }
 0x135   :  { %v5176_v27 = vpop.f32.mrb[32].mxu0  ;;  %v7509_v33 = vadd.f32 %v5159_v24, %v3156_v18  ;;  %3991 = vmatprep.mubr.bf16.mxu1 %v6292_v13  ;;  %5745 = vmatpush3.bf16.msra.mxu1 %v6329_v14  ;;  %v6312_v14 = vld [vmem:[%s8105_s0 + $0x484] ss:$108 sps:$4 sm:$0xff]  }
 0x136   :  { %v5177_v34 = vpop.f32.mrb[33].mxu0  ;;  %5746 = vmatprep.subr.bf16.mxu1 %v6330_v22 }
 0x137   :  { %v5178_v37 = vadd.f32 %v5177_v34, %v5176_v27  ;;  %v5179_v39 = vpop.f32.mrb[34].mxu0  ;;  %5683 = vmatpush3.bf16.msra.mxu0 %v6314_v21  ;;  %v5240_v41 = vpop.f32.mrb[32].mxu1  ;;  %v7561_v21 = vld [vmem:[%s8104_s1 + $0x680] sm:$0xff]  }
 0x138   :  { %v5180_v42 = vpop.f32.mrb[35].mxu0  ;;  %5684 = vmatprep.subr.bf16.mxu0 %v6323_v5  ;;  %v5241_v45 = vpop.f32.mrb[33].mxu1 }
 0x139   :  { %v3291_v43 = vadd.f32 %v5178_v37, %v7294_v31  ;;  %v5181_v44 = vadd.f32 %v5180_v42, %v5179_v39  ;;  %v5242_v48 = vadd.f32 %v5241_v45, %v5240_v41  ;;  %v5243_v49 = vpop.f32.mrb[34].mxu1  ;;  %5747 = vmatpush3.bf16.msra.mxu1 %v6333_v30  ;;  %v6341_v31 = vld [vmem:[%s8104_s1 + $0x5b0] sm:$0xff]  }
 0x13a   :  { %3895 = vmatmul.mubr.bf16.gmra.mrb[140].mxu0 %v6290_v25  ;;  %v5244_v55 = vpop.f32.mrb[35].mxu1  ;;  %5748 = vmatprep.subr.bf16.mxu1 %v6340_v40  ;;  %v6310_v25 = vld [vmem:[%s8105_s0 + $0x478] ss:$108 sps:$4 sm:$0xff]  }
 0x13b   :  { %v3294_v51 = vadd.f32 %v5181_v44, %v7302_v36  ;;  %3902 = vmatprep.mubr.bf16.mxu0 %v6296_v28  ;;  %5685 = vmatpush3.bf16.msra.mxu0 %v6326_v29  ;;  %v7534_v58 = vadd.f32 %v5242_v48, %v3291_v43  ;;  %v5245_v59 = vadd.f32 %v5244_v55, %v5243_v49  ;;  %v6347_v36 = vld [vmem:[%s8104_s1 + $0x640] sm:$0xff]   ;;  %v6324_v43 = vld [vmem:[%s8105_s0 + $0x55c] ss:$108 sps:$4 sm:$0xff]  }
 0x13c   :  { %5686 = vmatprep.subr.bf16.mxu0 %v6335_v35  ;;  %3992 = vmatmul.mubr.bf16.gmra.mrb[140].mxu1 %v6295_v46  ;;  %v6315_v35 = vld [vmem:[%s8105_s0 + $0x480] ss:$108 sps:$4 sm:$0xff]  }
 0x13d   :  { %v5182_v63 = vpop.f32.mrb[36].mxu0  ;;  %v7542_v0 = vadd.f32 %v5245_v59, %v3294_v51  ;;  %3999 = vmatprep.mubr.bf16.mxu1 %v6300_v47  ;;  %5749 = vmatpush3.bf16.msra.mxu1 %v6341_v31  ;;  %v6327_v59 = vld [vmem:[%s8105_s0 + $0x558] ss:$108 sps:$4 sm:$0xff]  }
 0x13e   :  { %v5183_v1 = vpop.f32.mrb[37].mxu0  ;;  %5750 = vmatprep.subr.bf16.mxu1 %v6342_v57 }
 0x13f   :  { %v5184_v3 = vadd.f32 %v5183_v1, %v5182_v63  ;;  %v5185_v4 = vpop.f32.mrb[38].mxu0  ;;  %5687 = vmatpush3.bf16.msra.mxu0 %v6338_v50  ;;  %v5246_v8 = vpop.f32.mrb[36].mxu1  ;;  %v6322_v50 = vld [vmem:[%s8105_s0 + $0x550] ss:$108 sps:$4 sm:$0xff]  }
 0x140   :  { %v5186_v9 = vpop.f32.mrb[39].mxu0  ;;  %5800 = vmatprep.subr.bf16.mxu0 %v6347_v36  ;;  %v5247_v13 = vpop.f32.mrb[37].mxu1 }
 0x141   :  { %v3299_v11 = vadd.f32 %v5184_v3, %v7318_v53  ;;  %v5187_v12 = vadd.f32 %v5186_v9, %v5185_v4  ;;  %v5248_v16 = vadd.f32 %v5247_v13, %v5246_v8  ;;  %v5249_v17 = vpop.f32.mrb[38].mxu1  ;;  %5751 = vmatpush3.bf16.msra.mxu1 %v6346_v2  ;;  %v6336_v3 = vld [vmem:[%s8105_s0 + $0x634] ss:$108 sps:$4 sm:$0xff]  }
 0x142   :  { %3903 = vmatmul.mubr.bf16.gmra.mrb[144].mxu0 %v6298_v62  ;;  %v5250_v19 = vpop.f32.mrb[39].mxu1  ;;  %5880 = vmatprep.subr.bf16.mxu1 %v7561_v21 }
 0x143   :  { %v3302_v18 = vadd.f32 %v5187_v12, %v7320_v56  ;;  %3910 = vmatprep.mubr.bf16.mxu0 %v6307_v7  ;;  %v7563_v53 = vadd.f32 %v5248_v16, %v3299_v11  ;;  %v5251_v22 = vadd.f32 %v5250_v19, %v5249_v17  ;;  %v6319_v56 = vld [vmem:[%s8105_s0 + $0x554] ss:$108 sps:$4 sm:$0xff]  }
 0x144   :  { %4000 = vmatmul.mubr.bf16.gmra.mrb[144].mxu1 %v6303_v6  ;;  %v6334_v12 = vld [vmem:[%s8105_s0 + $0x628] ss:$108 sps:$4 sm:$0xff]  }
 0x145   :  { %v5188_v24 = vpop.f32.mrb[40].mxu0  ;;  %v7572_v5 = vadd.f32 %v5251_v22, %v3302_v18  ;;  %4007 = vmatprep.mubr.bf16.mxu1 %v6312_v14 }
 0x146   :  { %v5189_v27 = vpop.f32.mrb[41].mxu0 }
 0x147   :  { %v5190_v28 = vadd.f32 %v5189_v27, %v5188_v24  ;;  %v5191_v29 = vpop.f32.mrb[42].mxu0  ;;  %v5252_v30 = vpop.f32.mrb[40].mxu1  ;;  %v6339_v24 = vld [vmem:[%s8105_s0 + $0x630] ss:$108 sps:$4 sm:$0xff]  }
 0x148   :  { %v5192_v34 = vpop.f32.mrb[43].mxu0  ;;  %v5253_v40 = vpop.f32.mrb[41].mxu1  ;;  %v6350_v27 = vld [vmem:[%s8105_s0 + $0x5c] ss:$108 sps:$4 sm:$0xff]  }
 0x149   :  { %v3307_v37 = vadd.f32 %v5190_v28, %v7336_v10  ;;  %v5193_v39 = vadd.f32 %v5192_v34, %v5191_v29  ;;  %v5254_v41 = vadd.f32 %v5253_v40, %v5252_v30  ;;  %v5255_v42 = vpop.f32.mrb[42].mxu1  ;;  %v6351_v40 = vld [vmem:[%s8104_s1 + $0x600] sm:$0xff]  }
 0x14a   :  { %3911 = vmatmul.mubr.bf16.gmra.mrb[148].mxu0 %v6310_v25  ;;  %v5256_v45 = vpop.f32.mrb[43].mxu1 }
 0x14b   :  { %v3310_v44 = vadd.f32 %v5193_v39, %v7344_v15  ;;  %3918 = vmatprep.mubr.bf16.mxu0 %v6319_v56  ;;  %v7582_v46 = vadd.f32 %v5254_v41, %v3307_v37  ;;  %v5257_v47 = vadd.f32 %v5256_v45, %v5255_v42  ;;  %v6331_v15 = vld [vmem:[%s8105_s0 + $0x62c] ss:$108 sps:$4 sm:$0xff]   ;;  %v6343_v39 = vld [vmem:[%s8105_s0 + $0x50] ss:$108 sps:$4 sm:$0xff]  }
 0x14c   :  { %4008 = vmatmul.mubr.bf16.gmra.mrb[148].mxu1 %v6315_v35  ;;  %v6352_v42 = vld [vmem:[%s8105_s0 + $0x12c] ss:$108 sps:$4 sm:$0xff]  }
 0x14d   :  { %v5194_v48 = vpop.f32.mrb[44].mxu0  ;;  %v7584_v49 = vadd.f32 %v5257_v47, %v3310_v44  ;;  %4015 = vmatprep.mubr.bf16.mxu1 %v6324_v43  ;;  %v6355_v43 = vld [vmem:[%s8104_s1 + $0x648] sm:$0xff]  }
 0x14e   :  { %v5195_v10 = vpop.f32.mrb[45].mxu0 }
 0x14f   :  { %v5196_v31 = vadd.f32 %v5195_v10, %v5194_v48  ;;  %v5197_v51 = vpop.f32.mrb[46].mxu0  ;;  %v5258_v55 = vpop.f32.mrb[44].mxu1 }
 0x150   :  { %v5198_v57 = vpop.f32.mrb[47].mxu0  ;;  %v5259_v63 = vpop.f32.mrb[45].mxu1 }
 0x151   :  { %v3315_v62 = vadd.f32 %v5196_v31, %v7357_v32  ;;  %v5199_v36 = vadd.f32 %v5198_v57, %v5197_v51  ;;  %v5260_v1 = vadd.f32 %v5259_v63, %v5258_v55  ;;  %v5261_v2 = vpop.f32.mrb[46].mxu1  ;;  %v6354_v63 = vld [vmem:[%s8105_s0 + $0x128] ss:$108 sps:$4 sm:$0xff]  }
 0x152   :  { %3919 = vmatmul.mubr.bf16.gmra.mrb[152].mxu0 %v6322_v50  ;;  %v5262_v6 = vpop.f32.mrb[47].mxu1  ;;  %v6348_v50 = vld [vmem:[%s8105_s0 + $0x58] ss:$108 sps:$4 sm:$0xff]  }
 0x153   :  { %v3318_v4 = vadd.f32 %v5199_v36, %v7365_v38  ;;  %3926 = vmatprep.mubr.bf16.mxu0 %v6331_v15  ;;  %v7600_v7 = vadd.f32 %v5260_v1, %v3315_v62  ;;  %v5263_v8 = vadd.f32 %v5262_v6, %v5261_v2  ;;  %v6345_v38 = vld [vmem:[%s8105_s0 + $0x54] ss:$108 sps:$4 sm:$0xff]  }
 0x154   :  { %4016 = vmatmul.mubr.bf16.gmra.mrb[152].mxu1 %v6327_v59  ;;  %v6356_v15 = vld [vmem:[%s8105_s0 + $0x134] ss:$108 sps:$4 sm:$0xff]   ;;  %v6389_v59 = vld [vmem:[%s8104_s1 + $0x688] sm:$0xff]  }
 0x155   :  { %v5200_v9 = vpop.f32.mrb[48].mxu0  ;;  %v7602_v11 = vadd.f32 %v5263_v8, %v3318_v4  ;;  %4023 = vmatprep.mubr.bf16.mxu1 %v6336_v3  ;;  %v6360_v4 = vld [vmem:[%s8105_s0 + $0x204] ss:$108 sps:$4 sm:$0xff]  }
 0x156   :  { %v5201_v32 = vpop.f32.mrb[49].mxu0 }
 0x157   :  { %v5202_v13 = vadd.f32 %v5201_v32, %v5200_v9  ;;  %v5203_v14 = vpop.f32.mrb[50].mxu0  ;;  %v5264_v16 = vpop.f32.mrb[48].mxu1  ;;  %v6366_v9 = vld [vmem:[%s8104_s1 + $0x610] sm:$0xff]  }
 0x158   :  { %v5204_v17 = vpop.f32.mrb[51].mxu0  ;;  %v5265_v22 = vpop.f32.mrb[49].mxu1 }
 0x159   :  { %v3323_v18 = vadd.f32 %v5202_v13, %v7375_v54  ;;  %v5205_v19 = vadd.f32 %v5204_v17, %v5203_v14  ;;  %v5266_v25 = vadd.f32 %v5265_v22, %v5264_v16  ;;  %v5267_v56 = vpop.f32.mrb[50].mxu1  ;;  %v6359_v13 = vld [vmem:[%s8105_s0 + $0x130] ss:$108 sps:$4 sm:$0xff]  }
 0x15a   :  { %3927 = vmatmul.mubr.bf16.gmra.mrb[156].mxu0 %v6334_v12  ;;  %v5268_v29 = vpop.f32.mrb[51].mxu1  ;;  %v6371_v14 = vld [vmem:[%s8104_s1 + $0x658] sm:$0xff]  }
 0x15b   :  { %v3326_v28 = vadd.f32 %v5205_v19, %v7383_v60  ;;  %4064 = vmatprep.mubr.bf16.mxu0 %v6345_v38  ;;  %v7618_v30 = vadd.f32 %v5266_v25, %v3323_v18  ;;  %v5269_v54 = vadd.f32 %v5268_v29, %v5267_v56  ;;  %v6364_v18 = vld [vmem:[%s8105_s0 + $0x20c] ss:$108 sps:$4 sm:$0xff]   ;;  %v6379_v29 = vld [vmem:[%s8104_s1 + $0x660] sm:$0xff]  }
 0x15c   :  { %4024 = vmatmul.mubr.bf16.gmra.mrb[156].mxu1 %v6339_v24  ;;  %v6374_v19 = vld [vmem:[%s8104_s1 + $0x618] sm:$0xff]  }
 0x15d   :  { %v5206_v34 = vpop.f32.mrb[52].mxu0  ;;  %v7620_v35 = vadd.f32 %v5269_v54, %v3326_v28  ;;  %4161 = vmatprep.mubr.bf16.mxu1 %v6350_v27 }
 0x15e   :  { %v5207_v37 = vpop.f32.mrb[53].mxu0 }
 0x15f   :  { %v5208_v60 = vadd.f32 %v5207_v37, %v5206_v34  ;;  %v5209_v41 = vpop.f32.mrb[54].mxu0  ;;  %v5270_v44 = vpop.f32.mrb[52].mxu1  ;;  %v6362_v37 = vld [vmem:[%s8105_s0 + $0x200] ss:$108 sps:$4 sm:$0xff]  }
 0x160   :  { %v5210_v45 = vpop.f32.mrb[55].mxu0  ;;  %v5271_v10 = vpop.f32.mrb[53].mxu1 }
 0x161   :  { %v3331_v47 = vadd.f32 %v5208_v60, %v7411_v20  ;;  %v5211_v48 = vadd.f32 %v5210_v45, %v5209_v41  ;;  %v5272_v31 = vadd.f32 %v5271_v10, %v5270_v44  ;;  %v5273_v51 = vpop.f32.mrb[54].mxu1  ;;  %v6358_v20 = vld [vmem:[%s8104_s1 + $0x608] sm:$0xff]   ;;  %v6382_v41 = vld [vmem:[%s8104_s1 + $0x620] sm:$0xff]  }
 0x162   :  { %4065 = vmatmul.mubr.bf16.vlgmr.msra.gmra.mrb[160].mxu0 %v6343_v39  ;;  %v5274_v57 = vpop.f32.mrb[55].mxu1  ;;  %v6368_v60 = vld [vmem:[%s8105_s0 + $0x2dc] ss:$108 sps:$4 sm:$0xff]   ;;  %v6404_v45 = vld [vmem:[%s8104_s1 + $0x6a0] sm:$0xff]  }
 0x163   :  { %v3334_v55 = vadd.f32 %v5211_v48, %v7422_v26  ;;  %5801 = vmatpush3.bf16.msra.mxu0 %v6351_v40  ;;  %4072 = vmatprep.mubr.bf16.mxu0 %v6352_v42  ;;  %v7648_v62 = vadd.f32 %v5272_v31, %v3331_v47  ;;  %v5275_v36 = vadd.f32 %v5274_v57, %v5273_v51  ;;  %v6363_v26 = vld [vmem:[%s8104_s1 + $0x650] sm:$0xff]   ;;  %v6388_v44 = vld [vmem:[%s8104_s1 + $0x668] sm:$0xff]  }
 0x164   :  { %5802 = vmatprep.subr.bf16.mxu0 %v6355_v43  ;;  %4162 = vmatmul.mubr.bf16.vlgmr.msra.gmra.mrb[160].mxu1 %v6348_v50  ;;  %v6367_v50 = vld [vmem:[%s8105_s0 + $0x208] ss:$108 sps:$4 sm:$0xff]  }
 0x165   :  { %v5212_v1 = vpop.f32.mrb[56].mxu0  ;;  %v7656_v2 = vadd.f32 %v5275_v36, %v3334_v55  ;;  %4169 = vmatprep.mubr.bf16.mxu1 %v6356_v15  ;;  %5881 = vmatpush3.bf16.msra.mxu1 %v7561_v21  ;;  %v6394_v21 = vld [vmem:[%s8104_s1 + $0x690] sm:$0xff]  }
 0x166   :  { %v5213_v3 = vpop.f32.mrb[57].mxu0  ;;  %5882 = vmatprep.subr.bf16.mxu1 %v6389_v59  ;;  %v6372_v15 = vld [vmem:[%s8105_s0 + $0x2e4] ss:$108 sps:$4 sm:$0xff]  }
 0x167   :  { %v5214_v6 = vadd.f32 %v5213_v3, %v5212_v1  ;;  %v5215_v8 = vpop.f32.mrb[58].mxu0  ;;  %5803 = vmatpush3.bf16.msra.mxu0 %v6358_v20  ;;  %v5276_v32 = vpop.f32.mrb[56].mxu1  ;;  %v6409_v20 = vld [vmem:[%s8104_s1 + $0x6a8] sm:$0xff]   ;;  %v6370_v3 = vld [vmem:[%s8105_s0 + $0x2d8] ss:$108 sps:$4 sm:$0xff]  }
 0x168   :  { %v5216_v12 = vpop.f32.mrb[59].mxu0  ;;  %5804 = vmatprep.subr.bf16.mxu0 %v6363_v26  ;;  %v5277_v17 = vpop.f32.mrb[57].mxu1 }
 0x169   :  { %v3339_v38 = vadd.f32 %v5214_v6, %v7453_v52  ;;  %v5217_v16 = vadd.f32 %v5216_v12, %v5215_v8  ;;  %v5278_v22 = vadd.f32 %v5277_v17, %v5276_v32  ;;  %v5279_v24 = vpop.f32.mrb[58].mxu1  ;;  %5883 = vmatpush3.bf16.msra.mxu1 %v6389_v59  ;;  %v6399_v52 = vld [vmem:[%s8104_s1 + $0x698] sm:$0xff]   ;;  %v6376_v8 = vld [vmem:[%s8105_s0 + $0x3b4] ss:$108 sps:$4 sm:$0xff]  }
 0x16a   :  { %4073 = vmatmul.mubr.bf16.gmra.mrb[164].mxu0 %v6354_v63  ;;  %v5280_v56 = vpop.f32.mrb[59].mxu1  ;;  %5884 = vmatprep.subr.bf16.mxu1 %v6394_v21  ;;  %v6398_v63 = vld [vmem:[%s8104_s1 + $0x670] sm:$0xff]   ;;  %v6375_v17 = vld [vmem:[%s8105_s0 + $0x2e0] ss:$108 sps:$4 sm:$0xff]  }
 0x16b   :  { %v3342_v25 = vadd.f32 %v5217_v16, %v7461_v61  ;;  %4080 = vmatprep.mubr.bf16.mxu0 %v6360_v4  ;;  %5805 = vmatpush3.bf16.msra.mxu0 %v6366_v9  ;;  %v7685_v27 = vadd.f32 %v5278_v22, %v3339_v38  ;;  %v5281_v28 = vadd.f32 %v5280_v56, %v5279_v24  ;;  %v6402_v9 = vld [vmem:[%s8104_s1 + $0x630] sm:$0xff]   ;;  %v6380_v22 = vld [vmem:[%s8105_s0 + $0x3bc] ss:$108 sps:$4 sm:$0xff]  }
 0x16c   :  { %5806 = vmatprep.subr.bf16.mxu0 %v6371_v14  ;;  %4170 = vmatmul.mubr.bf16.gmra.mrb[164].mxu1 %v6359_v13  ;;  %v6408_v13 = vld [vmem:[%s8104_s1 + $0x678] sm:$0xff]   ;;  %v6414_v14 = vld [vmem:[%s8104_s1 + $0x6b0] sm:$0xff]  }
 0x16d   :  { %v5218_v54 = vpop.f32.mrb[60].mxu0  ;;  %v7690_v34 = vadd.f32 %v5281_v28, %v3342_v25  ;;  %4177 = vmatprep.mubr.bf16.mxu1 %v6364_v18  ;;  %5885 = vmatpush3.bf16.msra.mxu1 %v6394_v21  ;;  %v6418_v56 = vld [vmem:[%s8104_s1 + $0x6b8] sm:$0xff]  }
 0x16e   :  { %v5219_v61 = vpop.f32.mrb[61].mxu0  ;;  %5886 = vmatprep.subr.bf16.mxu1 %v6399_v52 }
 0x16f   :  { %v5220_v39 = vadd.f32 %v5219_v61, %v5218_v54  ;;  %v5221_v40 = vpop.f32.mrb[62].mxu0  ;;  %5807 = vmatpush3.bf16.msra.mxu0 %v6374_v19  ;;  %v5282_v42 = vpop.f32.mrb[60].mxu1  ;;  %v6378_v61 = vld [vmem:[%s8105_s0 + $0x3b0] ss:$108 sps:$4 sm:$0xff]  }
 0x170   :  { %v5222_v43 = vpop.f32.mrb[63].mxu0  ;;  %5808 = vmatprep.subr.bf16.mxu0 %v6379_v29  ;;  %v5283_v10 = vpop.f32.mrb[61].mxu1 }
 0x171   :  { %v3347_v47 = vadd.f32 %v5220_v39, %v7492_v23  ;;  %v5223_v48 = vadd.f32 %v5222_v43, %v5221_v40  ;;  %v5284_v31 = vadd.f32 %v5283_v10, %v5282_v42  ;;  %v5285_v51 = vpop.f32.mrb[62].mxu1  ;;  %5887 = vmatpush3.bf16.msra.mxu1 %v6399_v52  ;;  %v6392_v23 = vld [vmem:[%s8104_s1 + $0x628] sm:$0xff]   ;;  %v6390_v10 = vld [vmem:[%s8105_s0 + $0x494] ss:$108 sps:$4 sm:$0xff]  }
 0x172   :  { %4081 = vmatmul.mubr.bf16.gmra.mrb[168].mxu0 %v6362_v37  ;;  %v5286_v57 = vpop.f32.mrb[63].mxu1  ;;  %5888 = vmatprep.subr.bf16.mxu1 %v6404_v45  ;;  %v6385_v40 = vld [vmem:[%s8105_s0 + $0x48c] ss:$108 sps:$4 sm:$0xff]  }
 0x173   :  { %v3350_v55 = vadd.f32 %v5223_v48, %v7509_v33  ;;  %4088 = vmatprep.mubr.bf16.mxu0 %v6368_v60  ;;  %5809 = vmatpush3.bf16.msra.mxu0 %v6382_v41  ;;  %v7721_v59 = vadd.f32 %v5284_v31, %v3347_v47  ;;  %v5287_v36 = vadd.f32 %v5286_v57, %v5285_v51 }
 0x174   :  { %5810 = vmatprep.subr.bf16.mxu0 %v6388_v44  ;;  %4178 = vmatmul.mubr.bf16.gmra.mrb[168].mxu1 %v6367_v50 }
 0x175   :  { %v5304_v33 = vpop.f32.mrb[64].mxu0  ;;  %v7726_v26 = vadd.f32 %v5287_v36, %v3350_v55  ;;  %4185 = vmatprep.mubr.bf16.mxu1 %v6372_v15  ;;  %5889 = vmatpush3.bf16.msra.mxu1 %v6404_v45  ;;  %v6383_v45 = vld [vmem:[%s8105_s0 + $0x3b8] ss:$108 sps:$4 sm:$0xff]  }
 0x176   :  { %v5305_v1 = vpop.f32.mrb[65].mxu0  ;;  %5890 = vmatprep.subr.bf16.mxu1 %v6409_v20 }
 0x177   :  { %v5306_v4 = vadd.f32 %v5305_v1, %v5304_v33  ;;  %v5307_v6 = vpop.f32.mrb[66].mxu0  ;;  %5811 = vmatpush3.bf16.msra.mxu0 %v6392_v23  ;;  %v5368_v32 = vpop.f32.mrb[64].mxu1  ;;  %v6387_v23 = vld [vmem:[%s8105_s0 + $0x488] ss:$108 sps:$4 sm:$0xff]  }
 0x178   :  { %v5308_v12 = vpop.f32.mrb[67].mxu0  ;;  %5812 = vmatprep.subr.bf16.mxu0 %v6398_v63  ;;  %v5369_v16 = vpop.f32.mrb[65].mxu1 }
 0x179   :  { %v3485_v21 = vadd.f32 %v5306_v4, %v7534_v58  ;;  %v5309_v38 = vadd.f32 %v5308_v12, %v5307_v6  ;;  %v5370_v18 = vadd.f32 %v5369_v16, %v5368_v32  ;;  %v5371_v19 = vpop.f32.mrb[66].mxu1  ;;  %5891 = vmatpush3.bf16.msra.mxu1 %v6409_v20  ;;  %v6412_v58 = vld [vmem:[%s8104_s1 + $0x638] sm:$0xff]  }
 0x17a   :  { %4089 = vmatmul.mubr.bf16.gmra.mrb[172].mxu0 %v6370_v3  ;;  %v5372_v25 = vpop.f32.mrb[67].mxu1  ;;  %5892 = vmatprep.subr.bf16.mxu1 %v6414_v14  ;;  %v6393_v6 = vld [vmem:[%s8105_s0 + $0x490] ss:$108 sps:$4 sm:$0xff]   ;;  %v6400_v32 = vld [vmem:[%s8105_s0 + $0x56c] ss:$108 sps:$4 sm:$0xff]  }
 0x17b   :  { %v3488_v24 = vadd.f32 %v5309_v38, %v7542_v0  ;;  %4096 = vmatprep.mubr.bf16.mxu0 %v6376_v8  ;;  %5813 = vmatpush3.bf16.msra.mxu0 %v6402_v9  ;;  %v7757_v52 = vadd.f32 %v5370_v18, %v3485_v21  ;;  %v5373_v28 = vadd.f32 %v5372_v25, %v5371_v19 }
 0x17c   :  { %5814 = vmatprep.subr.bf16.mxu0 %v6408_v13  ;;  %4186 = vmatmul.mubr.bf16.gmra.mrb[172].mxu1 %v6375_v17  ;;  %v6397_v17 = vld [vmem:[%s8105_s0 + $0x560] ss:$108 sps:$4 sm:$0xff]  }
 0x17d   :  { %v5310_v29 = vpop.f32.mrb[68].mxu0  ;;  %v7759_v54 = vadd.f32 %v5373_v28, %v3488_v24  ;;  %4193 = vmatprep.mubr.bf16.mxu1 %v6380_v22  ;;  %5893 = vmatpush3.bf16.msra.mxu1 %v6414_v14  ;;  %v6403_v28 = vld [vmem:[%s8105_s0 + $0x568] ss:$108 sps:$4 sm:$0xff]  }
 0x17e   :  { %v5311_v0 = vpop.f32.mrb[69].mxu0  ;;  %5894 = vmatprep.subr.bf16.mxu1 %v6418_v56 }
 0x17f   :  { %v5312_v37 = vadd.f32 %v5311_v0, %v5310_v29  ;;  %v5313_v39 = vpop.f32.mrb[70].mxu0  ;;  %5815 = vmatpush3.bf16.msra.mxu0 %v6412_v58  ;;  %v5374_v60 = vpop.f32.mrb[68].mxu1 }
 0x180   :  { %v5314_v41 = vpop.f32.mrb[71].mxu0  ;;  %v5375_v44 = vpop.f32.mrb[69].mxu1 }
 0x181   :  { %v3493_v42 = vadd.f32 %v5312_v37, %v7563_v53  ;;  %v5315_v43 = vadd.f32 %v5314_v41, %v5313_v39  ;;  %v5376_v47 = vadd.f32 %v5375_v44, %v5374_v60  ;;  %v5377_v48 = vpop.f32.mrb[70].mxu1  ;;  %5895 = vmatpush3.bf16.msra.mxu1 %v6418_v56 }
 0x182   :  { %4097 = vmatmul.mubr.bf16.gmra.mrb[176].mxu0 %v6378_v61  ;;  %v5378_v31 = vpop.f32.mrb[71].mxu1  ;;  %v6410_v61 = vld [vmem:[%s8105_s0 + $0x644] ss:$108 sps:$4 sm:$0xff]  }
 0x183   :  { %v3496_v50 = vadd.f32 %v5315_v43, %v7572_v5  ;;  %4104 = vmatprep.mubr.bf16.mxu0 %v6385_v40  ;;  %v7775_v51 = vadd.f32 %v5376_v47, %v3493_v42  ;;  %v5379_v53 = vadd.f32 %v5378_v31, %v5377_v48  ;;  %v6395_v5 = vld [vmem:[%s8105_s0 + $0x564] ss:$108 sps:$4 sm:$0xff]  }
 0x184   :  { %4194 = vmatmul.mubr.bf16.gmra.mrb[176].mxu1 %v6383_v45  ;;  %v6407_v43 = vld [vmem:[%s8105_s0 + $0x638] ss:$108 sps:$4 sm:$0xff]  }
 0x185   :  { %v5316_v15 = vpop.f32.mrb[72].mxu0  ;;  %v7777_v55 = vadd.f32 %v5379_v53, %v3496_v50  ;;  %4201 = vmatprep.mubr.bf16.mxu1 %v6390_v10  ;;  %v6413_v53 = vld [vmem:[%s8105_s0 + $0x640] ss:$108 sps:$4 sm:$0xff]  }
 0x186   :  { %v5317_v57 = vpop.f32.mrb[73].mxu0 }
 0x187   :  { %v5318_v20 = vadd.f32 %v5317_v57, %v5316_v15  ;;  %v5319_v36 = vpop.f32.mrb[74].mxu0  ;;  %v5380_v63 = vpop.f32.mrb[72].mxu1 }
 0x188   :  { %v5320_v33 = vpop.f32.mrb[75].mxu0  ;;  %v5381_v4 = vpop.f32.mrb[73].mxu1 }
 0x189   :  { %v3501_v1 = vadd.f32 %v5318_v20, %v7582_v46  ;;  %v5321_v3 = vadd.f32 %v5320_v33, %v5319_v36  ;;  %v5382_v8 = vadd.f32 %v5381_v4, %v5380_v63  ;;  %v5383_v9 = vpop.f32.mrb[74].mxu1 }
 0x18a   :  { %4105 = vmatmul.mubr.bf16.gmra.mrb[180].mxu0 %v6387_v23  ;;  %v5384_v13 = vpop.f32.mrb[75].mxu1  ;;  %v6419_v23 = vld [vmem:[%s8105_s0 + $0x68] ss:$108 sps:$4 sm:$0xff]  }
 0x18b   :  { %v3504_v12 = vadd.f32 %v5321_v3, %v7584_v49  ;;  %4112 = vmatprep.mubr.bf16.mxu0 %v6395_v5  ;;  %v7793_v14 = vadd.f32 %v5382_v8, %v3501_v1  ;;  %v5385_v46 = vadd.f32 %v5384_v13, %v5383_v9  ;;  %v6405_v49 = vld [vmem:[%s8105_s0 + $0x63c] ss:$108 sps:$4 sm:$0xff]   ;;  %v6415_v3 = vld [vmem:[%s8105_s0 + $0x60] ss:$108 sps:$4 sm:$0xff]  }
 0x18c   :  { %4202 = vmatmul.mubr.bf16.gmra.mrb[180].mxu1 %v6393_v6 }
 0x18d   :  { %v5322_v21 = vpop.f32.mrb[76].mxu0  ;;  %v7795_v38 = vadd.f32 %v5385_v46, %v3504_v12  ;;  %4209 = vmatprep.mubr.bf16.mxu1 %v6400_v32  ;;  %v6420_v46 = vld [vmem:[%s8105_s0 + $0x140] ss:$108 sps:$4 sm:$0xff]  }
 0x18e   :  { %v5323_v16 = vpop.f32.mrb[77].mxu0 }
 0x18f   :  { %v5324_v18 = vadd.f32 %v5323_v16, %v5322_v21  ;;  %v5325_v19 = vpop.f32.mrb[78].mxu0  ;;  %v5386_v22 = vpop.f32.mrb[76].mxu1 }
 0x190   :  { %v5326_v24 = vpop.f32.mrb[79].mxu0  ;;  %v5387_v56 = vpop.f32.mrb[77].mxu1 }
 0x191   :  { %v3509_v25 = vadd.f32 %v5324_v18, %v7600_v7  ;;  %v5327_v58 = vadd.f32 %v5326_v24, %v5325_v19  ;;  %v5388_v29 = vadd.f32 %v5387_v56, %v5386_v22  ;;  %v5389_v0 = vpop.f32.mrb[78].mxu1 }
 0x192   :  { %4113 = vmatmul.mubr.bf16.gmra.mrb[184].mxu0 %v6397_v17  ;;  %v5390_v39 = vpop.f32.mrb[79].mxu1  ;;  %v6427_v17 = vld [vmem:[%s8105_s0 + $0x218] ss:$108 sps:$4 sm:$0xff]  }
 0x193   :  { %v3512_v37 = vadd.f32 %v5327_v58, %v7602_v11  ;;  %4120 = vmatprep.mubr.bf16.mxu0 %v6405_v49  ;;  %v7811_v40 = vadd.f32 %v5388_v29, %v3509_v25  ;;  %v5391_v7 = vadd.f32 %v5390_v39, %v5389_v0  ;;  %v6417_v11 = vld [vmem:[%s8105_s0 + $0x64] ss:$108 sps:$4 sm:$0xff]  }
 0x194   :  { %4210 = vmatmul.mubr.bf16.gmra.mrb[184].mxu1 %v6403_v28  ;;  %v6423_v58 = vld [vmem:[%s8105_s0 + $0x138] ss:$108 sps:$4 sm:$0xff]  }
 0x195   :  { %v5328_v60 = vpop.f32.mrb[80].mxu0  ;;  %v7813_v41 = vadd.f32 %v5391_v7, %v3512_v37  ;;  %4217 = vmatprep.mubr.bf16.mxu1 %v6410_v61  ;;  %v6428_v7 = vld [vmem:[%s8105_s0 + $0x2f0] ss:$108 sps:$4 sm:$0xff]  }
 0x196   :  { %v5329_v42 = vpop.f32.mrb[81].mxu0 }
 0x197   :  { %v5330_v44 = vadd.f32 %v5329_v42, %v5328_v60  ;;  %v5331_v45 = vpop.f32.mrb[82].mxu0  ;;  %v5392_v47 = vpop.f32.mrb[80].mxu1 }
 0x198   :  { %v5332_v48 = vpop.f32.mrb[83].mxu0  ;;  %v5393_v31 = vpop.f32.mrb[81].mxu1 }
 0x199   :  { %v3517_v10 = vadd.f32 %v5330_v44, %v7618_v30  ;;  %v5333_v50 = vadd.f32 %v5332_v48, %v5331_v45  ;;  %v5394_v15 = vadd.f32 %v5393_v31, %v5392_v47  ;;  %v5395_v57 = vpop.f32.mrb[82].mxu1 }
 0x19a   :  { %4121 = vmatmul.mubr.bf16.gmra.mrb[188].mxu0 %v6407_v43  ;;  %v5396_v36 = vpop.f32.mrb[83].mxu1  ;;  %v6435_v43 = vld [vmem:[%s8105_s0 + $0x3c8] ss:$108 sps:$4 sm:$0xff]  }
 0x19b   :  { %v3520_v20 = vadd.f32 %v5333_v50, %v7620_v35  ;;  %4258 = vmatprep.mubr.bf16.mxu0 %v6417_v11  ;;  %v7829_v5 = vadd.f32 %v5394_v15, %v3517_v10  ;;  %v5397_v30 = vadd.f32 %v5396_v36, %v5395_v57  ;;  %v6421_v35 = vld [vmem:[%s8105_s0 + $0x13c] ss:$108 sps:$4 sm:$0xff]  }
 0x19c   :  { %4218 = vmatmul.mubr.bf16.gmra.mrb[188].mxu1 %v6413_v53  ;;  %v6426_v50 = vld [vmem:[%s8105_s0 + $0x210] ss:$108 sps:$4 sm:$0xff]  }
 0x19d   :  { %v5334_v63 = vpop.f32.mrb[84].mxu0  ;;  %v7831_v33 = vadd.f32 %v5397_v30, %v3520_v20  ;;  %5896 = vmatprep.mubr.bf16.mxu1 %v6419_v23  ;;  %v6436_v30 = vld [vmem:[%s8105_s0 + $0x4a0] ss:$108 sps:$4 sm:$0xff]  }
 0x19e   :  { %v5335_v1 = vpop.f32.mrb[85].mxu0 }
 0x19f   :  { %v5336_v4 = vadd.f32 %v5335_v1, %v5334_v63  ;;  %v5337_v6 = vpop.f32.mrb[86].mxu0  ;;  %v5398_v8 = vpop.f32.mrb[84].mxu1 }
 0x1a0   :  { %v5338_v9 = vpop.f32.mrb[87].mxu0  ;;  %v5399_v13 = vpop.f32.mrb[85].mxu1 }
 0x1a1   :  { %v3525_v32 = vadd.f32 %v5336_v4, %v7648_v62  ;;  %v5339_v12 = vadd.f32 %v5338_v9, %v5337_v6  ;;  %v5400_v21 = vadd.f32 %v5399_v13, %v5398_v8  ;;  %v5401_v16 = vpop.f32.mrb[86].mxu1 }
 0x1a2   :  { %4259 = vmatmul.mubr.bf16.vlgmr.msra.gmra.mrb[192].mxu0 %v6415_v3  ;;  %v5402_v19 = vpop.f32.mrb[87].mxu1  ;;  %v6443_v3 = vld [vmem:[%s8105_s0 + $0x578] ss:$108 sps:$4 sm:$0xff]  }
 0x1a3   :  { %v3528_v18 = vadd.f32 %v5339_v12, %v7656_v2  ;;  %4266 = vmatprep.mubr.bf16.mxu0 %v6421_v35  ;;  %v7847_v49 = vadd.f32 %v5400_v21, %v3525_v32  ;;  %v5403_v62 = vadd.f32 %v5402_v19, %v5401_v16  ;;  %v6424_v2 = vld [vmem:[%s8105_s0 + $0x214] ss:$108 sps:$4 sm:$0xff]  }
 0x1a4   :  { %5897 = vmatmul.mubr.bf16.vlgmr.msra.gmra.mrb[192].mxu1 %v6420_v46  ;;  %v6431_v12 = vld [vmem:[%s8105_s0 + $0x2e8] ss:$108 sps:$4 sm:$0xff]  }
 0x1a5   :  { %v5340_v22 = vpop.f32.mrb[88].mxu0  ;;  %v7849_v24 = vadd.f32 %v5403_v62, %v3528_v18  ;;  %5900 = vmatprep.mubr.bf16.mxu1 %v6427_v17  ;;  %v6444_v62 = vld [vmem:[%s8105_s0 + $0x650] ss:$108 sps:$4 sm:$0xff]  }
 0x1a6   :  { %v5341_v25 = vpop.f32.mrb[89].mxu0 }
 0x1a7   :  { %v5342_v56 = vadd.f32 %v5341_v25, %v5340_v22  ;;  %v5343_v28 = vpop.f32.mrb[90].mxu0  ;;  %v5404_v29 = vpop.f32.mrb[88].mxu1 }
 0x1a8   :  { %v5344_v0 = vpop.f32.mrb[91].mxu0  ;;  %v5405_v39 = vpop.f32.mrb[89].mxu1 }
 0x1a9   :  { %v3533_v61 = vadd.f32 %v5342_v56, %v7685_v27  ;;  %v5345_v37 = vadd.f32 %v5344_v0, %v5343_v28  ;;  %v5406_v60 = vadd.f32 %v5405_v39, %v5404_v29  ;;  %v5407_v42 = vpop.f32.mrb[90].mxu1 }
 0x1aa   :  { %4267 = vmatmul.mubr.bf16.gmra.mrb[196].mxu0 %v6423_v58  ;;  %v5408_v45 = vpop.f32.mrb[91].mxu1 }
 0x1ab   :  { %v3536_v44 = vadd.f32 %v5345_v37, %v7690_v34  ;;  %4274 = vmatprep.mubr.bf16.mxu0 %v6424_v2  ;;  %v7865_v11 = vadd.f32 %v5406_v60, %v3533_v61  ;;  %v5409_v27 = vadd.f32 %v5408_v45, %v5407_v42  ;;  %v6429_v34 = vld [vmem:[%s8105_s0 + $0x2ec] ss:$108 sps:$4 sm:$0xff]  }
 0x1ac   :  { %5901 = vmatmul.mubr.bf16.gmra.mrb[196].mxu1 %v6428_v7  ;;  %v6434_v61 = vld [vmem:[%s8105_s0 + $0x3c0] ss:$108 sps:$4 sm:$0xff]  }
 0x1ad   :  { %v5346_v47 = vpop.f32.mrb[92].mxu0  ;;  %v7867_v48 = vadd.f32 %v5409_v27, %v3536_v44  ;;  %5904 = vmatprep.mubr.bf16.mxu1 %v6435_v43 }
 0x1ae   :  { %v5347_v10 = vpop.f32.mrb[93].mxu0 }
 0x1af   :  { %v5348_v31 = vadd.f32 %v5347_v10, %v5346_v47  ;;  %v5349_v53 = vpop.f32.mrb[94].mxu0  ;;  %v5410_v15 = vpop.f32.mrb[92].mxu1 }
 0x1b0   :  { %v5350_v57 = vpop.f32.mrb[95].mxu0  ;;  %v5411_v36 = vpop.f32.mrb[93].mxu1 }
 0x1b1   :  { %v3541_v23 = vadd.f32 %v5348_v31, %v7721_v59  ;;  %v5351_v20 = vadd.f32 %v5350_v57, %v5349_v53  ;;  %v5412_v63 = vadd.f32 %v5411_v36, %v5410_v15  ;;  %v5413_v1 = vpop.f32.mrb[94].mxu1 }
 0x1b2   :  { %4275 = vmatmul.mubr.bf16.gmra.mrb[200].mxu0 %v6426_v50  ;;  %v5414_v6 = vpop.f32.mrb[95].mxu1 }
 0x1b3   :  { %v3544_v4 = vadd.f32 %v5351_v20, %v7726_v26  ;;  %4282 = vmatprep.mubr.bf16.mxu0 %v6429_v34  ;;  %v7883_v35 = vadd.f32 %v5412_v63, %v3541_v23  ;;  %v5415_v59 = vadd.f32 %v5414_v6, %v5413_v1  ;;  %v6432_v26 = vld [vmem:[%s8105_s0 + $0x3c4] ss:$108 sps:$4 sm:$0xff]   ;;  %v6440_v20 = vld [vmem:[%s8105_s0 + $0x574] ss:$108 sps:$4 sm:$0xff]  }
 0x1b4   :  { %5905 = vmatmul.mubr.bf16.gmra.mrb[200].mxu1 %v6436_v30 }
 0x1b5   :  { %v5432_v8 = vpop.f32.mrb[96].mxu0  ;;  %v7885_v9 = vadd.f32 %v5415_v59, %v3544_v4  ;;  %5908 = vmatprep.mubr.bf16.mxu1 %v6443_v3 }
 0x1b6   :  { %v5433_v32 = vpop.f32.mrb[97].mxu0 }
 0x1b7   :  { %v5434_v13 = vadd.f32 %v5433_v32, %v5432_v8  ;;  %v5435_v46 = vpop.f32.mrb[98].mxu0  ;;  %v5496_v21 = vpop.f32.mrb[96].mxu1 }
 0x1b8   :  { %v5436_v16 = vpop.f32.mrb[99].mxu0  ;;  %v5497_v19 = vpop.f32.mrb[97].mxu1 }
 0x1b9   :  { %v3679_v17 = vadd.f32 %v5434_v13, %v7757_v52  ;;  %v5437_v18 = vadd.f32 %v5436_v16, %v5435_v46  ;;  %v5498_v22 = vadd.f32 %v5497_v19, %v5496_v21  ;;  %v5499_v25 = vpop.f32.mrb[98].mxu1  ;;  %v6445_v16 = vld [vmem:[%s8105_s0 + $0x64c] ss:$108 sps:$4 sm:$0xff]  }
 0x1ba   :  { %4283 = vmatmul.mubr.bf16.gmra.mrb[204].mxu0 %v6431_v12  ;;  %v5500_v56 = vpop.f32.mrb[99].mxu1 }
 0x1bb   :  { %v3682_v58 = vadd.f32 %v5437_v18, %v7759_v54  ;;  %4290 = vmatprep.mubr.bf16.mxu0 %v6432_v26  ;;  %v7898_v28 = vadd.f32 %v5498_v22, %v3679_v17  ;;  %v5501_v2 = vadd.f32 %v5500_v56, %v5499_v25  ;;  %v6437_v54 = vld [vmem:[%s8105_s0 + $0x49c] ss:$108 sps:$4 sm:$0xff]  }
 0x1bc   :  { %5909 = vmatmul.mubr.bf16.gmra.mrb[204].mxu1 %v6444_v62 }
 0x1bd   :  { %v5438_v29 = vpop.f32.mrb[100].mxu0  ;;  %v7900_v0 = vadd.f32 %v5501_v2, %v3682_v58 }
 0x1be   :  { %v5439_v52 = vpop.f32.mrb[101].mxu0 }
 0x1bf   :  { %v5440_v37 = vadd.f32 %v5439_v52, %v5438_v29  ;;  %v5441_v39 = vpop.f32.mrb[102].mxu0  ;;  %v5502_v7 = vpop.f32.mrb[100].mxu1 }
 0x1c0   :  { %v5442_v60 = vpop.f32.mrb[103].mxu0  ;;  %v5503_v44 = vpop.f32.mrb[101].mxu1 }
 0x1c1   :  { %v3687_v42 = vadd.f32 %v5440_v37, %v7775_v51  ;;  %v5443_v43 = vadd.f32 %v5442_v60, %v5441_v39  ;;  %v5504_v45 = vadd.f32 %v5503_v44, %v5502_v7  ;;  %v5505_v27 = vpop.f32.mrb[102].mxu1  ;;  %v6439_v51 = vld [vmem:[%s8105_s0 + $0x498] ss:$108 sps:$4 sm:$0xff]  }
 0x1c2   :  { %4291 = vmatmul.mubr.bf16.gmra.mrb[208].mxu0 %v6434_v61  ;;  %v5506_v10 = vpop.f32.mrb[103].mxu1 }
 0x1c3   :  { %v3690_v47 = vadd.f32 %v5443_v43, %v7777_v55  ;;  %4298 = vmatprep.mubr.bf16.mxu0 %v6437_v54  ;;  %v7910_v50 = vadd.f32 %v5504_v45, %v3687_v42  ;;  %v5507_v31 = vadd.f32 %v5506_v10, %v5505_v27 }
 0x1c5   :  { %v5444_v53 = vpop.f32.mrb[104].mxu0  ;;  %v7912_v34 = vadd.f32 %v5507_v31, %v3690_v47 }
 0x1c6   :  { %v5445_v15 = vpop.f32.mrb[105].mxu0 }
 0x1c7   :  { %v5446_v57 = vadd.f32 %v5445_v15, %v5444_v53  ;;  %v5447_v23 = vpop.f32.mrb[106].mxu0  ;;  %v5508_v55 = vpop.f32.mrb[104].mxu1 }
 0x1c8   :  { %v5448_v36 = vpop.f32.mrb[107].mxu0  ;;  %v5509_v1 = vpop.f32.mrb[105].mxu1 }
 0x1c9   :  { %v3695_v30 = vadd.f32 %v5446_v57, %v7793_v14  ;;  %v5449_v63 = vadd.f32 %v5448_v36, %v5447_v23  ;;  %v5510_v3 = vadd.f32 %v5509_v1, %v5508_v55  ;;  %v5511_v4 = vpop.f32.mrb[106].mxu1  ;;  %v6442_v14 = vld [vmem:[%s8105_s0 + $0x570] ss:$108 sps:$4 sm:$0xff]  }
 0x1ca   :  { %4299 = vmatmul.mubr.bf16.gmra.mrb[212].mxu0 %v6439_v51  ;;  %v5512_v59 = vpop.f32.mrb[107].mxu1 }
 0x1cb   :  { %v3698_v6 = vadd.f32 %v5449_v63, %v7795_v38  ;;  %4306 = vmatprep.mubr.bf16.mxu0 %v6440_v20  ;;  %v7922_v8 = vadd.f32 %v5510_v3, %v3695_v30  ;;  %v5513_v32 = vadd.f32 %v5512_v59, %v5511_v4 }
 0x1cd   :  { %v5450_v12 = vpop.f32.mrb[108].mxu0  ;;  %v7924_v13 = vadd.f32 %v5513_v32, %v3698_v6 }
 0x1ce   :  { %v5451_v46 = vpop.f32.mrb[109].mxu0 }
 0x1cf   :  { %v5452_v26 = vadd.f32 %v5451_v46, %v5450_v12  ;;  %v5453_v21 = vpop.f32.mrb[110].mxu0  ;;  %v5514_v38 = vpop.f32.mrb[108].mxu1 }
 0x1d0   :  { %v5454_v17 = vpop.f32.mrb[111].mxu0  ;;  %v5515_v62 = vpop.f32.mrb[109].mxu1 }
 0x1d1   :  { %v3703_v18 = vadd.f32 %v5452_v26, %v7811_v40  ;;  %v5455_v19 = vadd.f32 %v5454_v17, %v5453_v21  ;;  %v5516_v22 = vadd.f32 %v5515_v62, %v5514_v38  ;;  %v5517_v25 = vpop.f32.mrb[110].mxu1  ;;  %v6447_v40 = vld [vmem:[%s8105_s0 + $0x648] ss:$108 sps:$4 sm:$0xff]  }
 0x1d2   :  { %4307 = vmatmul.mubr.bf16.gmra.mrb[216].mxu0 %v6442_v14  ;;  %v5518_v56 = vpop.f32.mrb[111].mxu1 }
 0x1d3   :  { %v3706_v58 = vadd.f32 %v5455_v19, %v7813_v41  ;;  %4314 = vmatprep.mubr.bf16.mxu0 %v6445_v16  ;;  %v7934_v2 = vadd.f32 %v5516_v22, %v3703_v18  ;;  %v5519_v29 = vadd.f32 %v5518_v56, %v5517_v25 }
 0x1d5   :  { %v5456_v52 = vpop.f32.mrb[112].mxu0  ;;  %v7936_v61 = vadd.f32 %v5519_v29, %v3706_v58 }
 0x1d6   :  { %v5457_v37 = vpop.f32.mrb[113].mxu0 }
 0x1d7   :  { %v5458_v39 = vadd.f32 %v5457_v37, %v5456_v52  ;;  %v5459_v54 = vpop.f32.mrb[114].mxu0  ;;  %v5520_v7 = vpop.f32.mrb[112].mxu1 }
 0x1d8   :  { %v5460_v60 = vpop.f32.mrb[115].mxu0  ;;  %v5521_v43 = vpop.f32.mrb[113].mxu1 }
 0x1d9   :  { %v3711_v42 = vadd.f32 %v5458_v39, %v7829_v5  ;;  %v5461_v41 = vadd.f32 %v5460_v60, %v5459_v54  ;;  %v5522_v44 = vadd.f32 %v5521_v43, %v5520_v7  ;;  %v5523_v45 = vpop.f32.mrb[114].mxu1 }
 0x1da   :  { %4315 = vmatmul.mubr.bf16.gmra.mrb[220].mxu0 %v6447_v40  ;;  %v5524_v47 = vpop.f32.mrb[115].mxu1 }
 0x1db   :  { %v3714_v27 = vadd.f32 %v5461_v41, %v7831_v33  ;;  %v7943_v10 = vadd.f32 %v5522_v44, %v3711_v42  ;;  %v5525_v31 = vadd.f32 %v5524_v47, %v5523_v45 }
 0x1dd   :  { %v5462_v53 = vpop.f32.mrb[116].mxu0  ;;  %v7945_v15 = vadd.f32 %v5525_v31, %v3714_v27 }
 0x1de   :  { %v5463_v51 = vpop.f32.mrb[117].mxu0 }
 0x1df   :  { %v5464_v57 = vadd.f32 %v5463_v51, %v5462_v53  ;;  %v5465_v23 = vpop.f32.mrb[118].mxu0  ;;  %v5526_v20 = vpop.f32.mrb[116].mxu1 }
 0x1e0   :  { %v5466_v55 = vpop.f32.mrb[119].mxu0  ;;  %v5527_v30 = vpop.f32.mrb[117].mxu1 }
 0x1e1   :  { %v3719_v5 = vadd.f32 %v5464_v57, %v7847_v49  ;;  %v5467_v36 = vadd.f32 %v5466_v55, %v5465_v23  ;;  %v5528_v63 = vadd.f32 %v5527_v30, %v5526_v20  ;;  %v5529_v1 = vpop.f32.mrb[118].mxu1 }
 0x1e2   :  { %v5530_v3 = vpop.f32.mrb[119].mxu1 }
 0x1e3   :  { %v3722_v33 = vadd.f32 %v5467_v36, %v7849_v24  ;;  %v7949_v4 = vadd.f32 %v5528_v63, %v3719_v5  ;;  %v5531_v6 = vadd.f32 %v5530_v3, %v5529_v1 }
 0x1e5   :  { %v5468_v59 = vpop.f32.mrb[120].mxu0  ;;  %v7951_v32 = vadd.f32 %v5531_v6, %v3722_v33 }
 0x1e6   :  { %v5469_v12 = vpop.f32.mrb[121].mxu0 }
 0x1e7   :  { %v5470_v46 = vadd.f32 %v5469_v12, %v5468_v59  ;;  %v5471_v14 = vpop.f32.mrb[122].mxu0  ;;  %v5532_v26 = vpop.f32.mrb[120].mxu1 }
 0x1e8   :  { %v5472_v21 = vpop.f32.mrb[123].mxu0  ;;  %v5533_v38 = vpop.f32.mrb[121].mxu1 }
 0x1e9   :  { %v3727_v49 = vadd.f32 %v5470_v46, %v7865_v11  ;;  %v5473_v16 = vadd.f32 %v5472_v21, %v5471_v14  ;;  %v5534_v17 = vadd.f32 %v5533_v38, %v5532_v26  ;;  %v5535_v18 = vpop.f32.mrb[122].mxu1 }
 0x1ea   :  { %v5536_v19 = vpop.f32.mrb[123].mxu1 }
 0x1eb   :  { %v3730_v24 = vadd.f32 %v5473_v16, %v7867_v48  ;;  %v7955_v62 = vadd.f32 %v5534_v17, %v3727_v49  ;;  %v5537_v22 = vadd.f32 %v5536_v19, %v5535_v18 }
 0x1ed   :  { %v5474_v25 = vpop.f32.mrb[124].mxu0  ;;  %v7957_v58 = vadd.f32 %v5537_v22, %v3730_v24 }
 0x1ee   :  { %v5475_v56 = vpop.f32.mrb[125].mxu0 }
 0x1ef   :  { %v5476_v29 = vadd.f32 %v5475_v56, %v5474_v25  ;;  %v5477_v52 = vpop.f32.mrb[126].mxu0  ;;  %v5538_v37 = vpop.f32.mrb[124].mxu1 }
 0x1f0   :  { %v5478_v40 = vpop.f32.mrb[127].mxu0  ;;  %v5539_v54 = vpop.f32.mrb[125].mxu1 }
 0x1f1   :  { %v3735_v11 = vadd.f32 %v5476_v29, %v7883_v35  ;;  %v5479_v39 = vadd.f32 %v5478_v40, %v5477_v52  ;;  %v5540_v7 = vadd.f32 %v5539_v54, %v5538_v37  ;;  %v5541_v60 = vpop.f32.mrb[126].mxu1 }
 0x1f2   :  { %v5542_v42 = vpop.f32.mrb[127].mxu1 }
 0x1f3   :  { %v3738_v48 = vadd.f32 %v5479_v39, %v7885_v9  ;;  %v7961_v41 = vadd.f32 %v5540_v7, %v3735_v11  ;;  %v5543_v43 = vadd.f32 %v5542_v42, %v5541_v60 }
 0x1f5   :  { %v5560_v44 = vpop.f32.mrb[128].mxu0  ;;  %v7963_v45 = vadd.f32 %v5543_v43, %v3738_v48 }
 0x1f6   :  { %v5561_v27 = vpop.f32.mrb[129].mxu0 }
 0x1f7   :  { %v5562_v47 = vadd.f32 %v5561_v27, %v5560_v44  ;;  %v5563_v31 = vpop.f32.mrb[130].mxu0  ;;  %v5624_v53 = vpop.f32.mrb[128].mxu1 }
 0x1f8   :  { %v5564_v51 = vpop.f32.mrb[131].mxu0  ;;  %v5625_v23 = vpop.f32.mrb[129].mxu1 }
 0x1f9   :  { %v3873_v35 = vadd.f32 %v5562_v47, %v7898_v28  ;;  %v5565_v57 = vadd.f32 %v5564_v51, %v5563_v31  ;;  %v5626_v20 = vadd.f32 %v5625_v23, %v5624_v53  ;;  %v5627_v55 = vpop.f32.mrb[130].mxu1 }
 0x1fa   :  { %v5628_v5 = vpop.f32.mrb[131].mxu1 }
 0x1fb   :  { %v3876_v9 = vadd.f32 %v5565_v57, %v7900_v0  ;;  %v7967_v36 = vadd.f32 %v5626_v20, %v3873_v35  ;;  %v5629_v30 = vadd.f32 %v5628_v5, %v5627_v55 }
 0x1fd   :  { %v5566_v63 = vpop.f32.mrb[132].mxu0  ;;  %v7969_v1 = vadd.f32 %v5629_v30, %v3876_v9 }
 0x1fe   :  { %v5567_v33 = vpop.f32.mrb[133].mxu0 }
 0x1ff   :  { %v5568_v3 = vadd.f32 %v5567_v33, %v5566_v63  ;;  %v5569_v6 = vpop.f32.mrb[134].mxu0  ;;  %v5630_v59 = vpop.f32.mrb[132].mxu1 }
 0x200   :  { %v5570_v12 = vpop.f32.mrb[135].mxu0  ;;  %v5631_v14 = vpop.f32.mrb[133].mxu1 }
 0x201   :  { %v3881_v28 = vadd.f32 %v5568_v3, %v7910_v50  ;;  %v5571_v46 = vadd.f32 %v5570_v12, %v5569_v6  ;;  %v5632_v26 = vadd.f32 %v5631_v14, %v5630_v59  ;;  %v5633_v21 = vpop.f32.mrb[134].mxu1 }
 0x202   :  { %v5634_v49 = vpop.f32.mrb[135].mxu1 }
 0x203   :  { %v3884_v0 = vadd.f32 %v5571_v46, %v7912_v34  ;;  %v7973_v16 = vadd.f32 %v5632_v26, %v3881_v28  ;;  %v5635_v38 = vadd.f32 %v5634_v49, %v5633_v21 }
 0x205   :  { %v5572_v17 = vpop.f32.mrb[136].mxu0  ;;  %v7975_v18 = vadd.f32 %v5635_v38, %v3884_v0 }
 0x206   :  { %v5573_v24 = vpop.f32.mrb[137].mxu0 }
 0x207   :  { %v5574_v19 = vadd.f32 %v5573_v24, %v5572_v17  ;;  %v5575_v22 = vpop.f32.mrb[138].mxu0  ;;  %v5636_v25 = vpop.f32.mrb[136].mxu1 }
 0x208   :  { %v5576_v56 = vpop.f32.mrb[139].mxu0  ;;  %v5637_v52 = vpop.f32.mrb[137].mxu1 }
 0x209   :  { %v3889_v50 = vadd.f32 %v5574_v19, %v7922_v8  ;;  %v5577_v29 = vadd.f32 %v5576_v56, %v5575_v22  ;;  %v5638_v37 = vadd.f32 %v5637_v52, %v5636_v25  ;;  %v5639_v40 = vpop.f32.mrb[138].mxu1 }
 0x20a   :  { %v5640_v11 = vpop.f32.mrb[139].mxu1 }
 0x20b   :  { %v3892_v34 = vadd.f32 %v5577_v29, %v7924_v13  ;;  %v7979_v39 = vadd.f32 %v5638_v37, %v3889_v50  ;;  %v5641_v54 = vadd.f32 %v5640_v11, %v5639_v40 }
 0x20d   :  { %v5578_v7 = vpop.f32.mrb[140].mxu0  ;;  %v7981_v60 = vadd.f32 %v5641_v54, %v3892_v34 }
 0x20e   :  { %v5579_v48 = vpop.f32.mrb[141].mxu0 }
 0x20f   :  { %v5580_v42 = vadd.f32 %v5579_v48, %v5578_v7  ;;  %v5581_v43 = vpop.f32.mrb[142].mxu0  ;;  %v5642_v44 = vpop.f32.mrb[140].mxu1 }
 0x210   :  { %v5582_v27 = vpop.f32.mrb[143].mxu0  ;;  %v5643_v31 = vpop.f32.mrb[141].mxu1 }
 0x211   :  { %v3897_v8 = vadd.f32 %v5580_v42, %v7934_v2  ;;  %v5583_v47 = vadd.f32 %v5582_v27, %v5581_v43  ;;  %v5644_v53 = vadd.f32 %v5643_v31, %v5642_v44  ;;  %v5645_v51 = vpop.f32.mrb[142].mxu1 }
 0x212   :  { %v5646_v35 = vpop.f32.mrb[143].mxu1 }
 0x213   :  { %v3900_v13 = vadd.f32 %v5583_v47, %v7936_v61  ;;  %v7985_v57 = vadd.f32 %v5644_v53, %v3897_v8  ;;  %v5647_v23 = vadd.f32 %v5646_v35, %v5645_v51 }
 0x215   :  { %v5584_v20 = vpop.f32.mrb[144].mxu0  ;;  %v7987_v55 = vadd.f32 %v5647_v23, %v3900_v13 }
 0x216   :  { %v5585_v9 = vpop.f32.mrb[145].mxu0 }
 0x217   :  { %v5586_v5 = vadd.f32 %v5585_v9, %v5584_v20  ;;  %v5587_v30 = vpop.f32.mrb[146].mxu0  ;;  %v5648_v63 = vpop.f32.mrb[144].mxu1 }
 0x218   :  { %v5588_v33 = vpop.f32.mrb[147].mxu0  ;;  %v5649_v6 = vpop.f32.mrb[145].mxu1 }
 0x219   :  { %v3905_v2 = vadd.f32 %v5586_v5, %v7943_v10  ;;  %v5589_v3 = vadd.f32 %v5588_v33, %v5587_v30  ;;  %v5650_v59 = vadd.f32 %v5649_v6, %v5648_v63  ;;  %v5651_v12 = vpop.f32.mrb[146].mxu1 }
 0x21a   :  { %v5652_v28 = vpop.f32.mrb[147].mxu1 }
 0x21b   :  { %v3908_v61 = vadd.f32 %v5589_v3, %v7945_v15  ;;  %v7991_v46 = vadd.f32 %v5650_v59, %v3905_v2  ;;  %v5653_v14 = vadd.f32 %v5652_v28, %v5651_v12 }
 0x21d   :  { %v5590_v26 = vpop.f32.mrb[148].mxu0  ;;  %v7993_v21 = vadd.f32 %v5653_v14, %v3908_v61 }
 0x21e   :  { %v5591_v0 = vpop.f32.mrb[149].mxu0 }
 0x21f   :  { %v5592_v49 = vadd.f32 %v5591_v0, %v5590_v26  ;;  %v5593_v38 = vpop.f32.mrb[150].mxu0  ;;  %v5654_v17 = vpop.f32.mrb[148].mxu1 }
 0x220   :  { %v5594_v24 = vpop.f32.mrb[151].mxu0  ;;  %v5655_v22 = vpop.f32.mrb[149].mxu1 }
 0x221   :  { %v3913_v10 = vadd.f32 %v5592_v49, %v7949_v4  ;;  %v5595_v19 = vadd.f32 %v5594_v24, %v5593_v38  ;;  %v5656_v25 = vadd.f32 %v5655_v22, %v5654_v17  ;;  %v5657_v56 = vpop.f32.mrb[150].mxu1 }
 0x222   :  { %v5658_v50 = vpop.f32.mrb[151].mxu1 }
 0x223   :  { %v3916_v15 = vadd.f32 %v5595_v19, %v7951_v32  ;;  %v7997_v29 = vadd.f32 %v5656_v25, %v3913_v10  ;;  %v5659_v52 = vadd.f32 %v5658_v50, %v5657_v56 }
 0x225   :  { %v5596_v37 = vpop.f32.mrb[152].mxu0  ;;  %v7999_v40 = vadd.f32 %v5659_v52, %v3916_v15 }
 0x226   :  { %v5597_v34 = vpop.f32.mrb[153].mxu0 }
 0x227   :  { %v5598_v11 = vadd.f32 %v5597_v34, %v5596_v37  ;;  %v5599_v54 = vpop.f32.mrb[154].mxu0  ;;  %v5660_v7 = vpop.f32.mrb[152].mxu1 }
 0x228   :  { %v5600_v48 = vpop.f32.mrb[155].mxu0  ;;  %v5661_v43 = vpop.f32.mrb[153].mxu1 }
 0x229   :  { %v3921_v4 = vadd.f32 %v5598_v11, %v7955_v62  ;;  %v5601_v42 = vadd.f32 %v5600_v48, %v5599_v54  ;;  %v5662_v44 = vadd.f32 %v5661_v43, %v5660_v7  ;;  %v5663_v27 = vpop.f32.mrb[154].mxu1 }
 0x22a   :  { %v5664_v8 = vpop.f32.mrb[155].mxu1 }
 0x22b   :  { %v3924_v32 = vadd.f32 %v5601_v42, %v7957_v58  ;;  %v8003_v47 = vadd.f32 %v5662_v44, %v3921_v4  ;;  %v5665_v31 = vadd.f32 %v5664_v8, %v5663_v27 }
 0x22d   :  { %v5602_v53 = vpop.f32.mrb[156].mxu0  ;;  %v8005_v51 = vadd.f32 %v5665_v31, %v3924_v32 }
 0x22e   :  { %v5603_v13 = vpop.f32.mrb[157].mxu0 }
 0x22f   :  { %v5604_v35 = vadd.f32 %v5603_v13, %v5602_v53  ;;  %v5605_v23 = vpop.f32.mrb[158].mxu0  ;;  %v5666_v20 = vpop.f32.mrb[156].mxu1 }
 0x230   :  { %v5606_v9 = vpop.f32.mrb[159].mxu0  ;;  %v5667_v30 = vpop.f32.mrb[157].mxu1 }
 0x231   :  { %v3929_v62 = vadd.f32 %v5604_v35, %v7961_v41  ;;  %v5607_v5 = vadd.f32 %v5606_v9, %v5605_v23  ;;  %v5668_v63 = vadd.f32 %v5667_v30, %v5666_v20  ;;  %v5669_v33 = vpop.f32.mrb[158].mxu1 }
 0x232   :  { %v5670_v2 = vpop.f32.mrb[159].mxu1 }
 0x233   :  { %v3932_v58 = vadd.f32 %v5607_v5, %v7963_v45  ;;  %v8009_v3 = vadd.f32 %v5668_v63, %v3929_v62  ;;  %v5671_v6 = vadd.f32 %v5670_v2, %v5669_v33 }
 0x235   :  { %v5688_v59 = vpop.f32.mrb[160].mxu0  ;;  %v8011_v12 = vadd.f32 %v5671_v6, %v3932_v58 }
 0x236   :  { %v5689_v61 = vpop.f32.mrb[161].mxu0 }
 0x237   :  { %v5690_v28 = vadd.f32 %v5689_v61, %v5688_v59  ;;  %v5691_v14 = vpop.f32.mrb[162].mxu0  ;;  %v5752_v26 = vpop.f32.mrb[160].mxu1 }
 0x238   :  { %v5692_v0 = vpop.f32.mrb[163].mxu0  ;;  %v5753_v38 = vpop.f32.mrb[161].mxu1 }
 0x239   :  { %v4067_v41 = vadd.f32 %v5690_v28, %v7967_v36  ;;  %v5693_v49 = vadd.f32 %v5692_v0, %v5691_v14  ;;  %v5754_v17 = vadd.f32 %v5753_v38, %v5752_v26  ;;  %v5755_v24 = vpop.f32.mrb[162].mxu1 }
 0x23a   :  { %v5756_v10 = vpop.f32.mrb[163].mxu1 }
 0x23b   :  { %v4070_v45 = vadd.f32 %v5693_v49, %v7969_v1  ;;  %v8015_v19 = vadd.f32 %v5754_v17, %v4067_v41  ;;  %v5757_v22 = vadd.f32 %v5756_v10, %v5755_v24 }
 0x23d   :  { %v5694_v25 = vpop.f32.mrb[164].mxu0  ;;  %v8017_v56 = vadd.f32 %v5757_v22, %v4070_v45 }
 0x23e   :  { %v5695_v15 = vpop.f32.mrb[165].mxu0 }
 0x23f   :  { %v5696_v50 = vadd.f32 %v5695_v15, %v5694_v25  ;;  %v5697_v52 = vpop.f32.mrb[166].mxu0  ;;  %v5758_v37 = vpop.f32.mrb[164].mxu1 }
 0x240   :  { %v5698_v34 = vpop.f32.mrb[167].mxu0  ;;  %v5759_v54 = vpop.f32.mrb[165].mxu1 }
 0x241   :  { %v4075_v36 = vadd.f32 %v5696_v50, %v7973_v16  ;;  %v5699_v11 = vadd.f32 %v5698_v34, %v5697_v52  ;;  %v5760_v7 = vadd.f32 %v5759_v54, %v5758_v37  ;;  %v5761_v48 = vpop.f32.mrb[166].mxu1 }
 0x242   :  { %v5762_v4 = vpop.f32.mrb[167].mxu1 }
 0x243   :  { %v4078_v1 = vadd.f32 %v5699_v11, %v7975_v18  ;;  %v8021_v42 = vadd.f32 %v5760_v7, %v4075_v36  ;;  %v5763_v43 = vadd.f32 %v5762_v4, %v5761_v48 }
 0x245   :  { %v5700_v44 = vpop.f32.mrb[168].mxu0  ;;  %v8023_v27 = vadd.f32 %v5763_v43, %v4078_v1 }
 0x246   :  { %v5701_v32 = vpop.f32.mrb[169].mxu0 }
 0x247   :  { %v5702_v8 = vadd.f32 %v5701_v32, %v5700_v44  ;;  %v5703_v31 = vpop.f32.mrb[170].mxu0  ;;  %v5764_v53 = vpop.f32.mrb[168].mxu1 }
 0x248   :  { %v5704_v13 = vpop.f32.mrb[171].mxu0  ;;  %v5765_v23 = vpop.f32.mrb[169].mxu1 }
 0x249   :  { %v4083_v16 = vadd.f32 %v5702_v8, %v7979_v39  ;;  %v5705_v35 = vadd.f32 %v5704_v13, %v5703_v31  ;;  %v5766_v20 = vadd.f32 %v5765_v23, %v5764_v53  ;;  %v5767_v9 = vpop.f32.mrb[170].mxu1 }
 0x24a   :  { %v5768_v62 = vpop.f32.mrb[171].mxu1 }
 0x24b   :  { %v4086_v18 = vadd.f32 %v5705_v35, %v7981_v60  ;;  %v8027_v5 = vadd.f32 %v5766_v20, %v4083_v16  ;;  %v5769_v30 = vadd.f32 %v5768_v62, %v5767_v9 }
 0x24d   :  { %v5706_v63 = vpop.f32.mrb[172].mxu0  ;;  %v8029_v33 = vadd.f32 %v5769_v30, %v4086_v18 }
 0x24e   :  { %v5707_v58 = vpop.f32.mrb[173].mxu0 }
 0x24f   :  { %v5708_v2 = vadd.f32 %v5707_v58, %v5706_v63  ;;  %v5709_v6 = vpop.f32.mrb[174].mxu0  ;;  %v5770_v59 = vpop.f32.mrb[172].mxu1 }
 0x250   :  { %v5710_v61 = vpop.f32.mrb[175].mxu0  ;;  %v5771_v14 = vpop.f32.mrb[173].mxu1 }
 0x251   :  { %v4091_v39 = vadd.f32 %v5708_v2, %v7985_v57  ;;  %v5711_v28 = vadd.f32 %v5710_v61, %v5709_v6  ;;  %v5772_v26 = vadd.f32 %v5771_v14, %v5770_v59  ;;  %v5773_v0 = vpop.f32.mrb[174].mxu1 }
 0x252   :  { %v5774_v41 = vpop.f32.mrb[175].mxu1 }
 0x253   :  { %v4094_v60 = vadd.f32 %v5711_v28, %v7987_v55  ;;  %v8033_v49 = vadd.f32 %v5772_v26, %v4091_v39  ;;  %v5775_v38 = vadd.f32 %v5774_v41, %v5773_v0 }
 0x255   :  { %v5712_v17 = vpop.f32.mrb[176].mxu0  ;;  %v8035_v24 = vadd.f32 %v5775_v38, %v4094_v60 }
 0x256   :  { %v5713_v45 = vpop.f32.mrb[177].mxu0 }
 0x257   :  { %v5714_v10 = vadd.f32 %v5713_v45, %v5712_v17  ;;  %v5715_v22 = vpop.f32.mrb[178].mxu0  ;;  %v5776_v25 = vpop.f32.mrb[176].mxu1 }
 0x258   :  { %v5716_v15 = vpop.f32.mrb[179].mxu0  ;;  %v5777_v52 = vpop.f32.mrb[177].mxu1 }
 0x259   :  { %v4099_v57 = vadd.f32 %v5714_v10, %v7991_v46  ;;  %v5717_v50 = vadd.f32 %v5716_v15, %v5715_v22  ;;  %v5778_v37 = vadd.f32 %v5777_v52, %v5776_v25  ;;  %v5779_v34 = vpop.f32.mrb[178].mxu1 }
 0x25a   :  { %v5780_v36 = vpop.f32.mrb[179].mxu1 }
 0x25b   :  { %v4102_v55 = vadd.f32 %v5717_v50, %v7993_v21  ;;  %v8039_v11 = vadd.f32 %v5778_v37, %v4099_v57  ;;  %v5781_v54 = vadd.f32 %v5780_v36, %v5779_v34 }
 0x25d   :  { %v5718_v7 = vpop.f32.mrb[180].mxu0  ;;  %v8041_v48 = vadd.f32 %v5781_v54, %v4102_v55 }
 0x25e   :  { %v5719_v1 = vpop.f32.mrb[181].mxu0 }
 0x25f   :  { %v5720_v4 = vadd.f32 %v5719_v1, %v5718_v7  ;;  %v5721_v43 = vpop.f32.mrb[182].mxu0  ;;  %v5782_v44 = vpop.f32.mrb[180].mxu1 }
 0x260   :  { %v5722_v32 = vpop.f32.mrb[183].mxu0  ;;  %v5783_v31 = vpop.f32.mrb[181].mxu1 }
 0x261   :  { %v4107_v46 = vadd.f32 %v5720_v4, %v7997_v29  ;;  %v5723_v8 = vadd.f32 %v5722_v32, %v5721_v43  ;;  %v5784_v53 = vadd.f32 %v5783_v31, %v5782_v44  ;;  %v5785_v13 = vpop.f32.mrb[182].mxu1 }
 0x262   :  { %v5786_v16 = vpop.f32.mrb[183].mxu1 }
 0x263   :  { %v4110_v21 = vadd.f32 %v5723_v8, %v7999_v40  ;;  %v8045_v35 = vadd.f32 %v5784_v53, %v4107_v46  ;;  %v5787_v23 = vadd.f32 %v5786_v16, %v5785_v13 }
 0x265   :  { %v5724_v20 = vpop.f32.mrb[184].mxu0  ;;  %v8047_v9 = vadd.f32 %v5787_v23, %v4110_v21 }
 0x266   :  { %v5725_v18 = vpop.f32.mrb[185].mxu0 }
 0x267   :  { %v5726_v62 = vadd.f32 %v5725_v18, %v5724_v20  ;;  %v5727_v30 = vpop.f32.mrb[186].mxu0  ;;  %v5788_v63 = vpop.f32.mrb[184].mxu1 }
 0x268   :  { %v5728_v58 = vpop.f32.mrb[187].mxu0  ;;  %v5789_v6 = vpop.f32.mrb[185].mxu1 }
 0x269   :  { %v4115_v29 = vadd.f32 %v5726_v62, %v8003_v47  ;;  %v5729_v2 = vadd.f32 %v5728_v58, %v5727_v30  ;;  %v5790_v59 = vadd.f32 %v5789_v6, %v5788_v63  ;;  %v5791_v61 = vpop.f32.mrb[186].mxu1 }
 0x26a   :  { %v5792_v39 = vpop.f32.mrb[187].mxu1 }
 0x26b   :  { %v4118_v40 = vadd.f32 %v5729_v2, %v8005_v51  ;;  %v8051_v28 = vadd.f32 %v5790_v59, %v4115_v29  ;;  %v5793_v14 = vadd.f32 %v5792_v39, %v5791_v61 }
 0x26d   :  { %v5730_v26 = vpop.f32.mrb[188].mxu0  ;;  %v8053_v0 = vadd.f32 %v5793_v14, %v4118_v40 }
 0x26e   :  { %v5731_v60 = vpop.f32.mrb[189].mxu0 }
 0x26f   :  { %v5732_v41 = vadd.f32 %v5731_v60, %v5730_v26  ;;  %v5733_v38 = vpop.f32.mrb[190].mxu0  ;;  %v5794_v17 = vpop.f32.mrb[188].mxu1 }
 0x270   :  { %v5734_v45 = vpop.f32.mrb[191].mxu0  ;;  %v5795_v22 = vpop.f32.mrb[189].mxu1 }
 0x271   :  { %v4123_v47 = vadd.f32 %v5732_v41, %v8009_v3  ;;  %v5735_v10 = vadd.f32 %v5734_v45, %v5733_v38  ;;  %v5796_v25 = vadd.f32 %v5795_v22, %v5794_v17  ;;  %v5797_v15 = vpop.f32.mrb[190].mxu1 }
 0x272   :  { %v5798_v57 = vpop.f32.mrb[191].mxu1 }
 0x273   :  { %v4126_v51 = vadd.f32 %v5735_v10, %v8011_v12  ;;  %v8057_v50 = vadd.f32 %v5796_v25, %v4123_v47  ;;  %v5799_v52 = vadd.f32 %v5798_v57, %v5797_v15 }
 0x275   :  { %v5816_v37 = vpop.f32.mrb[192].mxu0  ;;  %v8059_v34 = vadd.f32 %v5799_v52, %v4126_v51 }
 0x276   :  { %v5817_v55 = vpop.f32.mrb[193].mxu0 }
 0x277   :  { %v5818_v36 = vadd.f32 %v5817_v55, %v5816_v37  ;;  %v5819_v54 = vpop.f32.mrb[194].mxu0  ;;  %v5898_v1 = vpop.f32.mrb[192].mxu1 }
 0x278   :  { %v5820_v7 = vpop.f32.mrb[195].mxu0  ;;  %v4357_v43 = vpop.f32.mrb[193].mxu1 }
 0x279   :  { %v5821_v4 = vadd.f32 %v5820_v7, %v5819_v54  ;;  %v4261_v3 = vadd.f32 %v5818_v36, %v8015_v19  ;;  %v5899_v44 = vpop.f32.mrb[194].mxu1 }
 0x27a   :  { %v4360_v46 = vpop.f32.mrb[195].mxu1 }
 0x27b   :  { %v4358_v32 = vadd.f32 %v4357_v43, %v4261_v3  ;;  %v4264_v12 = vadd.f32 %v5821_v4, %v8017_v56 }
 0x27d   :  { %v4361_v8 = vadd.f32 %v4360_v46, %v4264_v12  ;;  %v5822_v31 = vpop.f32.mrb[196].mxu0  ;;  %v4420_v13 = vmax.f32 %v4358_v32, 0.0 }
 0x27e   :  { %v5823_v53 = vpop.f32.mrb[197].mxu0 }
 0x27f   :  { %v4421_v21 = vmax.f32 %v4361_v8, 0.0  ;;  %v5824_v16 = vadd.f32 %v5823_v53, %v5822_v31  ;;  %v5825_v23 = vpop.f32.mrb[198].mxu0  ;;  %v5902_v18 = vpop.f32.mrb[196].mxu1 }
 0x280   :  { %v5826_v20 = vpop.f32.mrb[199].mxu0  ;;  %v4373_v19 = vpop.f32.mrb[197].mxu1 }
 0x281   :  { %v4988_v62 = vpack.c.bf16 %v4421_v21, %v4420_v13  ;;  %v4269_v30 = vadd.f32 %v5824_v16, %v8021_v42  ;;  %v5827_v63 = vadd.f32 %v5826_v20, %v5825_v23  ;;  %v5903_v58 = vpop.f32.mrb[198].mxu1 }
 0x282   :  { %v4376_v2 = vpop.f32.mrb[199].mxu1 }
 0x283   :  { %4989 = vst [vmem:[%s8107_s3] sm:$0xff] %v4988_v62   ;;  %v4366_v56 = vadd.f32 %v5898_v1, %v4269_v30  ;;  %v4272_v29 = vadd.f32 %v5827_v63, %v8023_v27 }
 0x285   :  { %v4369_v6 = vadd.f32 %v5899_v44, %v4272_v29  ;;  %v5828_v59 = vpop.f32.mrb[200].mxu0  ;;  %v4422_v40 = vmax.f32 %v4366_v56, 0.0 }
 0x286   :  { %v5829_v61 = vpop.f32.mrb[201].mxu0 }
 0x287   :  { %v4423_v39 = vmax.f32 %v4369_v6, 0.0  ;;  %v5830_v14 = vadd.f32 %v5829_v61, %v5828_v59  ;;  %v5831_v26 = vpop.f32.mrb[202].mxu0  ;;  %v5906_v42 = vpop.f32.mrb[200].mxu1 }
 0x288   :  { %v5832_v60 = vpop.f32.mrb[203].mxu0  ;;  %v4389_v45 = vpop.f32.mrb[201].mxu1 }
 0x289   :  { %v4993_v41 = vpack.c.bf16 %v4423_v39, %v4422_v40  ;;  %v5833_v38 = vadd.f32 %v5832_v60, %v5831_v26  ;;  %v4277_v17 = vadd.f32 %v5830_v14, %v8027_v5  ;;  %v5907_v47 = vpop.f32.mrb[202].mxu1 }
 0x28a   :  { %v4392_v22 = vpop.f32.mrb[203].mxu1 }
 0x28b   :  { %5025 = vst [vmem:[%s8107_s3 + $0x8] sm:$0xff] %v4993_v41   ;;  %v4374_v27 = vadd.f32 %v4373_v19, %v4277_v17  ;;  %v4280_v10 = vadd.f32 %v5833_v38, %v8029_v33 }
 0x28d   :  { %v4377_v25 = vadd.f32 %v4376_v2, %v4280_v10  ;;  %v5834_v15 = vpop.f32.mrb[204].mxu0  ;;  %v4424_v57 = vmax.f32 %v4374_v27, 0.0 }
 0x28e   :  { %v5835_v51 = vpop.f32.mrb[205].mxu0 }
 0x28f   :  { %v4425_v52 = vmax.f32 %v4377_v25, 0.0  ;;  %v5836_v37 = vadd.f32 %v5835_v51, %v5834_v15  ;;  %v5837_v55 = vpop.f32.mrb[206].mxu0  ;;  %v8073_v54 = vpop.f32.mrb[204].mxu1 }
 0x290   :  { %v5838_v36 = vpop.f32.mrb[207].mxu0  ;;  %v4405_v4 = vpop.f32.mrb[205].mxu1 }
 0x291   :  { %v4998_v5 = vpack.c.bf16 %v4425_v52, %v4424_v57  ;;  %v4285_v7 = vadd.f32 %v5836_v37, %v8033_v49  ;;  %v5839_v1 = vadd.f32 %v5838_v36, %v5837_v55  ;;  %v5911_v3 = vpop.f32.mrb[206].mxu1 }
 0x292   :  { %v4408_v44 = vpop.f32.mrb[207].mxu1 }
 0x293   :  { %5026 = vst [vmem:[%s8107_s3 + $0x10] sm:$0xff] %v4998_v5   ;;  %v4382_v33 = vadd.f32 %v5902_v18, %v4285_v7  ;;  %v4288_v43 = vadd.f32 %v5839_v1, %v8035_v24 }
 0x295   :  { %v4385_v32 = vadd.f32 %v5903_v58, %v4288_v43  ;;  %v5840_v12 = vpop.f32.mrb[208].mxu0  ;;  %v4426_v8 = vmax.f32 %v4382_v33, 0.0 }
 0x296   :  { %v5841_v46 = vpop.f32.mrb[209].mxu0 }
 0x297   :  { %v4427_v31 = vmax.f32 %v4385_v32, 0.0  ;;  %v5842_v53 = vadd.f32 %v5841_v46, %v5840_v12  ;;  %v5843_v13 = vpop.f32.mrb[210].mxu0 }
 0x298   :  { %v5844_v21 = vpop.f32.mrb[211].mxu0 }
 0x299   :  { %v5003_v49 = vpack.c.bf16 %v4427_v31, %v4426_v8  ;;  %v5845_v16 = vadd.f32 %v5844_v21, %v5843_v13  ;;  %v4293_v23 = vadd.f32 %v5842_v53, %v8039_v11 }
 0x29b   :  { %5027 = vst [vmem:[%s8107_s3 + $0x18] sm:$0xff] %v5003_v49   ;;  %v4390_v20 = vadd.f32 %v4389_v45, %v4293_v23  ;;  %v4296_v24 = vadd.f32 %v5845_v16, %v8041_v48 }
 0x29d   :  { %v4393_v18 = vadd.f32 %v4392_v22, %v4296_v24  ;;  %v5846_v62 = vpop.f32.mrb[212].mxu0  ;;  %v4428_v63 = vmax.f32 %v4390_v20, 0.0 }
 0x29e   :  { %v5847_v30 = vpop.f32.mrb[213].mxu0 }
 0x29f   :  { %v4429_v19 = vmax.f32 %v4393_v18, 0.0  ;;  %v5848_v58 = vadd.f32 %v5847_v30, %v5846_v62  ;;  %v5849_v56 = vpop.f32.mrb[214].mxu0 }
 0x2a0   :  { %v5850_v29 = vpop.f32.mrb[215].mxu0 }
 0x2a1   :  { %v5008_v2 = vpack.c.bf16 %v4429_v19, %v4428_v63  ;;  %v4301_v6 = vadd.f32 %v5848_v58, %v8045_v35  ;;  %v5851_v59 = vadd.f32 %v5850_v29, %v5849_v56 }
 0x2a3   :  { %5028 = vst [vmem:[%s8107_s3 + $0x20] sm:$0xff] %v5008_v2   ;;  %v4398_v11 = vadd.f32 %v5906_v42, %v4301_v6  ;;  %v4304_v61 = vadd.f32 %v5851_v59, %v8047_v9 }
 0x2a5   :  { %v4401_v48 = vadd.f32 %v5907_v47, %v4304_v61  ;;  %v5852_v40 = vpop.f32.mrb[216].mxu0  ;;  %v4430_v14 = vmax.f32 %v4398_v11, 0.0 }
 0x2a6   :  { %v5853_v39 = vpop.f32.mrb[217].mxu0 }
 0x2a7   :  { %v4431_v26 = vmax.f32 %v4401_v48, 0.0  ;;  %v5854_v60 = vadd.f32 %v5853_v39, %v5852_v40  ;;  %v5855_v41 = vpop.f32.mrb[218].mxu0 }
 0x2a8   :  { %v5856_v38 = vpop.f32.mrb[219].mxu0 }
 0x2a9   :  { %v5013_v17 = vpack.c.bf16 %v4431_v26, %v4430_v14  ;;  %v5857_v45 = vadd.f32 %v5856_v38, %v5855_v41  ;;  %v4309_v35 = vadd.f32 %v5854_v60, %v8051_v28 }
 0x2ab   :  { %5029 = vst [vmem:[%s8107_s3 + $0x28] sm:$0xff] %v5013_v17   ;;  %v4406_v27 = vadd.f32 %v4405_v4, %v4309_v35  ;;  %v4312_v42 = vadd.f32 %v5857_v45, %v8053_v0 }
 0x2ad   :  { %v4409_v9 = vadd.f32 %v4408_v44, %v4312_v42  ;;  %v5858_v47 = vpop.f32.mrb[220].mxu0  ;;  %v4432_v22 = vmax.f32 %v4406_v27, 0.0 }
 0x2ae   :  { %v5859_v10 = vpop.f32.mrb[221].mxu0 }
 0x2af   :  { %v4433_v25 = vmax.f32 %v4409_v9, 0.0  ;;  %v5860_v15 = vadd.f32 %v5859_v10, %v5858_v47  ;;  %v5861_v51 = vpop.f32.mrb[222].mxu0 }
 0x2b0   :  { %v5862_v57 = vpop.f32.mrb[223].mxu0 }
 0x2b1   :  { %v5018_v52 = vpack.c.bf16 %v4433_v25, %v4432_v22  ;;  %v4317_v37 = vadd.f32 %v5860_v15, %v8057_v50  ;;  %v5863_v55 = vadd.f32 %v5862_v57, %v5861_v51 }
 0x2b3   :  { %5030 = vst [vmem:[%s8107_s3 + $0x30] sm:$0xff] %v5018_v52   ;;  %v4414_v28 = vadd.f32 %v8073_v54, %v4317_v37  ;;  %v4320_v0 = vadd.f32 %v5863_v55, %v8059_v34 }
 0x2b5   :  { %v4417_v36 = vadd.f32 %v5911_v3, %v4320_v0  ;;  %v4434_v5 = vmax.f32 %v4414_v28, 0.0 }
 0x2b7   :  { %v4435_v7 = vmax.f32 %v4417_v36, 0.0 }
 0x2b9   :  { %v5023_v1 = vpack.c.bf16 %v4435_v7, %v4434_v5 }
 0x2bb   :  { %5031 = vst [vmem:[%s8107_s3 + $0x38] sm:$0xff] %v5023_v1  }

// kernel: a_call__.5
= control target key start
LH: loop header
LB: loop body
LE: loop exit
PB: predicated region body
PF: predicated region fallthrough
CT: control target
= control target key end

     0   :  { %8 = vsyncpa [#allocation3], 0  ;;  %s4357_s0 = inlined_call_operand.vmem [shape: bf16[2,8,3456], index: 0, kind: input, shape index: {}]   ;;  %s4358_s1 = inlined_call_operand.vmem [shape: bf16[3456,128], index: 1, kind: input, shape index: {}]   ;;  %s4359_s2 = inlined_call_operand.vmem [shape: f32[1,128], index: 2, kind: input, shape index: {}]   ;;  %s4360_s3 = inlined_call_operand.hbm [shape: f32[2,1,128], index: 3, kind: output, shape index: {}]  }
   0x1   :  { %10 = vsyncpa [#allocation3 + $0x1], 0  ;;  %s3590_s12 = smov 0   ;;  %s3592_s13 = smov 0  }
   0x2   :  { %s3594_s14 = smov 0   ;;  %s3596_s15 = smov 0  }
   0x3 LB: > { %s3611_s16 = sadd.s32 4294967295, %s3565_s15   ;;  %s2651_s17 = sadd.s32 4294967294, %s3565_s15   ;;  %s3565_s15 = sphi %s3596_s15, %s4366_s15   ;;  %s3561_s14 = sphi %s3594_s14, %s4365_s14   ;;  %s3557_s13 = sphi %s3592_s13, %s4364_s13   ;;  %s3553_s12 = sphi %s3590_s12, %s4363_s12  }
   0x4   : > { %s3615_s18 = sadd.s32 1, %s3565_s15   ;;  %s91_s19 = sadd.s32 1, %s3561_s14 }
   0x5   : > { %s88_s20 = ssub.s32 %s3565_s15, %s3615_s18  ;;  %p101_p0 = scmp.ne.s32.totalorder %s3561_s14, %s3557_s13 }
   0x6   : > { %p89_p1 = scmp.eq.s32.totalorder %s88_s20, 0  ;;  %p102_p2 = scmp.eq.s32.totalorder %s3611_s16, 1 }
   0x7   : > { %p107_p3 = scmp.ne.s32.totalorder %s3557_s13, %s3553_s12  ;;  %p108_p4 = scmp.eq.s32.totalorder %s2651_s17, 1 }
   0x8   : > { %s3626_s21 = scalar_select %p89_p1, %s3561_s14, %s91_s19  }
   0x9   : > { %p3628_p5 = por %p102_p2, %p101_p0  ;;  %p3632_p6 = por %p108_p4, %p107_p3 }
   0xa   : > { %p2654_p7 = scmp.ge.s32.totalorder %s3565_s15, 1  ;;  %p140_p8 = scmp.lt.s32.totalorder %s3565_s15, 3 }
   0xc   : > { %p141_p9 = pnand %p2654_p7, %p140_p8 }
   0xd   : > { %v3260_v0 = vld [vmem:[%s4358_s1 + $0x40] sm:$0xff] (!%p141_p9)   ;;  %v3264_v4 = vld [vmem:[%s4358_s1 + $0x48] sm:$0xff] (!%p141_p9)   ;;  %v3268_v8 = vld [vmem:[%s4358_s1 + $0x50] sm:$0xff] (!%p141_p9)   ;;  %p163_p10 = scmp.lt.s32.totalorder (!%p141_p9), %s3611_s16, 1  ;;  %vm3568_vm0 = vmmov (!%p141_p9), 0   ;;  %s2900_s8 = sshll.u32 (!%p141_p9), %s3611_s16, 4 }
   0xe   : > { %144 = sbr.rel (%p141_p9) target bundleno = 487 (0x1e7), region = 32  ;;  %v3261_v1 = vld [vmem:[%s4358_s1] sm:$0xff] (!%p141_p9)   ;;  %2903 = vmatprep.subr.bf16.mxu0 (!%p141_p9), %v3260_v0  ;;  %v3265_v5 = vld [vmem:[%s4358_s1 + $0x8] sm:$0xff] (!%p141_p9)   ;;  %v3269_v9 = vld [vmem:[%s4358_s1 + $0x10] sm:$0xff] (!%p141_p9)   ;;  %s4315_s19 = scalar_lea.hbm (!%p141_p9), %s4360_s3, %s2900_s8 }
   0xf   : > { %v3262_v2 = vld [vmem:[%s4358_s1 + $0xc0] sm:$0xff] (!%p141_p9)   ;;  %2904 = vmatpush3.bf16.msra.mxu0 (!%p141_p9), %v3261_v1  ;;  %v3266_v6 = vld [vmem:[%s4358_s1 + $0xc8] sm:$0xff] (!%p141_p9)   ;;  %v3270_v10 = vld [vmem:[%s4358_s1 + $0xd0] sm:$0xff] (!%p141_p9)  }
  0x10   : > { %v3263_v3 = vld [vmem:[%s4358_s1 + $0x80] sm:$0xff] (!%p141_p9)   ;;  %2925 = vmatprep.subr.bf16.mxu1 (!%p141_p9), %v3262_v2  ;;  %2905 = vmatprep.subr.bf16.mxu0 (!%p141_p9), %v3264_v4  ;;  %v3267_v7 = vld [vmem:[%s4358_s1 + $0x88] sm:$0xff] (!%p141_p9)   ;;  %v3271_v11 = vld [vmem:[%s4358_s1 + $0x90] sm:$0xff] (!%p141_p9)  }
  0x11   : > { %2926 = vmatpush3.bf16.msra.mxu1 (!%p141_p9), %v3263_v3  ;;  %v3272_v12 = vld [vmem:[%s4358_s1 + $0x58] sm:$0xff] (!%p141_p9)   ;;  %v3276_v16 = vld [vmem:[%s4358_s1 + $0x60] sm:$0xff] (!%p141_p9)   ;;  %v3280_v20 = vld [vmem:[%s4358_s1 + $0x68] sm:$0xff] (!%p141_p9)  }
  0x12   : > { %2927 = vmatprep.subr.bf16.mxu1 (!%p141_p9), %v3266_v6  ;;  %v3273_v13 = vld [vmem:[%s4358_s1 + $0x18] sm:$0xff] (!%p141_p9)   ;;  %v3277_v17 = vld [vmem:[%s4358_s1 + $0x20] sm:$0xff] (!%p141_p9)   ;;  %v3281_v21 = vld [vmem:[%s4358_s1 + $0x28] sm:$0xff] (!%p141_p9)  }
  0x13   : > { %2906 = vmatpush3.bf16.msra.mxu0 (!%p141_p9), %v3265_v5  ;;  %v3274_v14 = vld [vmem:[%s4358_s1 + $0xd8] sm:$0xff] (!%p141_p9)   ;;  %v3278_v18 = vld [vmem:[%s4358_s1 + $0xe0] sm:$0xff] (!%p141_p9)   ;;  %v3282_v22 = vld [vmem:[%s4358_s1 + $0xe8] sm:$0xff] (!%p141_p9)  }
  0x14   : > { %2907 = vmatprep.subr.bf16.mxu0 (!%p141_p9), %v3268_v8  ;;  %v3275_v15 = vld [vmem:[%s4358_s1 + $0x98] sm:$0xff] (!%p141_p9)   ;;  %v3279_v19 = vld [vmem:[%s4358_s1 + $0xa0] sm:$0xff] (!%p141_p9)   ;;  %v3283_v23 = vld [vmem:[%s4358_s1 + $0xa8] sm:$0xff] (!%p141_p9)  }
  0x15   : > { %2928 = vmatpush3.bf16.msra.mxu1 %v3267_v7  ;;  %s164_s30 = scalar_select %p163_p10, %s3611_s16, 1  ;;  %v3284_v24 = vld [vmem:[%s4358_s1 + $0x70] sm:$0xff]   ;;  %v3288_v28 = vld [vmem:[%s4358_s1 + $0x78] sm:$0xff]   ;;  %v3294_v35 = vld [vmem:[%s4358_s1 + $0x140] sm:$0xff]  }
  0x16   : > { %2929 = vmatprep.subr.bf16.mxu1 %v3270_v10  ;;  %v3285_v25 = vld [vmem:[%s4358_s1 + $0x30] sm:$0xff]   ;;  %v3289_v29 = vld [vmem:[%s4358_s1 + $0x38] sm:$0xff]   ;;  %v3297_v39 = vld [vmem:[%s4358_s1 + $0x100] sm:$0xff]   ;;  %s3569_s16 = smov [#allocation2]  }
  0x17   : > { %2908 = vmatpush3.bf16.msra.mxu0 %v3269_v9  ;;  %s3218_s17 = smul.u32 108, %s164_s30  ;;  %v3286_v26 = vld [vmem:[%s4358_s1 + $0xf0] sm:$0xff]   ;;  %v3290_v30 = vld [vmem:[%s4358_s1 + $0xf8] sm:$0xff]   ;;  %v3298_v40 = vld [vmem:[%s4358_s1 + $0x1c0] sm:$0xff]   ;;  %s3507_s25 = sshll.u32 %s3569_s16, 4  ;;  %s3508_s25 = int_to_ptr.vmem [resolvable:$false] %s3507_s25 }
  0x18   : > { %2909 = vmatprep.subr.bf16.mxu0 %v3272_v12  ;;  %v3287_v27 = vld [vmem:[%s4358_s1 + $0xb0] sm:$0xff]   ;;  %v3293_v34 = vld [vmem:[%s4358_s1 + $0xb8] sm:$0xff]   ;;  %v3299_v41 = vld [vmem:[%s4358_s1 + $0x180] sm:$0xff]   ;;  %s3509_s26 = scalar_lea.vmem %s3508_s25, 32 }
  0x19   : > { %2930 = vmatpush3.bf16.msra.mxu1 %v3271_v11  ;;  %s3730_s5 = scalar_lea.vmem %s4357_s0, %s3218_s17  ;;  %v3300_v42 = vld [vmem:[%s4358_s1 + $0x148] sm:$0xff]   ;;  %v3304_v46 = vld [vmem:[%s4358_s1 + $0x150] sm:$0xff]   ;;  %v3308_v50 = vld [vmem:[%s4358_s1 + $0x158] sm:$0xff]  }
  0x1a   : > { %2931 = vmatprep.subr.bf16.mxu1 %v3274_v14  ;;  %v169_v31 = vld [vmem:[%s3730_s5] sm:$0xff]  ;;  %v170_v36 = vld [vmem:[%s3730_s5 + $0x8] sm:$0xff]  ;;  %v3305_v47 = vld [vmem:[%s4358_s1 + $0x110] sm:$0xff]  }
  0x1b   : > { %2910 = vmatpush3.bf16.msra.mxu0 %v3273_v13  ;;  %v2657_v32 = vcombine.low %v169_v31, %v169_v31  ;;  %v2658_v33 = vcombine.high %v169_v31, %v169_v31  ;;  %v2659_v37 = vcombine.low %v170_v36, %v170_v36  ;;  %v2660_v38 = vcombine.high %v170_v36, %v170_v36  ;;  %v3301_v43 = vld [vmem:[%s4358_s1 + $0x108] sm:$0xff]   ;;  %v3306_v48 = vld [vmem:[%s4358_s1 + $0x1d0] sm:$0xff]   ;;  %v3309_v51 = vld [vmem:[%s4358_s1 + $0x118] sm:$0xff]  }
  0x1c   : > { %2911 = vmatprep.subr.bf16.mxu0 %v3276_v16  ;;  %v3302_v44 = vld [vmem:[%s4358_s1 + $0x1c8] sm:$0xff]   ;;  %v3307_v49 = vld [vmem:[%s4358_s1 + $0x190] sm:$0xff]   ;;  %v3310_v52 = vld [vmem:[%s4358_s1 + $0x1d8] sm:$0xff]  }
  0x1d   : > { %2932 = vmatpush3.bf16.msra.mxu1 %v3275_v15  ;;  %2045 = vmatprep.mubr.bf16.mxu0 %v2658_v33  ;;  %v3303_v45 = vld [vmem:[%s4358_s1 + $0x188] sm:$0xff]   ;;  %v3311_v53 = vld [vmem:[%s4358_s1 + $0x198] sm:$0xff]   ;;  %v3312_v54 = vld [vmem:[%s4358_s1 + $0x160] sm:$0xff]  }
  0x1e   : > { %2933 = vmatprep.subr.bf16.mxu1 %v3278_v18  ;;  %2085 = vmatprep.mubr.bf16.mxu1 %v2660_v38  ;;  %v3313_v55 = vld [vmem:[%s4358_s1 + $0x120] sm:$0xff]   ;;  %v3316_v58 = vld [vmem:[%s4358_s1 + $0x168] sm:$0xff]   ;;  %v3320_v62 = vld [vmem:[%s4358_s1 + $0x170] sm:$0xff]  }
  0x1f   : > { %2912 = vmatpush3.bf16.msra.mxu0 %v3277_v17  ;;  %v3314_v56 = vld [vmem:[%s4358_s1 + $0x1e0] sm:$0xff]   ;;  %v3317_v59 = vld [vmem:[%s4358_s1 + $0x128] sm:$0xff]   ;;  %v3321_v63 = vld [vmem:[%s4358_s1 + $0x130] sm:$0xff]  }
  0x20   : > { %2913 = vmatprep.subr.bf16.mxu0 %v3280_v20  ;;  %v3315_v57 = vld [vmem:[%s4358_s1 + $0x1a0] sm:$0xff]   ;;  %v3318_v60 = vld [vmem:[%s4358_s1 + $0x1e8] sm:$0xff]   ;;  %v3322_v0 = vld [vmem:[%s4358_s1 + $0x1f0] sm:$0xff]  }
  0x21   : > { %2934 = vmatpush3.bf16.msra.mxu1 %v3279_v19  ;;  %v3319_v61 = vld [vmem:[%s4358_s1 + $0x1a8] sm:$0xff]   ;;  %v3323_v1 = vld [vmem:[%s4358_s1 + $0x1b0] sm:$0xff]   ;;  %v3324_v2 = vld [vmem:[%s4358_s1 + $0x178] sm:$0xff]  }
  0x22   : > { %2935 = vmatprep.subr.bf16.mxu1 %v3282_v22  ;;  %v3325_v3 = vld [vmem:[%s4358_s1 + $0x138] sm:$0xff]   ;;  %v171_v5 = vld [vmem:[%s3730_s5 + $0x10] sm:$0xff]  ;;  %v3330_v9 = vld [vmem:[%s4358_s1 + $0x240] sm:$0xff]  }
  0x23   : > { %2914 = vmatpush3.bf16.msra.mxu0 %v3281_v21  ;;  %v3326_v4 = vld [vmem:[%s4358_s1 + $0x1f8] sm:$0xff]   ;;  %v2661_v6 = vcombine.low %v171_v5, %v171_v5  ;;  %v2662_v7 = vcombine.high %v171_v5, %v171_v5  ;;  %v3333_v13 = vld [vmem:[%s4358_s1 + $0x200] sm:$0xff]   ;;  %v3336_v16 = vld [vmem:[%s4358_s1 + $0x248] sm:$0xff]  }
  0x24   : > { %2915 = vmatprep.subr.bf16.mxu0 %v3284_v24  ;;  %v3329_v8 = vld [vmem:[%s4358_s1 + $0x1b8] sm:$0xff]   ;;  %v3334_v14 = vld [vmem:[%s4358_s1 + $0x2c0] sm:$0xff]   ;;  %v3337_v17 = vld [vmem:[%s4358_s1 + $0x208] sm:$0xff]  }
  0x25   : > { %2936 = vmatpush3.bf16.msra.mxu1 %v3283_v23  ;;  %v172_v10 = vld [vmem:[%s3730_s5 + $0x18] sm:$0xff]  ;;  %v3335_v15 = vld [vmem:[%s4358_s1 + $0x280] sm:$0xff]   ;;  %v3338_v18 = vld [vmem:[%s4358_s1 + $0x2c8] sm:$0xff]  }
  0x26   : > { %2937 = vmatprep.subr.bf16.mxu1 %v3286_v26  ;;  %v2663_v11 = vcombine.low %v172_v10, %v172_v10  ;;  %v2664_v12 = vcombine.high %v172_v10, %v172_v10  ;;  %v3339_v19 = vld [vmem:[%s4358_s1 + $0x288] sm:$0xff]   ;;  %v3340_v20 = vld [vmem:[%s4358_s1 + $0x250] sm:$0xff]   ;;  %v3344_v24 = vld [vmem:[%s4358_s1 + $0x258] sm:$0xff]  }
  0x27   : > { %2916 = vmatpush3.bf16.msra.mxu0 %v3285_v25  ;;  %v3341_v21 = vld [vmem:[%s4358_s1 + $0x210] sm:$0xff]   ;;  %v3345_v25 = vld [vmem:[%s4358_s1 + $0x218] sm:$0xff]   ;;  %v3351_v31 = vld [vmem:[%s4358_s1 + $0x2a0] sm:$0xff]  }
  0x28   : > { %2917 = vmatprep.subr.bf16.mxu0 %v3288_v28  ;;  %v3342_v22 = vld [vmem:[%s4358_s1 + $0x2d0] sm:$0xff]   ;;  %v3346_v26 = vld [vmem:[%s4358_s1 + $0x2d8] sm:$0xff]   ;;  %v3348_v28 = vld [vmem:[%s4358_s1 + $0x260] sm:$0xff]  }
  0x29   : > { %2938 = vmatpush3.bf16.msra.mxu1 %v3287_v27  ;;  %v3343_v23 = vld [vmem:[%s4358_s1 + $0x290] sm:$0xff]   ;;  %v3347_v27 = vld [vmem:[%s4358_s1 + $0x298] sm:$0xff]   ;;  %v3353_v33 = vld [vmem:[%s4358_s1 + $0x228] sm:$0xff]  }
  0x2a   : > { %2939 = vmatprep.subr.bf16.mxu1 %v3290_v30  ;;  %v3350_v30 = vld [vmem:[%s4358_s1 + $0x2e0] sm:$0xff]   ;;  %v3356_v36 = vld [vmem:[%s4358_s1 + $0x270] sm:$0xff]  }
  0x2b   : > { %2918 = vmatpush3.bf16.msra.mxu0 %v3289_v29  ;;  %v3349_v29 = vld [vmem:[%s4358_s1 + $0x220] sm:$0xff]   ;;  %v3358_v38 = vld [vmem:[%s4358_s1 + $0x2f0] sm:$0xff]  }
  0x2c   : > { %2947 = vmatprep.subr.bf16.mxu0 %v3294_v35  ;;  %v3355_v35 = vld [vmem:[%s4358_s1 + $0x2a8] sm:$0xff]   ;;  %v3387_v5 = vld [vmem:[%s4358_s1 + $0x3a0] sm:$0xff]   ;;  %v3392_v10 = vld [vmem:[%s4358_s1 + $0x370] sm:$0xff]  }
  0x2d   : > { %2940 = vmatpush3.bf16.msra.mxu1 %v3293_v34  ;;  %v3354_v34 = vld [vmem:[%s4358_s1 + $0x2e8] sm:$0xff]  }
  0x2e   : > { %2046 = vmatmul.mubr.bf16.vlgmr.msra.gmra.mrb[0].mxu0 %v2657_v32  ;;  %2969 = vmatprep.subr.bf16.mxu1 %v3298_v40  ;;  %v3352_v32 = vld [vmem:[%s4358_s1 + $0x268] sm:$0xff]   ;;  %v3360_v40 = vld [vmem:[%s4358_s1 + $0x278] sm:$0xff]  }
  0x2f   : > { %2948 = vmatpush3.bf16.msra.mxu0 %v3297_v39  ;;  %2125 = vmatprep.mubr.bf16.mxu0 %v2662_v7  ;;  %v3359_v39 = vld [vmem:[%s4358_s1 + $0x2b0] sm:$0xff]   ;;  %v3389_v7 = vld [vmem:[%s4358_s1 + $0x328] sm:$0xff]  }
  0x30   : > { %2086 = vmatmul.mubr.bf16.vlgmr.msra.gmra.mrb[0].mxu1 %v2659_v37  ;;  %2949 = vmatprep.subr.bf16.mxu0 %v3300_v42  ;;  %v3357_v37 = vld [vmem:[%s4358_s1 + $0x230] sm:$0xff]   ;;  %v3362_v42 = vld [vmem:[%s4358_s1 + $0x2f8] sm:$0xff]  }
  0x31   : > { %2970 = vmatpush3.bf16.msra.mxu1 %v3299_v41  ;;  %2165 = vmatprep.mubr.bf16.mxu1 %v2664_v12  ;;  %v3361_v41 = vld [vmem:[%s4358_s1 + $0x238] sm:$0xff]   ;;  %v3394_v12 = vld [vmem:[%s4358_s1 + $0x3f0] sm:$0xff]  }
  0x32   : > { %2971 = vmatprep.subr.bf16.mxu1 %v3302_v44 }
  0x33   : > { %2950 = vmatpush3.bf16.msra.mxu0 %v3301_v43  ;;  %v173_v43 = vld [vmem:[%s3730_s5 + $0x20] sm:$0xff] }
  0x34   : > { %2951 = vmatprep.subr.bf16.mxu0 %v3304_v46  ;;  %v2665_v44 = vcombine.low %v173_v43, %v173_v43  ;;  %v3365_v46 = vld [vmem:[%s4358_s1 + $0x2b8] sm:$0xff]  }
  0x35   : > { %2972 = vmatpush3.bf16.msra.mxu1 %v3303_v45  ;;  %v2666_v45 = vcombine.high %v173_v43, %v173_v43  ;;  %v3423_v43 = vld [vmem:[%s4358_s1 + $0x4a0] sm:$0xff]  }
  0x36   : > { %2973 = vmatprep.subr.bf16.mxu1 %v3306_v48  ;;  %v174_v48 = vld [vmem:[%s3730_s5 + $0x28] sm:$0xff] }
  0x37   : > { %2952 = vmatpush3.bf16.msra.mxu0 %v3305_v47  ;;  %v3366_v47 = vld [vmem:[%s4358_s1 + $0x340] sm:$0xff]  }
  0x38   : > { %2953 = vmatprep.subr.bf16.mxu0 %v3308_v50  ;;  %v2668_v50 = vcombine.high %v174_v48, %v174_v48 }
  0x39   : > { %2974 = vmatpush3.bf16.msra.mxu1 %v3307_v49  ;;  %v2667_v49 = vcombine.low %v174_v48, %v174_v48  ;;  %v3428_v48 = vld [vmem:[%s4358_s1 + $0x470] sm:$0xff]  }
  0x3a   : > { %2975 = vmatprep.subr.bf16.mxu1 %v3310_v52  ;;  %v3370_v52 = vld [vmem:[%s4358_s1 + $0x3c0] sm:$0xff]  }
  0x3b   : > { %2954 = vmatpush3.bf16.msra.mxu0 %v3309_v51  ;;  %v3369_v51 = vld [vmem:[%s4358_s1 + $0x300] sm:$0xff]  }
  0x3c   : > { %2955 = vmatprep.subr.bf16.mxu0 %v3312_v54  ;;  %v3372_v54 = vld [vmem:[%s4358_s1 + $0x348] sm:$0xff]  }
  0x3d   : > { %2976 = vmatpush3.bf16.msra.mxu1 %v3311_v53  ;;  %v3371_v53 = vld [vmem:[%s4358_s1 + $0x380] sm:$0xff]  }
  0x3e   : > { %2977 = vmatprep.subr.bf16.mxu1 %v3314_v56  ;;  %v3374_v56 = vld [vmem:[%s4358_s1 + $0x3c8] sm:$0xff]  }
  0x3f   : > { %2956 = vmatpush3.bf16.msra.mxu0 %v3313_v55  ;;  %v3373_v55 = vld [vmem:[%s4358_s1 + $0x308] sm:$0xff]  }
  0x40   : > { %2957 = vmatprep.subr.bf16.mxu0 %v3316_v58  ;;  %v3376_v58 = vld [vmem:[%s4358_s1 + $0x350] sm:$0xff]  }
  0x41   : > { %2978 = vmatpush3.bf16.msra.mxu1 %v3315_v57  ;;  %v3375_v57 = vld [vmem:[%s4358_s1 + $0x388] sm:$0xff]  }
  0x42   : > { %2979 = vmatprep.subr.bf16.mxu1 %v3318_v60  ;;  %v3378_v60 = vld [vmem:[%s4358_s1 + $0x3d0] sm:$0xff]  }
  0x43   : > { %2958 = vmatpush3.bf16.msra.mxu0 %v3317_v59  ;;  %v3377_v59 = vld [vmem:[%s4358_s1 + $0x310] sm:$0xff]  }
  0x44   : > { %2959 = vmatprep.subr.bf16.mxu0 %v3320_v62  ;;  %v3380_v62 = vld [vmem:[%s4358_s1 + $0x358] sm:$0xff]  }
  0x45   : > { %2980 = vmatpush3.bf16.msra.mxu1 %v3319_v61  ;;  %v3379_v61 = vld [vmem:[%s4358_s1 + $0x390] sm:$0xff]  }
  0x46   : > { %2981 = vmatprep.subr.bf16.mxu1 %v3322_v0  ;;  %v3382_v0 = vld [vmem:[%s4358_s1 + $0x3d8] sm:$0xff]  }
  0x47   : > { %2960 = vmatpush3.bf16.msra.mxu0 %v3321_v63  ;;  %v3381_v63 = vld [vmem:[%s4358_s1 + $0x318] sm:$0xff]  }
  0x48   : > { %2961 = vmatprep.subr.bf16.mxu0 %v3324_v2  ;;  %v3384_v2 = vld [vmem:[%s4358_s1 + $0x360] sm:$0xff]  }
  0x49   : > { %2982 = vmatpush3.bf16.msra.mxu1 %v3323_v1  ;;  %v3383_v1 = vld [vmem:[%s4358_s1 + $0x398] sm:$0xff]  }
  0x4a   : > { %2983 = vmatprep.subr.bf16.mxu1 %v3326_v4  ;;  %v3386_v4 = vld [vmem:[%s4358_s1 + $0x3e0] sm:$0xff]  }
  0x4b   : > { %2962 = vmatpush3.bf16.msra.mxu0 %v3325_v3  ;;  %v3385_v3 = vld [vmem:[%s4358_s1 + $0x320] sm:$0xff]  }
  0x4c   : > { %2991 = vmatprep.subr.bf16.mxu0 %v3330_v9  ;;  %v3391_v9 = vld [vmem:[%s4358_s1 + $0x3a8] sm:$0xff]  }
  0x4d   : > { %2984 = vmatpush3.bf16.msra.mxu1 %v3329_v8  ;;  %v3390_v8 = vld [vmem:[%s4358_s1 + $0x3e8] sm:$0xff]  }
  0x4e   : > { %2126 = vmatmul.mubr.bf16.vlgmr.msra.gmra.mrb[4].mxu0 %v2661_v6  ;;  %3013 = vmatprep.subr.bf16.mxu1 %v3334_v14  ;;  %v3388_v6 = vld [vmem:[%s4358_s1 + $0x368] sm:$0xff]   ;;  %v3396_v14 = vld [vmem:[%s4358_s1 + $0x378] sm:$0xff]  }
  0x4f   : > { %2992 = vmatpush3.bf16.msra.mxu0 %v3333_v13  ;;  %2205 = vmatprep.mubr.bf16.mxu0 %v2666_v45  ;;  %v3395_v13 = vld [vmem:[%s4358_s1 + $0x3b0] sm:$0xff]   ;;  %v3425_v45 = vld [vmem:[%s4358_s1 + $0x428] sm:$0xff]  }
  0x50   : > { %2166 = vmatmul.mubr.bf16.vlgmr.msra.gmra.mrb[4].mxu1 %v2663_v11  ;;  %2993 = vmatprep.subr.bf16.mxu0 %v3336_v16  ;;  %v3393_v11 = vld [vmem:[%s4358_s1 + $0x330] sm:$0xff]   ;;  %v3398_v16 = vld [vmem:[%s4358_s1 + $0x3f8] sm:$0xff]  }
  0x51   : > { %3014 = vmatpush3.bf16.msra.mxu1 %v3335_v15  ;;  %2245 = vmatprep.mubr.bf16.mxu1 %v2668_v50  ;;  %v3397_v15 = vld [vmem:[%s4358_s1 + $0x338] sm:$0xff]   ;;  %v3430_v50 = vld [vmem:[%s4358_s1 + $0x4f0] sm:$0xff]  }
  0x52   : > { %3015 = vmatprep.subr.bf16.mxu1 %v3338_v18 }
  0x53   : > { %2994 = vmatpush3.bf16.msra.mxu0 %v3337_v17  ;;  %v175_v17 = vld [vmem:[%s3730_s5 + $0x30] sm:$0xff] }
  0x54   : > { %2995 = vmatprep.subr.bf16.mxu0 %v3340_v20  ;;  %v2669_v18 = vcombine.low %v175_v17, %v175_v17  ;;  %v3401_v20 = vld [vmem:[%s4358_s1 + $0x3b8] sm:$0xff]  }
  0x55   : > { %3016 = vmatpush3.bf16.msra.mxu1 %v3339_v19  ;;  %v2670_v19 = vcombine.high %v175_v17, %v175_v17  ;;  %v3459_v17 = vld [vmem:[%s4358_s1 + $0x5a0] sm:$0xff]  }
  0x56   : > { %3017 = vmatprep.subr.bf16.mxu1 %v3342_v22  ;;  %v176_v22 = vld [vmem:[%s3730_s5 + $0x38] sm:$0xff] }
  0x57   : > { %2996 = vmatpush3.bf16.msra.mxu0 %v3341_v21  ;;  %v3402_v21 = vld [vmem:[%s4358_s1 + $0x440] sm:$0xff]  }
  0x58   : > { %2997 = vmatprep.subr.bf16.mxu0 %v3344_v24  ;;  %v2672_v24 = vcombine.high %v176_v22, %v176_v22 }
  0x59   : > { %3018 = vmatpush3.bf16.msra.mxu1 %v3343_v23  ;;  %v2671_v23 = vcombine.low %v176_v22, %v176_v22  ;;  %v3464_v22 = vld [vmem:[%s4358_s1 + $0x570] sm:$0xff]  }
  0x5a   : > { %3019 = vmatprep.subr.bf16.mxu1 %v3346_v26  ;;  %v3406_v26 = vld [vmem:[%s4358_s1 + $0x4c0] sm:$0xff]  }
  0x5b   : > { %2998 = vmatpush3.bf16.msra.mxu0 %v3345_v25  ;;  %v3405_v25 = vld [vmem:[%s4358_s1 + $0x400] sm:$0xff]  }
  0x5c   : > { %2999 = vmatprep.subr.bf16.mxu0 %v3348_v28  ;;  %v3408_v28 = vld [vmem:[%s4358_s1 + $0x448] sm:$0xff]  }
  0x5d   : > { %3020 = vmatpush3.bf16.msra.mxu1 %v3347_v27  ;;  %v3407_v27 = vld [vmem:[%s4358_s1 + $0x480] sm:$0xff]  }
  0x5e   : > { %3021 = vmatprep.subr.bf16.mxu1 %v3350_v30  ;;  %v3410_v30 = vld [vmem:[%s4358_s1 + $0x4c8] sm:$0xff]  }
  0x5f   : > { %3000 = vmatpush3.bf16.msra.mxu0 %v3349_v29  ;;  %v3409_v29 = vld [vmem:[%s4358_s1 + $0x408] sm:$0xff]  }
  0x60   : > { %3001 = vmatprep.subr.bf16.mxu0 %v3352_v32  ;;  %v3412_v32 = vld [vmem:[%s4358_s1 + $0x450] sm:$0xff]  }
  0x61   : > { %3022 = vmatpush3.bf16.msra.mxu1 %v3351_v31  ;;  %v3411_v31 = vld [vmem:[%s4358_s1 + $0x488] sm:$0xff]  }
  0x62   : > { %3023 = vmatprep.subr.bf16.mxu1 %v3354_v34  ;;  %v3414_v34 = vld [vmem:[%s4358_s1 + $0x4d0] sm:$0xff]  }
  0x63   : > { %3002 = vmatpush3.bf16.msra.mxu0 %v3353_v33  ;;  %v3413_v33 = vld [vmem:[%s4358_s1 + $0x410] sm:$0xff]  }
  0x64   : > { %3003 = vmatprep.subr.bf16.mxu0 %v3356_v36  ;;  %v3416_v36 = vld [vmem:[%s4358_s1 + $0x458] sm:$0xff]  }
  0x65   : > { %3024 = vmatpush3.bf16.msra.mxu1 %v3355_v35  ;;  %v3415_v35 = vld [vmem:[%s4358_s1 + $0x490] sm:$0xff]  }
  0x66   : > { %3025 = vmatprep.subr.bf16.mxu1 %v3358_v38  ;;  %v3418_v38 = vld [vmem:[%s4358_s1 + $0x4d8] sm:$0xff]  }
  0x67   : > { %3004 = vmatpush3.bf16.msra.mxu0 %v3357_v37  ;;  %v3417_v37 = vld [vmem:[%s4358_s1 + $0x418] sm:$0xff]  }
  0x68   : > { %3005 = vmatprep.subr.bf16.mxu0 %v3360_v40  ;;  %v3420_v40 = vld [vmem:[%s4358_s1 + $0x460] sm:$0xff]  }
  0x69   : > { %3026 = vmatpush3.bf16.msra.mxu1 %v3359_v39  ;;  %v3419_v39 = vld [vmem:[%s4358_s1 + $0x498] sm:$0xff]  }
  0x6a   : > { %3027 = vmatprep.subr.bf16.mxu1 %v3362_v42  ;;  %v3422_v42 = vld [vmem:[%s4358_s1 + $0x4e0] sm:$0xff]  }
  0x6b   : > { %3006 = vmatpush3.bf16.msra.mxu0 %v3361_v41  ;;  %v3421_v41 = vld [vmem:[%s4358_s1 + $0x420] sm:$0xff]  }
  0x6c   : > { %3035 = vmatprep.subr.bf16.mxu0 %v3366_v47  ;;  %v3427_v47 = vld [vmem:[%s4358_s1 + $0x4a8] sm:$0xff]  }
  0x6d   : > { %3028 = vmatpush3.bf16.msra.mxu1 %v3365_v46  ;;  %v3426_v46 = vld [vmem:[%s4358_s1 + $0x4e8] sm:$0xff]  }
  0x6e   : > { %2206 = vmatmul.mubr.bf16.vlgmr.msra.gmra.mrb[8].mxu0 %v2665_v44  ;;  %3057 = vmatprep.subr.bf16.mxu1 %v3370_v52  ;;  %v3424_v44 = vld [vmem:[%s4358_s1 + $0x468] sm:$0xff]   ;;  %v3432_v52 = vld [vmem:[%s4358_s1 + $0x478] sm:$0xff]  }
  0x6f   : > { %3036 = vmatpush3.bf16.msra.mxu0 %v3369_v51  ;;  %2285 = vmatprep.mubr.bf16.mxu0 %v2670_v19  ;;  %v3431_v51 = vld [vmem:[%s4358_s1 + $0x4b0] sm:$0xff]   ;;  %v3461_v19 = vld [vmem:[%s4358_s1 + $0x528] sm:$0xff]  }
  0x70   : > { %2246 = vmatmul.mubr.bf16.vlgmr.msra.gmra.mrb[8].mxu1 %v2667_v49  ;;  %3037 = vmatprep.subr.bf16.mxu0 %v3372_v54  ;;  %v3429_v49 = vld [vmem:[%s4358_s1 + $0x430] sm:$0xff]   ;;  %v3434_v54 = vld [vmem:[%s4358_s1 + $0x4f8] sm:$0xff]  }
  0x71   : > { %3058 = vmatpush3.bf16.msra.mxu1 %v3371_v53  ;;  %2325 = vmatprep.mubr.bf16.mxu1 %v2672_v24  ;;  %v3433_v53 = vld [vmem:[%s4358_s1 + $0x438] sm:$0xff]   ;;  %v3466_v24 = vld [vmem:[%s4358_s1 + $0x5f0] sm:$0xff]  }
  0x72   : > { %3059 = vmatprep.subr.bf16.mxu1 %v3374_v56 }
  0x73   : > { %3038 = vmatpush3.bf16.msra.mxu0 %v3373_v55  ;;  %v177_v55 = vld [vmem:[%s3730_s5 + $0x40] sm:$0xff] }
  0x74   : > { %3039 = vmatprep.subr.bf16.mxu0 %v3376_v58  ;;  %v2673_v56 = vcombine.low %v177_v55, %v177_v55  ;;  %v3437_v58 = vld [vmem:[%s4358_s1 + $0x4b8] sm:$0xff]  }
  0x75   : > { %3060 = vmatpush3.bf16.msra.mxu1 %v3375_v57  ;;  %v2674_v57 = vcombine.high %v177_v55, %v177_v55  ;;  %v3493_v55 = vld [vmem:[%s4358_s1 + $0x6a8] sm:$0xff]  }
  0x76   : > { %3061 = vmatprep.subr.bf16.mxu1 %v3378_v60  ;;  %v178_v60 = vld [vmem:[%s3730_s5 + $0x48] sm:$0xff] }
  0x77   : > { %3040 = vmatpush3.bf16.msra.mxu0 %v3377_v59  ;;  %v3438_v59 = vld [vmem:[%s4358_s1 + $0x540] sm:$0xff]  }
  0x78   : > { %3041 = vmatprep.subr.bf16.mxu0 %v3380_v62  ;;  %v2676_v62 = vcombine.high %v178_v60, %v178_v60 }
  0x79   : > { %3062 = vmatpush3.bf16.msra.mxu1 %v3379_v61  ;;  %v2675_v61 = vcombine.low %v178_v60, %v178_v60  ;;  %v3496_v60 = vld [vmem:[%s4358_s1 + $0x6b0] sm:$0xff]  }
  0x7a   : > { %3063 = vmatprep.subr.bf16.mxu1 %v3382_v0  ;;  %v3442_v0 = vld [vmem:[%s4358_s1 + $0x5c0] sm:$0xff]  }
  0x7b   : > { %3042 = vmatpush3.bf16.msra.mxu0 %v3381_v63  ;;  %v3441_v63 = vld [vmem:[%s4358_s1 + $0x500] sm:$0xff]  }
  0x7c   : > { %3043 = vmatprep.subr.bf16.mxu0 %v3384_v2  ;;  %v3444_v2 = vld [vmem:[%s4358_s1 + $0x548] sm:$0xff]  }
  0x7d   : > { %3064 = vmatpush3.bf16.msra.mxu1 %v3383_v1  ;;  %v3443_v1 = vld [vmem:[%s4358_s1 + $0x580] sm:$0xff]  }
  0x7e   : > { %3065 = vmatprep.subr.bf16.mxu1 %v3386_v4  ;;  %v3446_v4 = vld [vmem:[%s4358_s1 + $0x5c8] sm:$0xff]  }
  0x7f   : > { %3044 = vmatpush3.bf16.msra.mxu0 %v3385_v3  ;;  %v3445_v3 = vld [vmem:[%s4358_s1 + $0x508] sm:$0xff]  }
  0x80   : > { %3045 = vmatprep.subr.bf16.mxu0 %v3388_v6  ;;  %v3448_v6 = vld [vmem:[%s4358_s1 + $0x550] sm:$0xff]  }
  0x81   : > { %3066 = vmatpush3.bf16.msra.mxu1 %v3387_v5  ;;  %v3447_v5 = vld [vmem:[%s4358_s1 + $0x588] sm:$0xff]  }
  0x82   : > { %3067 = vmatprep.subr.bf16.mxu1 %v3390_v8  ;;  %v3450_v8 = vld [vmem:[%s4358_s1 + $0x5d0] sm:$0xff]  }
  0x83   : > { %3046 = vmatpush3.bf16.msra.mxu0 %v3389_v7  ;;  %v3449_v7 = vld [vmem:[%s4358_s1 + $0x510] sm:$0xff]  }
  0x84   : > { %3047 = vmatprep.subr.bf16.mxu0 %v3392_v10  ;;  %v3452_v10 = vld [vmem:[%s4358_s1 + $0x558] sm:$0xff]  }
  0x85   : > { %3068 = vmatpush3.bf16.msra.mxu1 %v3391_v9  ;;  %v3451_v9 = vld [vmem:[%s4358_s1 + $0x590] sm:$0xff]  }
  0x86   : > { %3069 = vmatprep.subr.bf16.mxu1 %v3394_v12  ;;  %v3454_v12 = vld [vmem:[%s4358_s1 + $0x5d8] sm:$0xff]  }
  0x87   : > { %3048 = vmatpush3.bf16.msra.mxu0 %v3393_v11  ;;  %v3453_v11 = vld [vmem:[%s4358_s1 + $0x518] sm:$0xff]  }
  0x88   : > { %3049 = vmatprep.subr.bf16.mxu0 %v3396_v14  ;;  %v3456_v14 = vld [vmem:[%s4358_s1 + $0x560] sm:$0xff]  }
  0x89   : > { %3070 = vmatpush3.bf16.msra.mxu1 %v3395_v13  ;;  %v3455_v13 = vld [vmem:[%s4358_s1 + $0x598] sm:$0xff]  }
  0x8a   : > { %3071 = vmatprep.subr.bf16.mxu1 %v3398_v16  ;;  %v3458_v16 = vld [vmem:[%s4358_s1 + $0x5e0] sm:$0xff]  }
  0x8b   : > { %3050 = vmatpush3.bf16.msra.mxu0 %v3397_v15  ;;  %v3457_v15 = vld [vmem:[%s4358_s1 + $0x520] sm:$0xff]  }
  0x8c   : > { %3079 = vmatprep.subr.bf16.mxu0 %v3402_v21  ;;  %v3463_v21 = vld [vmem:[%s4358_s1 + $0x5a8] sm:$0xff]  }
  0x8d   : > { %3072 = vmatpush3.bf16.msra.mxu1 %v3401_v20  ;;  %v3462_v20 = vld [vmem:[%s4358_s1 + $0x5e8] sm:$0xff]  }
  0x8e   : > { %2286 = vmatmul.mubr.bf16.vlgmr.msra.gmra.mrb[12].mxu0 %v2669_v18  ;;  %3101 = vmatprep.subr.bf16.mxu1 %v3406_v26  ;;  %v3460_v18 = vld [vmem:[%s4358_s1 + $0x568] sm:$0xff]   ;;  %v3468_v26 = vld [vmem:[%s4358_s1 + $0x578] sm:$0xff]  }
  0x8f   : > { %3080 = vmatpush3.bf16.msra.mxu0 %v3405_v25  ;;  %2365 = vmatprep.mubr.bf16.mxu0 %v2674_v57  ;;  %v3467_v25 = vld [vmem:[%s4358_s1 + $0x5b0] sm:$0xff]   ;;  %v181_v57 = vld [vmem:[%s3730_s5 + $0x60] sm:$0xff] }
  0x90   : > { %2326 = vmatmul.mubr.bf16.vlgmr.msra.gmra.mrb[12].mxu1 %v2671_v23  ;;  %3081 = vmatprep.subr.bf16.mxu0 %v3408_v28  ;;  %v3465_v23 = vld [vmem:[%s4358_s1 + $0x530] sm:$0xff]   ;;  %v3470_v28 = vld [vmem:[%s4358_s1 + $0x5f8] sm:$0xff]  }
  0x91   : > { %3102 = vmatpush3.bf16.msra.mxu1 %v3407_v27  ;;  %2405 = vmatprep.mubr.bf16.mxu1 %v2676_v62  ;;  %v3469_v27 = vld [vmem:[%s4358_s1 + $0x538] sm:$0xff]  }
  0x92   : > { %3103 = vmatprep.subr.bf16.mxu1 %v3410_v30  ;;  %v3501_v62 = vld [vmem:[%s4358_s1 + $0x6b8] sm:$0xff]  }
  0x93   : > { %3082 = vmatpush3.bf16.msra.mxu0 %v3409_v29  ;;  %v179_v29 = vld [vmem:[%s3730_s5 + $0x50] sm:$0xff] }
  0x94   : > { %3083 = vmatprep.subr.bf16.mxu0 %v3412_v32  ;;  %v2677_v30 = vcombine.low %v179_v29, %v179_v29  ;;  %v3473_v32 = vld [vmem:[%s4358_s1 + $0x5b8] sm:$0xff]  }
  0x95   : > { %3104 = vmatpush3.bf16.msra.mxu1 %v3411_v31  ;;  %v2678_v31 = vcombine.high %v179_v29, %v179_v29 }
  0x96   : > { %3105 = vmatprep.subr.bf16.mxu1 %v3414_v34  ;;  %v180_v34 = vld [vmem:[%s3730_s5 + $0x58] sm:$0xff] }
  0x97   : > { %3084 = vmatpush3.bf16.msra.mxu0 %v3413_v33  ;;  %v3474_v33 = vld [vmem:[%s4358_s1 + $0x640] sm:$0xff]  }
  0x98   : > { %3085 = vmatprep.subr.bf16.mxu0 %v3416_v36  ;;  %v2680_v36 = vcombine.high %v180_v34, %v180_v34 }
  0x99   : > { %3106 = vmatpush3.bf16.msra.mxu1 %v3415_v35  ;;  %v2679_v35 = vcombine.low %v180_v34, %v180_v34 }
  0x9a   : > { %3107 = vmatprep.subr.bf16.mxu1 %v3418_v38  ;;  %v3478_v38 = vld [vmem:[%s4358_s1 + $0x680] sm:$0xff]  }
  0x9b   : > { %3086 = vmatpush3.bf16.msra.mxu0 %v3417_v37  ;;  %v3477_v37 = vld [vmem:[%s4358_s1 + $0x600] sm:$0xff]  }
  0x9c   : > { %3087 = vmatprep.subr.bf16.mxu0 %v3420_v40  ;;  %v3567_v40 = vmov 0.0  }
  0x9d   : > { %3108 = vmatpush3.bf16.msra.mxu1 %v3419_v39  ;;  %v3479_v39 = vld [vmem:[%s4358_s1 + $0x648] sm:$0xff]  }
  0x9e   : > { %3109 = vmatprep.subr.bf16.mxu1 %v3422_v42  ;;  %v3481_v42 = vld [vmem:[%s4358_s1 + $0x688] sm:$0xff]  }
  0x9f   : > { %3088 = vmatpush3.bf16.msra.mxu0 %v3421_v41  ;;  %v3480_v41 = vld [vmem:[%s4358_s1 + $0x608] sm:$0xff]  }
  0xa0   : > { %3089 = vmatprep.subr.bf16.mxu0 %v3424_v44  ;;  %v3483_v44 = vld [vmem:[%s4358_s1 + $0x610] sm:$0xff]  }
  0xa1   : > { %3110 = vmatpush3.bf16.msra.mxu1 %v3423_v43  ;;  %v3482_v43 = vld [vmem:[%s4358_s1 + $0x650] sm:$0xff]  }
  0xa2   : > { %3111 = vmatprep.subr.bf16.mxu1 %v3426_v46  ;;  %v3485_v46 = vld [vmem:[%s4358_s1 + $0x658] sm:$0xff]  }
  0xa3   : > { %3090 = vmatpush3.bf16.msra.mxu0 %v3425_v45  ;;  %v3484_v45 = vld [vmem:[%s4358_s1 + $0x690] sm:$0xff]  }
  0xa4   : > { %3091 = vmatprep.subr.bf16.mxu0 %v3428_v48  ;;  %v3488_v48 = vld [vmem:[%s4358_s1 + $0x660] sm:$0xff]  }
  0xa5   : > { %3112 = vmatpush3.bf16.msra.mxu1 %v3427_v47  ;;  %v3486_v47 = vld [vmem:[%s4358_s1 + $0x618] sm:$0xff]  }
  0xa6   : > { %3113 = vmatprep.subr.bf16.mxu1 %v3430_v50  ;;  %v3489_v50 = vld [vmem:[%s4358_s1 + $0x620] sm:$0xff]  }
  0xa7   : > { %3092 = vmatpush3.bf16.msra.mxu0 %v3429_v49  ;;  %v3487_v49 = vld [vmem:[%s4358_s1 + $0x698] sm:$0xff]  }
  0xa8   : > { %3093 = vmatprep.subr.bf16.mxu0 %v3432_v52  ;;  %v3490_v52 = vld [vmem:[%s4358_s1 + $0x6a0] sm:$0xff]  }
  0xa9   : > { %3114 = vmatpush3.bf16.msra.mxu1 %v3431_v51  ;;  %v3491_v51 = vld [vmem:[%s4358_s1 + $0x668] sm:$0xff]  }
  0xaa   : > { %3115 = vmatprep.subr.bf16.mxu1 %v3434_v54  ;;  %v3494_v54 = vld [vmem:[%s4358_s1 + $0x670] sm:$0xff]  }
  0xab   : > { %3094 = vmatpush3.bf16.msra.mxu0 %v3433_v53  ;;  %v3492_v53 = vld [vmem:[%s4358_s1 + $0x628] sm:$0xff]  }
  0xac   : > { %3123 = vmatprep.subr.bf16.mxu0 %v3438_v59  ;;  %v2682_v59 = vcombine.high %v181_v57, %v181_v57 }
  0xad   : > { %3116 = vmatpush3.bf16.msra.mxu1 %v3437_v58  ;;  %v3497_v58 = vld [vmem:[%s4358_s1 + $0x678] sm:$0xff]  }
  0xae   : > { %2366 = vmatmul.mubr.bf16.vlgmr.msra.gmra.mrb[16].mxu0 %v2673_v56  ;;  %3145 = vmatprep.subr.bf16.mxu1 %v3442_v0  ;;  %v3495_v56 = vld [vmem:[%s4358_s1 + $0x630] sm:$0xff]   ;;  %v3502_v0 = vld [vmem:[%s3730_s5 + $0x68] ss:$0 sps:$4 sm:$0xff]   ;;  %s161_s5 = sand.u32 1, %s3557_s13  }
  0xaf   : > { %3124 = vmatpush3.bf16.msra.mxu0 %v3441_v63  ;;  %2445 = vmatprep.mubr.bf16.mxu0 %v2678_v31  ;;  %v2681_v63 = vcombine.low %v181_v57, %v181_v57  ;;  %s162_s9 = scalar_lea.vmem [#allocation2], %s161_s5  ;;  %s2584_s20 = scalar_lea.sflag [#allocation3], %s161_s5 }
  0xb0   : > { %2406 = vmatmul.mubr.bf16.vlgmr.msra.gmra.mrb[16].mxu1 %v2675_v61  ;;  %3125 = vmatprep.subr.bf16.mxu0 %v3444_v2  ;;  %v3498_v61 = vld [vmem:[%s4358_s1 + $0x638] sm:$0xff]   ;;  %v2656_v2 = vld [vmem:[%s4359_s2] ss:$0 sm:$0xff]  ;;  %s2596_s10 = sshll.u32 %s162_s9, 4  ;;  %s4317_s10 = int_to_ptr.vmem [resolvable:$true] %s2596_s10 }
  0xb1   : > { %3146 = vmatpush3.bf16.msra.mxu1 %v3443_v1  ;;  %2485 = vmatprep.mubr.bf16.mxu1 %v2680_v36  ;;  %s3503_s24 = scalar_lea.vmem %s4317_s10, 16  ;;  %p3510_p0 = scmp.lt.s32.totalorder %s4317_s10, %s3508_s25 }
  0xb2   : > { %3147 = vmatprep.subr.bf16.mxu1 %v3446_v4  ;;  %p3504_p11 = scmp.ne.s32.totalorder %s4317_s10, %s3503_s24  ;;  %p3511_p1 = scmp.lt.s32.totalorder %s3509_s26, %s3503_s24 }
  0xb3   : > { %3126 = vmatpush3.bf16.msra.mxu0 %v3445_v3 }
  0xb4   : > { %3127 = vmatprep.subr.bf16.mxu0 %v3448_v6  ;;  %p3505_p12 = pnand %p3504_p11, %p3628_p5  ;;  %p3512_p2 = por %p3511_p1, %p3510_p0 }
  0xb5   : > { %3148 = vmatpush3.bf16.msra.mxu1 %v3447_v5 }
  0xb6   : > { %3149 = vmatprep.subr.bf16.mxu1 %v3450_v8  ;;  %p3506_p13 = pneg %p3505_p12 }
  0xb7   : > { %3128 = vmatpush3.bf16.msra.mxu0 %v3449_v7 }
  0xb8   : > { %3129 = vmatprep.subr.bf16.mxu0 %v3452_v10  ;;  %p3513_p3 = pnand %p3512_p2, %p3506_p13 }
  0xb9   : > { %3150 = vmatpush3.bf16.msra.mxu1 %v3451_v9 }
  0xba   : > { %3151 = vmatprep.subr.bf16.mxu1 %v3454_v12 }
  0xbb   : > { %3130 = vmatpush3.bf16.msra.mxu0 %v3453_v11 }
  0xbc   : > { %3131 = vmatprep.subr.bf16.mxu0 %v3456_v14 }
  0xbd   : > { %3152 = vmatpush3.bf16.msra.mxu1 %v3455_v13 }
  0xbe   : > { %3153 = vmatprep.subr.bf16.mxu1 %v3458_v16 }
  0xbf   : > { %3132 = vmatpush3.bf16.msra.mxu0 %v3457_v15 }
  0xc0   : > { %3133 = vmatprep.subr.bf16.mxu0 %v3460_v18 }
  0xc1   : > { %3154 = vmatpush3.bf16.msra.mxu1 %v3459_v17 }
  0xc2   : > { %3155 = vmatprep.subr.bf16.mxu1 %v3462_v20 }
  0xc3   : > { %3134 = vmatpush3.bf16.msra.mxu0 %v3461_v19 }
  0xc4   : > { %3135 = vmatprep.subr.bf16.mxu0 %v3464_v22 }
  0xc5   : > { %3156 = vmatpush3.bf16.msra.mxu1 %v3463_v21 }
  0xc6   : > { %3157 = vmatprep.subr.bf16.mxu1 %v3466_v24 }
  0xc7   : > { %3136 = vmatpush3.bf16.msra.mxu0 %v3465_v23 }
  0xc8   : > { %3137 = vmatprep.subr.bf16.mxu0 %v3468_v26 }
  0xc9   : > { %3158 = vmatpush3.bf16.msra.mxu1 %v3467_v25 }
  0xca   : > { %3159 = vmatprep.subr.bf16.mxu1 %v3470_v28 }
  0xcb   : > { %3138 = vmatpush3.bf16.msra.mxu0 %v3469_v27 }
  0xcc   : > { %3167 = vmatprep.subr.bf16.mxu0 %v3474_v33 }
  0xcd   : > { %3160 = vmatpush3.bf16.msra.mxu1 %v3473_v32 }
  0xce   : > { %2446 = vmatmul.mubr.bf16.vlgmr.msra.gmra.mrb[20].mxu0 %v2677_v30  ;;  %3198 = vmatprep.subr.bf16.mxu1 %v3567_v40 }
  0xcf   : > { %3168 = vmatpush3.bf16.msra.mxu0 %v3477_v37  ;;  %2525 = vmatprep.mubr.bf16.mxu0 %v2682_v59 }
  0xd0   : > { %2486 = vmatmul.mubr.bf16.vlgmr.msra.gmra.mrb[20].mxu1 %v2679_v35  ;;  %3169 = vmatprep.subr.bf16.mxu0 %v3479_v39 }
  0xd1   : > { %3199 = vmatpush3.bf16.msra.mxu1 %v3478_v38  ;;  %3214 = vmatprep.mubr.msk.bf16.mxu1 %vm3568_vm0, %v3567_v40 }
  0xd2   : > { %3200 = vmatprep.subr.bf16.mxu1 %v3567_v40 }
  0xd3   : > { %3170 = vmatpush3.bf16.msra.mxu0 %v3480_v41 }
  0xd4   : > { %3171 = vmatprep.subr.bf16.mxu0 %v3482_v43 }
  0xd5   : > { %3201 = vmatpush3.bf16.msra.mxu1 %v3481_v42 }
  0xd6   : > { %3202 = vmatprep.subr.bf16.mxu1 %v3567_v40 }
  0xd7   : > { %3172 = vmatpush3.bf16.msra.mxu0 %v3483_v44 }
  0xd8   : > { %3173 = vmatprep.subr.bf16.mxu0 %v3485_v46 }
  0xd9   : > { %3203 = vmatpush3.bf16.msra.mxu1 %v3484_v45 }
  0xda   : > { %3204 = vmatprep.subr.bf16.mxu1 %v3567_v40 }
  0xdb   : > { %3174 = vmatpush3.bf16.msra.mxu0 %v3486_v47 }
  0xdc   : > { %3175 = vmatprep.subr.bf16.mxu0 %v3488_v48 }
  0xdd   : > { %3205 = vmatpush3.bf16.msra.mxu1 %v3487_v49 }
  0xde   : > { %3206 = vmatprep.subr.bf16.mxu1 %v3567_v40 }
  0xdf   : > { %3176 = vmatpush3.bf16.msra.mxu0 %v3489_v50 }
  0xe0   : > { %3177 = vmatprep.subr.bf16.mxu0 %v3491_v51 }
  0xe1   : > { %3207 = vmatpush3.bf16.msra.mxu1 %v3490_v52 }
  0xe2   : > { %3208 = vmatprep.subr.bf16.mxu1 %v3567_v40 }
  0xe3   : > { %3178 = vmatpush3.bf16.msra.mxu0 %v3492_v53 }
  0xe4   : > { %3179 = vmatprep.subr.bf16.mxu0 %v3494_v54 }
  0xe5   : > { %3209 = vmatpush3.bf16.msra.mxu1 %v3493_v55 }
  0xe6   : > { %3210 = vmatprep.subr.bf16.mxu1 %v3567_v40 }
  0xe7   : > { %3180 = vmatpush3.bf16.msra.mxu0 %v3495_v56 }
  0xe8   : > { %3181 = vmatprep.subr.bf16.mxu0 %v3497_v58 }
  0xe9   : > { %3211 = vmatpush3.bf16.msra.mxu1 %v3496_v60 }
  0xea   : > { %3212 = vmatprep.subr.bf16.mxu1 %v3567_v40 }
  0xeb   : > { %3182 = vmatpush3.bf16.msra.mxu0 %v3498_v61 }
  0xed   : > { %3213 = vmatpush3.bf16.msra.mxu1 %v3501_v62 }
  0xee   : > { %2526 = vmatmul.mubr.bf16.vlgmr.msra.gmra.mrb[24].mxu0 %v2681_v63 }
  0xf0   : > { %3215 = vmatmul.mubr.bf16.vlgmr.msra.gmra.mrb[24].mxu1 %v3502_v0 }
 0x101   : > { %v2919_v1 = vpop.f32.mrb[0].mxu0 }
 0x102   : > { %v2920_v3 = vpop.f32.mrb[1].mxu0 }
 0x103   : > { %v2921_v4 = vadd.f32 %v2920_v3, %v2919_v1  ;;  %v2922_v5 = vpop.f32.mrb[2].mxu0  ;;  %v2941_v6 = vpop.f32.mrb[0].mxu1 }
 0x104   : > { %v2923_v7 = vpop.f32.mrb[3].mxu0  ;;  %v2942_v8 = vpop.f32.mrb[1].mxu1 }
 0x105   : > { %v2048_v9 = vadd.f32 %v2921_v4, %v2656_v2  ;;  %v2943_v10 = vadd.f32 %v2942_v8, %v2941_v6  ;;  %v2944_v11 = vpop.f32.mrb[2].mxu1 }
 0x106   : > { %v2945_v12 = vpop.f32.mrb[3].mxu1 }
 0x107   : > { %v2088_v13 = vadd.f32 %v2943_v10, %v2048_v9 }
 0x121   : > { %v2963_v14 = vpop.f32.mrb[4].mxu0 }
 0x122   : > { %v2964_v15 = vpop.f32.mrb[5].mxu0 }
 0x123   : > { %v2965_v16 = vadd.f32 %v2964_v15, %v2963_v14  ;;  %v2966_v17 = vpop.f32.mrb[6].mxu0  ;;  %v2985_v18 = vpop.f32.mrb[4].mxu1 }
 0x124   : > { %v2967_v19 = vpop.f32.mrb[7].mxu0  ;;  %v2986_v21 = vpop.f32.mrb[5].mxu1 }
 0x125   : > { %v2128_v20 = vadd.f32 %v2965_v16, %v2088_v13  ;;  %v2987_v22 = vadd.f32 %v2986_v21, %v2985_v18  ;;  %v2988_v23 = vpop.f32.mrb[6].mxu1 }
 0x126   : > { %v2989_v24 = vpop.f32.mrb[7].mxu1 }
 0x127   : > { %v2168_v25 = vadd.f32 %v2987_v22, %v2128_v20 }
 0x141   : > { %v3007_v26 = vpop.f32.mrb[8].mxu0 }
 0x142   : > { %v3008_v27 = vpop.f32.mrb[9].mxu0 }
 0x143   : > { %v3009_v28 = vadd.f32 %v3008_v27, %v3007_v26  ;;  %v3010_v29 = vpop.f32.mrb[10].mxu0  ;;  %v3029_v30 = vpop.f32.mrb[8].mxu1 }
 0x144   : > { %v3011_v31 = vpop.f32.mrb[11].mxu0  ;;  %v3030_v32 = vpop.f32.mrb[9].mxu1 }
 0x145   : > { %v2208_v33 = vadd.f32 %v3009_v28, %v2168_v25  ;;  %v3031_v34 = vadd.f32 %v3030_v32, %v3029_v30  ;;  %v3032_v35 = vpop.f32.mrb[10].mxu1 }
 0x146   : > { %v3033_v36 = vpop.f32.mrb[11].mxu1 }
 0x147   : > { %v2248_v37 = vadd.f32 %v3031_v34, %v2208_v33 }
 0x161   : > { %v3051_v38 = vpop.f32.mrb[12].mxu0 }
 0x162   : > { %v3052_v39 = vpop.f32.mrb[13].mxu0 }
 0x163   : > { %v3053_v40 = vadd.f32 %v3052_v39, %v3051_v38  ;;  %v3054_v41 = vpop.f32.mrb[14].mxu0  ;;  %v3073_v42 = vpop.f32.mrb[12].mxu1 }
 0x164   : > { %v3055_v43 = vpop.f32.mrb[15].mxu0  ;;  %v3074_v44 = vpop.f32.mrb[13].mxu1 }
 0x165   : > { %v2288_v45 = vadd.f32 %v3053_v40, %v2248_v37  ;;  %v3075_v46 = vadd.f32 %v3074_v44, %v3073_v42  ;;  %v3076_v47 = vpop.f32.mrb[14].mxu1 }
 0x166   : > { %v3077_v48 = vpop.f32.mrb[15].mxu1 }
 0x167   : > { %v2328_v49 = vadd.f32 %v3075_v46, %v2288_v45 }
 0x181   : > { %v3095_v50 = vpop.f32.mrb[16].mxu0 }
 0x182   : > { %v3096_v51 = vpop.f32.mrb[17].mxu0 }
 0x183   : > { %v3097_v52 = vadd.f32 %v3096_v51, %v3095_v50  ;;  %v3098_v53 = vpop.f32.mrb[18].mxu0  ;;  %v3117_v54 = vpop.f32.mrb[16].mxu1 }
 0x184   : > { %v3099_v55 = vpop.f32.mrb[19].mxu0  ;;  %v3118_v57 = vpop.f32.mrb[17].mxu1 }
 0x185   : > { %v2368_v56 = vadd.f32 %v3097_v52, %v2328_v49  ;;  %v3119_v58 = vadd.f32 %v3118_v57, %v3117_v54  ;;  %v3120_v59 = vpop.f32.mrb[18].mxu1 }
 0x186   : > { %v3121_v60 = vpop.f32.mrb[19].mxu1 }
 0x187   : > { %v2408_v61 = vadd.f32 %v3119_v58, %v2368_v56 }
 0x1a1   : > { %v3139_v62 = vpop.f32.mrb[20].mxu0 }
 0x1a2   : > { %v3140_v63 = vpop.f32.mrb[21].mxu0 }
 0x1a3   : > { %v3141_v0 = vadd.f32 %v3140_v63, %v3139_v62  ;;  %v3142_v1 = vpop.f32.mrb[22].mxu0  ;;  %v3161_v2 = vpop.f32.mrb[20].mxu1 }
 0x1a4   : > { %v3143_v3 = vpop.f32.mrb[23].mxu0  ;;  %v3162_v4 = vpop.f32.mrb[21].mxu1 }
 0x1a5   : > { %v2448_v5 = vadd.f32 %v3141_v0, %v2408_v61  ;;  %v3163_v6 = vadd.f32 %v3162_v4, %v3161_v2  ;;  %v3164_v7 = vpop.f32.mrb[22].mxu1 }
 0x1a6   : > { %v3165_v8 = vpop.f32.mrb[23].mxu1 }
 0x1a7   : > { %v2488_v9 = vadd.f32 %v3163_v6, %v2448_v5 }
 0x1c1   : > { %v3183_v10 = vpop.f32.mrb[24].mxu0 }
 0x1c2   : > { %v3184_v11 = vpop.f32.mrb[25].mxu0 }
 0x1c3   : > { %v3185_v12 = vadd.f32 %v3184_v11, %v3183_v10  ;;  %v3186_v13 = vpop.f32.mrb[26].mxu0  ;;  %v2567_v14 = vpop.f32.mrb[24].mxu1 }
 0x1c4   : > { %v3187_v15 = vpop.f32.mrb[27].mxu0  ;;  %v3216_v16 = vpop.f32.mrb[25].mxu1 }
 0x1c5   : > { %v2528_v17 = vadd.f32 %v3185_v12, %v2488_v9  ;;  %v2570_v18 = vpop.f32.mrb[26].mxu1 }
 0x1c6   : > { %v3217_v19 = vpop.f32.mrb[27].mxu1 }
 0x1c7   : > { %v2568_v20 = vadd.f32 %v2567_v14, %v2528_v17 }
 0x1c9   : > { %v2573_v21 = vmax.f32 %v2568_v20, 0.0 }
 0x1cb   : > { %v2574_v22 = vrot.slane %v2573_v21, 4 }
 0x1cd   : > { %v2575_v23 = vadd.f32 %v2574_v22, %v2573_v21 }
 0x1cf   : > { %v2576_v24 = vrot.slane %v2575_v23, 2 }
 0x1d1   : > { %v2577_v25 = vadd.f32 %v2576_v24, %v2575_v23 }
 0x1d3   : > { %v2578_v26 = vrot.slane %v2577_v25, 1 }
 0x1d5   : > { %v2579_v27 = vadd.f32 %v2578_v26, %v2577_v25 }
 0x1d7   : > { %v2581_v28 = vmul.f32 0.125, %v2579_v27 }
 0x1d9   : > { %2582 = vst [vmem:[%s162_s9] sm:$0x1] %v2581_v28 }
 0x1da   : > { %3516 = shalt.err (!%p3513_p3)
}
 0x1db   : > { %s3517_s27 = scalar_lea.hbm %s4315_s19, 16  ;;  %s3521_s30 = scalar_lea.hbm %s4360_s3, 32 }
 0x1dc   : > { %p3518_p4 = scmp.ne.s32.totalorder %s4315_s19, %s3517_s27  ;;  %p3522_p9 = scmp.lt.u32.totalorder %s4315_s19, %s4360_s3 }
 0x1dd   : > { %p3523_p10 = scmp.lt.u32.totalorder %s3521_s30, %s3517_s27  ;;  %p3525_p12 = scmp.lt.u32.totalorder %s3517_s27, %s4315_s19 }
 0x1de   : > { %p3519_p7 = pnand %p3518_p4, %p3628_p5 }
 0x1df   : > { %p3524_p11 = por %p3523_p10, %p3522_p9 }
 0x1e0   : > { %p3520_p8 = pneg %p3519_p7 }
 0x1e1   : > { %p3526_p13 = por %p3525_p12, %p3524_p11 }
 0x1e3   : > { %p3527_p0 = pnand %p3526_p13, %p3520_p8 }
 0x1e5   : > { %3530 = shalt.err (!%p3527_p0)
}
 0x1e6   : > { %3219 = dma.vmem_to_hbm [thread:$0]  (%p3628_p5), %s4317_s10, 16, %s4315_s19, %s2584_s20  }
 0x1e7 PF: > { %p3225_p1 = scmp.ge.s32.totalorder %s3565_s15, 2  ;;  %s2608_s7 = sand.u32 1, %s3553_s12  }
 0x1e8   : > { %s2609_s5 = scalar_lea.sflag [#allocation3], %s2608_s7 }
 0x1e9   : > { %p3222_p2 = pnand %p3225_p1, %p3632_p6 }
 0x1eb   : > { %3548 = dma.done.wait (!%p3222_p2), %s2609_s5, 16  }
 0x1ec   : > { %3550 = vsyncadd (!%p3222_p2), %s2609_s5, 4294967280  ;;  %p13_p3 = scmp.ge.s32.totalorder %s3615_s18, 4   ;;  %s4363_s12 = smov %s3557_s13 }
 0x1ed   : > { %s4364_s13 = smov %s3561_s14  ;;  %s4365_s14 = smov %s3626_s21 }
 0x1ee   : > { %s4366_s15 = smov %s3615_s18  ;;  %15 = sbr.rel (!%p13_p3) target bundleno = 3 (0x3), region = 67 }
 0x1f5   :  { %2613 = vsyncpa [#allocation3], 1 }
 0x1f6   :  { %2615 = vsyncpa [#allocation3 + $0x1], 1 }

</bundles_post_ra>
